<compile_context>
chip_gen: v5e
topology: v5e:2x2
jax: 0.10.0
libtpu: 0.0.40
codegen_flags: <defaults>
</compile_context>

<pallas_src>
import jax
import jax.numpy as jnp
from jax import lax
from jax.experimental import pallas as pl
from jax.experimental.pallas import tpu as pltpu

EPS = 1e-5      # nn.BatchNorm2d default eps
SLOPE = 0.2     # LeakyReLU negative slope


def _residual_block_kernel(x_ref, w1_ref, g1_ref, be1_ref,
                           w2_ref, g2_ref, be2_ref,
                           out_ref, pad_ref):
    # x_ref  : (N, H, W, C)     un-padded NHWC input (f32)
    # w*_ref : (C, 9*C)         im2col conv weights (tap-major, channel-minor columns)
    # g*/be* : (C, 1)           BN gamma / beta
    # out_ref: (C, M)           lane-dense output, M = N*H*W (multiple of 128 here)
    # pad_ref: (N, H+2, W+2, C) VMEM padded scratch, shared by both convs
    N, H, W, C = x_ref.shape
    Hp, Wp = H + 2, W + 2
    M = N * H * W
    inv_m = 1.0 / M

    # ---- zero ONLY the 1-px halo ring, once (interior is overwritten below and
    #      the zero ring is reused as-is for the second conv) ----
    pad_ref[:, 0:1, :, :] = jnp.zeros((N, 1, Wp, C), jnp.float32)
    pad_ref[:, Hp - 1:Hp, :, :] = jnp.zeros((N, 1, Wp, C), jnp.float32)
    pad_ref[:, :, 0:1, :] = jnp.zeros((N, Hp, 1, C), jnp.float32)
    pad_ref[:, :, Wp - 1:Wp, :] = jnp.zeros((N, Hp, 1, C), jnp.float32)

    def conv3x3(w_ref):
        # im2col: gather the 9 taps straight off the padded scratch ref (no full
        # reload) into a (9C, M) patch matrix, then ONE MXU matmul producing a
        # lane-dense (C, M) result.
        taps = []
        for di in range(3):
            for dj in range(3):
                patch = pad_ref[:, di:di + H, dj:dj + W, :]          # (N, H, W, C)
                taps.append(patch.reshape(M, C).T)                   # (C, M)
        p = jnp.concatenate(taps, axis=0)                            # (9C, M)
        return jnp.dot(w_ref[...], p,
                       preferred_element_type=jnp.float32)           # (C, M)

    def batch_norm(y, g_ref, be_ref):
        # training-mode BN: one-pass per-channel moments over the lane axis,
        # folded into a single per-element scale/shift FMA.
        s = jnp.sum(y, axis=-1, keepdims=True)                       # (C, 1)
        s2 = jnp.sum(y * y, axis=-1, keepdims=True)                  # (C, 1)
        mean = s * inv_m
        var = s2 * inv_m - mean * mean                               # biased variance
        scale = g_ref[...] * lax.rsqrt(var + EPS)
        shift = be_ref[...] - mean * scale
        return y * scale + shift

    # ---- branch 1: pad(x) -> conv1 -> bn1 -> leaky_relu ----
    x = x_ref[...].astype(jnp.float32)                               # (N, H, W, C)
    pad_ref[:, 1:H + 1, 1:W + 1, :] = x                              # in-kernel padding
    y1 = batch_norm(conv3x3(w1_ref), g1_ref, be1_ref)                # (C, M)
    y1 = jnp.maximum(y1, SLOPE * y1)                                 # LeakyReLU(0.2)

    # ---- branch 2: pad(y1) -> conv2 -> bn2   (halo ring is still zero) ----
    pad_ref[:, 1:H + 1, 1:W + 1, :] = y1.T.reshape(N, H, W, C)
    y2 = batch_norm(conv3x3(w2_ref), g2_ref, be2_ref)                # (C, M)

    # ---- residual add, lane-dense full-width store ----
    residual = x.reshape(M, C).T                                     # (C, M)
    out_ref[...] = y2 + residual


def enhanced_residual_block(x_nchw, params):
    """PyTorch-compatible entry point: x is NCHW float32, output is NCHW float32."""
    N, C, H, W = x_nchw.shape
    M = N * H * W

    # Layout plumbing (cheap XLA ops): NCHW -> NHWC input; conv weights OIHW ->
    # (C_out, 9*C_in) im2col matrices (tap-major, channel-minor columns, matching the
    # kernel's patch ordering); BN params -> (C, 1) columns.
    x_nhwc = jnp.transpose(x_nchw.astype(jnp.float32), (0, 2, 3, 1))
    w1m = jnp.transpose(params["w1"], (0, 2, 3, 1)).reshape(C, 9 * C)
    w2m = jnp.transpose(params["w2"], (0, 2, 3, 1)).reshape(C, 9 * C)
    g1 = params["g1"].reshape(C, 1)
    be1 = params["beta1"].reshape(C, 1)
    g2 = params["g2"].reshape(C, 1)
    be2 = params["beta2"].reshape(C, 1)
    # NOTE: conv biases (params["b1"], params["b2"]) cancel exactly under
    # training-mode BatchNorm and are therefore folded out of the kernel.

    args = (x_nhwc, w1m, g1, be1, w2m, g2, be2)
    vmem = lambda: pl.BlockSpec(memory_space=pltpu.MemorySpace.VMEM)

    # TODO(synk): for large shapes (e.g. N=8, C=64, H=W=128) this fully VMEM-resident
    # single-block design should become a gridded pipeline (tile over N / H rows with
    # a two-pass BN: partial sum/sumsq accumulated over an "arbitrary" grid axis, then
    # a normalise pass) with dimension_semantics=("parallel", ...) so both v7x
    # TensorCores are used; at the small demo shapes a single resident block is faster.
    out_cm = pl.pallas_call(
        _residual_block_kernel,
        out_shape=jax.ShapeDtypeStruct((C, M), jnp.float32),   # lane-dense output slab
        in_specs=[vmem() for _ in args],
        out_specs=vmem(),
        scratch_shapes=[pltpu.VMEM((N, H + 2, W + 2, C), jnp.float32)],
        compiler_params=pltpu.CompilerParams(vmem_limit_bytes=32 * 1024 * 1024),
    )(*args)

    # (C, M) -> (N, C, H, W): pure layout plumbing on a tiny tensor.
    return jnp.transpose(out_cm.reshape(C, N, H, W), (1, 0, 2, 3))


def init_params(key, channels):
    """Deterministic synthetic parameters in PyTorch layouts
    (conv weights OIHW, biases / BN params as (C,))."""
    ks = jax.random.split(key, 8)
    C = channels
    return {
        "w1": 0.1 * jax.random.normal(ks[0], (C, C, 3, 3), jnp.float32),
        "b1": 0.1 * jax.random.normal(ks[1], (C,), jnp.float32),
        "g1": 1.0 + 0.1 * jax.random.normal(ks[2], (C,), jnp.float32),
        "beta1": 0.1 * jax.random.normal(ks[3], (C,), jnp.float32),
        "w2": 0.1 * jax.random.normal(ks[4], (C, C, 3, 3), jnp.float32),
        "b2": 0.1 * jax.random.normal(ks[5], (C,), jnp.float32),
        "g2": 1.0 + 0.1 * jax.random.normal(ks[6], (C,), jnp.float32),
        "beta2": 0.1 * jax.random.normal(ks[7], (C,), jnp.float32),
    }


def _reference_nchw(x, p):
    """Pure-JAX/XLA reference (training-mode BN, conv bias included)."""
    def conv(z, w, b):
        y = lax.conv_general_dilated(z, w, (1, 1), "SAME",
                                     dimension_numbers=("NCHW", "OIHW", "NCHW"),
                                     precision=lax.Precision.HIGHEST)
        return y + b.reshape(1, -1, 1, 1)

    def bn(y, g, be):
        mean = jnp.mean(y, axis=(0, 2, 3), keepdims=True)
        var = jnp.mean((y - mean) ** 2, axis=(0, 2, 3), keepdims=True)
        return ((y - mean) * lax.rsqrt(var + EPS) * g.reshape(1, -1, 1, 1)
                + be.reshape(1, -1, 1, 1))

    out = bn(conv(x, p["w1"], p["b1"]), p["g1"], p["beta1"])
    out = jnp.where(out >= 0, out, SLOPE * out)
    out = bn(conv(out, p["w2"], p["b2"]), p["g2"], p["beta2"])
    return out + x


if __name__ == "__main__":
    key = jax.random.PRNGKey(0)
    k_x, k_p = jax.random.split(key)

    N, C, H, W = 2, 4, 16, 16                      # in_channels = 4
    x_nchw = jax.random.normal(k_x, (N, C, H, W), jnp.float32)
    params = init_params(k_p, C)

    out = enhanced_residual_block(x_nchw, params)
    out = jax.block_until_ready(out)

    # sanity check against a pure-JAX reference
    ref = _reference_nchw(x_nchw, params)
    assert out.shape == (N, C, H, W)
    assert bool(jnp.allclose(out, ref, atol=1e-2, rtol=1e-2)), "mismatch vs reference"

    print("KERNEL_OK")
</pallas_src>

<mosaic_0001>
module attributes {stable_mosaic.version = 11 : i64} {
  func.func @_residual_block_kernel(%arg0: memref<2x16x16x4xf32, #tpu.memory_space<vmem>>, %arg1: memref<4x36xf32, #tpu.memory_space<vmem>>, %arg2: memref<4x1xf32, #tpu.memory_space<vmem>>, %arg3: memref<4x1xf32, #tpu.memory_space<vmem>>, %arg4: memref<4x36xf32, #tpu.memory_space<vmem>>, %arg5: memref<4x1xf32, #tpu.memory_space<vmem>>, %arg6: memref<4x1xf32, #tpu.memory_space<vmem>>, %arg7: memref<4x512xf32, #tpu.memory_space<vmem>>, %arg8: memref<2x18x18x4xf32, #tpu.memory_space<vmem>>) attributes {dimension_semantics = [], scalar_prefetch = 0 : i64, scratch_operands = 1 : i64, tpu.core_type = #tpu.core_type<tc>} {
    %cst = arith.constant 0.000000e+00 : f32
    %0 = vector.broadcast %cst : f32 to vector<2x1x18x4xf32>
    %c0 = arith.constant 0 : index
    %c0_0 = arith.constant 0 : index
    %c0_1 = arith.constant 0 : index
    %c0_2 = arith.constant 0 : index
    %1 = vector.load %arg8[%c0, %c0_0, %c0_1, %c0_2] : memref<2x18x18x4xf32, #tpu.memory_space<vmem>>, vector<2x1x18x4xf32>
    tpu.vector_store %arg8[%c0, %c0_0, %c0_1, %c0_2], %0 {strides = array<i32>} : memref<2x18x18x4xf32, #tpu.memory_space<vmem>>, vector<2x1x18x4xf32>,
    %cst_3 = arith.constant 0.000000e+00 : f32
    %2 = vector.broadcast %cst_3 : f32 to vector<2x1x18x4xf32>
    %c0_4 = arith.constant 0 : index
    %c17 = arith.constant 17 : index
    %c0_5 = arith.constant 0 : index
    %c0_6 = arith.constant 0 : index
    %3 = vector.load %arg8[%c0_4, %c17, %c0_5, %c0_6] : memref<2x18x18x4xf32, #tpu.memory_space<vmem>>, vector<2x1x18x4xf32>
    tpu.vector_store %arg8[%c0_4, %c17, %c0_5, %c0_6], %2 {strides = array<i32>} : memref<2x18x18x4xf32, #tpu.memory_space<vmem>>, vector<2x1x18x4xf32>,
    %cst_7 = arith.constant 0.000000e+00 : f32
    %4 = vector.broadcast %cst_7 : f32 to vector<2x18x1x4xf32>
    %c0_8 = arith.constant 0 : index
    %c0_9 = arith.constant 0 : index
    %c0_10 = arith.constant 0 : index
    %c0_11 = arith.constant 0 : index
    %5 = vector.load %arg8[%c0_8, %c0_9, %c0_10, %c0_11] : memref<2x18x18x4xf32, #tpu.memory_space<vmem>>, vector<2x18x1x4xf32>
    tpu.vector_store %arg8[%c0_8, %c0_9, %c0_10, %c0_11], %4 {strides = array<i32>} : memref<2x18x18x4xf32, #tpu.memory_space<vmem>>, vector<2x18x1x4xf32>,
    %cst_12 = arith.constant 0.000000e+00 : f32
    %6 = vector.broadcast %cst_12 : f32 to vector<2x18x1x4xf32>
    %c0_13 = arith.constant 0 : index
    %c0_14 = arith.constant 0 : index
    %c17_15 = arith.constant 17 : index
    %c0_16 = arith.constant 0 : index
    %7 = vector.load %arg8[%c0_13, %c0_14, %c17_15, %c0_16] : memref<2x18x18x4xf32, #tpu.memory_space<vmem>>, vector<2x18x1x4xf32>
    tpu.vector_store %arg8[%c0_13, %c0_14, %c17_15, %c0_16], %6 {strides = array<i32>} : memref<2x18x18x4xf32, #tpu.memory_space<vmem>>, vector<2x18x1x4xf32>,
    %c0_17 = arith.constant 0 : index
    %c0_18 = arith.constant 0 : index
    %c0_19 = arith.constant 0 : index
    %c0_20 = arith.constant 0 : index
    %8 = vector.load %arg0[%c0_17, %c0_18, %c0_19, %c0_20] : memref<2x16x16x4xf32, #tpu.memory_space<vmem>>, vector<2x16x16x4xf32>
    %c0_21 = arith.constant 0 : index
    %c1 = arith.constant 1 : index
    %c1_22 = arith.constant 1 : index
    %c0_23 = arith.constant 0 : index
    %9 = vector.load %arg8[%c0_21, %c1, %c1_22, %c0_23] : memref<2x18x18x4xf32, #tpu.memory_space<vmem>>, vector<2x16x16x4xf32>
    tpu.vector_store %arg8[%c0_21, %c1, %c1_22, %c0_23], %8 {strides = array<i32>} : memref<2x18x18x4xf32, #tpu.memory_space<vmem>>, vector<2x16x16x4xf32>,
    %c0_24 = arith.constant 0 : index
    %c0_25 = arith.constant 0 : index
    %c0_26 = arith.constant 0 : index
    %c0_27 = arith.constant 0 : index
    %10 = vector.load %arg8[%c0_24, %c0_25, %c0_26, %c0_27] : memref<2x18x18x4xf32, #tpu.memory_space<vmem>>, vector<2x16x16x4xf32>
    %11 = vector.shape_cast %10 : vector<2x16x16x4xf32> to vector<512x4xf32>
    %12 = tpu.transpose %11, [1, 0] : vector<512x4xf32> -> vector<4x512xf32>
    %c0_28 = arith.constant 0 : index
    %c0_29 = arith.constant 0 : index
    %c1_30 = arith.constant 1 : index
    %c0_31 = arith.constant 0 : index
    %13 = vector.load %arg8[%c0_28, %c0_29, %c1_30, %c0_31] : memref<2x18x18x4xf32, #tpu.memory_space<vmem>>, vector<2x16x16x4xf32>
    %14 = vector.shape_cast %13 : vector<2x16x16x4xf32> to vector<512x4xf32>
    %15 = tpu.transpose %14, [1, 0] : vector<512x4xf32> -> vector<4x512xf32>
    %c0_32 = arith.constant 0 : index
    %c0_33 = arith.constant 0 : index
    %c2 = arith.constant 2 : index
    %c0_34 = arith.constant 0 : index
    %16 = vector.load %arg8[%c0_32, %c0_33, %c2, %c0_34] : memref<2x18x18x4xf32, #tpu.memory_space<vmem>>, vector<2x16x16x4xf32>
    %17 = vector.shape_cast %16 : vector<2x16x16x4xf32> to vector<512x4xf32>
    %18 = tpu.transpose %17, [1, 0] : vector<512x4xf32> -> vector<4x512xf32>
    %c0_35 = arith.constant 0 : index
    %c1_36 = arith.constant 1 : index
    %c0_37 = arith.constant 0 : index
    %c0_38 = arith.constant 0 : index
    %19 = vector.load %arg8[%c0_35, %c1_36, %c0_37, %c0_38] : memref<2x18x18x4xf32, #tpu.memory_space<vmem>>, vector<2x16x16x4xf32>
    %20 = vector.shape_cast %19 : vector<2x16x16x4xf32> to vector<512x4xf32>
    %21 = tpu.transpose %20, [1, 0] : vector<512x4xf32> -> vector<4x512xf32>
    %c0_39 = arith.constant 0 : index
    %c1_40 = arith.constant 1 : index
    %c1_41 = arith.constant 1 : index
    %c0_42 = arith.constant 0 : index
    %22 = vector.load %arg8[%c0_39, %c1_40, %c1_41, %c0_42] : memref<2x18x18x4xf32, #tpu.memory_space<vmem>>, vector<2x16x16x4xf32>
    %23 = vector.shape_cast %22 : vector<2x16x16x4xf32> to vector<512x4xf32>
    %24 = tpu.transpose %23, [1, 0] : vector<512x4xf32> -> vector<4x512xf32>
    %c0_43 = arith.constant 0 : index
    %c1_44 = arith.constant 1 : index
    %c2_45 = arith.constant 2 : index
    %c0_46 = arith.constant 0 : index
    %25 = vector.load %arg8[%c0_43, %c1_44, %c2_45, %c0_46] : memref<2x18x18x4xf32, #tpu.memory_space<vmem>>, vector<2x16x16x4xf32>
    %26 = vector.shape_cast %25 : vector<2x16x16x4xf32> to vector<512x4xf32>
    %27 = tpu.transpose %26, [1, 0] : vector<512x4xf32> -> vector<4x512xf32>
    %c0_47 = arith.constant 0 : index
    %c2_48 = arith.constant 2 : index
    %c0_49 = arith.constant 0 : index
    %c0_50 = arith.constant 0 : index
    %28 = vector.load %arg8[%c0_47, %c2_48, %c0_49, %c0_50] : memref<2x18x18x4xf32, #tpu.memory_space<vmem>>, vector<2x16x16x4xf32>
    %29 = vector.shape_cast %28 : vector<2x16x16x4xf32> to vector<512x4xf32>
    %30 = tpu.transpose %29, [1, 0] : vector<512x4xf32> -> vector<4x512xf32>
    %c0_51 = arith.constant 0 : index
    %c2_52 = arith.constant 2 : index
    %c1_53 = arith.constant 1 : index
    %c0_54 = arith.constant 0 : index
    %31 = vector.load %arg8[%c0_51, %c2_52, %c1_53, %c0_54] : memref<2x18x18x4xf32, #tpu.memory_space<vmem>>, vector<2x16x16x4xf32>
    %32 = vector.shape_cast %31 : vector<2x16x16x4xf32> to vector<512x4xf32>
    %33 = tpu.transpose %32, [1, 0] : vector<512x4xf32> -> vector<4x512xf32>
    %c0_55 = arith.constant 0 : index
    %c2_56 = arith.constant 2 : index
    %c2_57 = arith.constant 2 : index
    %c0_58 = arith.constant 0 : index
    %34 = vector.load %arg8[%c0_55, %c2_56, %c2_57, %c0_58] : memref<2x18x18x4xf32, #tpu.memory_space<vmem>>, vector<2x16x16x4xf32>
    %35 = vector.shape_cast %34 : vector<2x16x16x4xf32> to vector<512x4xf32>
    %36 = tpu.transpose %35, [1, 0] : vector<512x4xf32> -> vector<4x512xf32>
    %37 = tpu.concatenate %12, %15, %18, %21, %24, %27, %30, %33, %36 in 0 : vector<4x512xf32>, vector<4x512xf32>, vector<4x512xf32>, vector<4x512xf32>, vector<4x512xf32>, vector<4x512xf32>, vector<4x512xf32>, vector<4x512xf32>, vector<4x512xf32> -> vector<36x512xf32>
    %c0_59 = arith.constant 0 : index
    %c0_60 = arith.constant 0 : index
    %38 = vector.load %arg1[%c0_59, %c0_60] : memref<4x36xf32, #tpu.memory_space<vmem>>, vector<4x36xf32>
    %cst_61 = arith.constant dense<0.000000e+00> : vector<4x512xf32>
    %39 = tpu.matmul %38, %37, %cst_61 {dimension_numbers = #tpu.dot_dimension_numbers<[1], [0], [0], [1], [0, 0, 1, 1], [], []>} : vector<4x36xf32>, vector<36x512xf32>, vector<4x512xf32> -> vector<4x512xf32>
    %cst_62 = arith.constant dense<0.000000e+00> : vector<4xf32>
    %40 = vector.multi_reduction <add>, %39, %cst_62 [1] : vector<4x512xf32> to vector<4xf32>
    %41 = vector.shape_cast %40 : vector<4xf32> to vector<4x1xf32>
    %42 = arith.mulf %39, %39 : vector<4x512xf32>
    %cst_63 = arith.constant dense<0.000000e+00> : vector<4xf32>
    %43 = vector.multi_reduction <add>, %42, %cst_63 [1] : vector<4x512xf32> to vector<4xf32>
    %44 = vector.shape_cast %43 : vector<4xf32> to vector<4x1xf32>
    %cst_64 = arith.constant 0.001953125 : f32
    %45 = vector.broadcast %cst_64 : f32 to vector<4x1xf32>
    %46 = arith.mulf %41, %45 : vector<4x1xf32>
    %cst_65 = arith.constant 0.001953125 : f32
    %47 = vector.broadcast %cst_65 : f32 to vector<4x1xf32>
    %48 = arith.mulf %44, %47 : vector<4x1xf32>
    %49 = arith.mulf %46, %46 : vector<4x1xf32>
    %50 = arith.subf %48, %49 : vector<4x1xf32>
    %c0_66 = arith.constant 0 : index
    %c0_67 = arith.constant 0 : index
    %51 = vector.load %arg2[%c0_66, %c0_67] : memref<4x1xf32, #tpu.memory_space<vmem>>, vector<4x1xf32>
    %cst_68 = arith.constant 9.99999974E-6 : f32
    %52 = vector.broadcast %cst_68 : f32 to vector<4x1xf32>
    %53 = arith.addf %50, %52 : vector<4x1xf32>
    %54 = math.rsqrt %53 : vector<4x1xf32>
    %55 = arith.mulf %51, %54 : vector<4x1xf32>
    %c0_69 = arith.constant 0 : index
    %c0_70 = arith.constant 0 : index
    %56 = vector.load %arg3[%c0_69, %c0_70] : memref<4x1xf32, #tpu.memory_space<vmem>>, vector<4x1xf32>
    %57 = arith.mulf %46, %55 : vector<4x1xf32>
    %58 = arith.subf %56, %57 : vector<4x1xf32>
    %59 = vector.broadcast %55 : vector<4x1xf32> to vector<4x512xf32>
    %60 = arith.mulf %39, %59 : vector<4x512xf32>
    %61 = vector.broadcast %58 : vector<4x1xf32> to vector<4x512xf32>
    %62 = arith.addf %60, %61 : vector<4x512xf32>
    %cst_71 = arith.constant 2.000000e-01 : f32
    %63 = vector.broadcast %cst_71 : f32 to vector<4x512xf32>
    %64 = arith.mulf %63, %62 : vector<4x512xf32>
    %65 = arith.maximumf %62, %64 : vector<4x512xf32>
    %66 = tpu.transpose %65, [1, 0] : vector<4x512xf32> -> vector<512x4xf32>
    %67 = vector.shape_cast %66 : vector<512x4xf32> to vector<2x16x16x4xf32>
    %c0_72 = arith.constant 0 : index
    %c1_73 = arith.constant 1 : index
    %c1_74 = arith.constant 1 : index
    %c0_75 = arith.constant 0 : index
    %68 = vector.load %arg8[%c0_72, %c1_73, %c1_74, %c0_75] : memref<2x18x18x4xf32, #tpu.memory_space<vmem>>, vector<2x16x16x4xf32>
    tpu.vector_store %arg8[%c0_72, %c1_73, %c1_74, %c0_75], %67 {strides = array<i32>} : memref<2x18x18x4xf32, #tpu.memory_space<vmem>>, vector<2x16x16x4xf32>,
    %c0_76 = arith.constant 0 : index
    %c0_77 = arith.constant 0 : index
    %c0_78 = arith.constant 0 : index
    %c0_79 = arith.constant 0 : index
    %69 = vector.load %arg8[%c0_76, %c0_77, %c0_78, %c0_79] : memref<2x18x18x4xf32, #tpu.memory_space<vmem>>, vector<2x16x16x4xf32>
    %70 = vector.shape_cast %69 : vector<2x16x16x4xf32> to vector<512x4xf32>
    %71 = tpu.transpose %70, [1, 0] : vector<512x4xf32> -> vector<4x512xf32>
    %c0_80 = arith.constant 0 : index
    %c0_81 = arith.constant 0 : index
    %c1_82 = arith.constant 1 : index
    %c0_83 = arith.constant 0 : index
    %72 = vector.load %arg8[%c0_80, %c0_81, %c1_82, %c0_83] : memref<2x18x18x4xf32, #tpu.memory_space<vmem>>, vector<2x16x16x4xf32>
    %73 = vector.shape_cast %72 : vector<2x16x16x4xf32> to vector<512x4xf32>
    %74 = tpu.transpose %73, [1, 0] : vector<512x4xf32> -> vector<4x512xf32>
    %c0_84 = arith.constant 0 : index
    %c0_85 = arith.constant 0 : index
    %c2_86 = arith.constant 2 : index
    %c0_87 = arith.constant 0 : index
    %75 = vector.load %arg8[%c0_84, %c0_85, %c2_86, %c0_87] : memref<2x18x18x4xf32, #tpu.memory_space<vmem>>, vector<2x16x16x4xf32>
    %76 = vector.shape_cast %75 : vector<2x16x16x4xf32> to vector<512x4xf32>
    %77 = tpu.transpose %76, [1, 0] : vector<512x4xf32> -> vector<4x512xf32>
    %c0_88 = arith.constant 0 : index
    %c1_89 = arith.constant 1 : index
    %c0_90 = arith.constant 0 : index
    %c0_91 = arith.constant 0 : index
    %78 = vector.load %arg8[%c0_88, %c1_89, %c0_90, %c0_91] : memref<2x18x18x4xf32, #tpu.memory_space<vmem>>, vector<2x16x16x4xf32>
    %79 = vector.shape_cast %78 : vector<2x16x16x4xf32> to vector<512x4xf32>
    %80 = tpu.transpose %79, [1, 0] : vector<512x4xf32> -> vector<4x512xf32>
    %c0_92 = arith.constant 0 : index
    %c1_93 = arith.constant 1 : index
    %c1_94 = arith.constant 1 : index
    %c0_95 = arith.constant 0 : index
    %81 = vector.load %arg8[%c0_92, %c1_93, %c1_94, %c0_95] : memref<2x18x18x4xf32, #tpu.memory_space<vmem>>, vector<2x16x16x4xf32>
    %82 = vector.shape_cast %81 : vector<2x16x16x4xf32> to vector<512x4xf32>
    %83 = tpu.transpose %82, [1, 0] : vector<512x4xf32> -> vector<4x512xf32>
    %c0_96 = arith.constant 0 : index
    %c1_97 = arith.constant 1 : index
    %c2_98 = arith.constant 2 : index
    %c0_99 = arith.constant 0 : index
    %84 = vector.load %arg8[%c0_96, %c1_97, %c2_98, %c0_99] : memref<2x18x18x4xf32, #tpu.memory_space<vmem>>, vector<2x16x16x4xf32>
    %85 = vector.shape_cast %84 : vector<2x16x16x4xf32> to vector<512x4xf32>
    %86 = tpu.transpose %85, [1, 0] : vector<512x4xf32> -> vector<4x512xf32>
    %c0_100 = arith.constant 0 : index
    %c2_101 = arith.constant 2 : index
    %c0_102 = arith.constant 0 : index
    %c0_103 = arith.constant 0 : index
    %87 = vector.load %arg8[%c0_100, %c2_101, %c0_102, %c0_103] : memref<2x18x18x4xf32, #tpu.memory_space<vmem>>, vector<2x16x16x4xf32>
    %88 = vector.shape_cast %87 : vector<2x16x16x4xf32> to vector<512x4xf32>
    %89 = tpu.transpose %88, [1, 0] : vector<512x4xf32> -> vector<4x512xf32>
    %c0_104 = arith.constant 0 : index
    %c2_105 = arith.constant 2 : index
    %c1_106 = arith.constant 1 : index
    %c0_107 = arith.constant 0 : index
    %90 = vector.load %arg8[%c0_104, %c2_105, %c1_106, %c0_107] : memref<2x18x18x4xf32, #tpu.memory_space<vmem>>, vector<2x16x16x4xf32>
    %91 = vector.shape_cast %90 : vector<2x16x16x4xf32> to vector<512x4xf32>
    %92 = tpu.transpose %91, [1, 0] : vector<512x4xf32> -> vector<4x512xf32>
    %c0_108 = arith.constant 0 : index
    %c2_109 = arith.constant 2 : index
    %c2_110 = arith.constant 2 : index
    %c0_111 = arith.constant 0 : index
    %93 = vector.load %arg8[%c0_108, %c2_109, %c2_110, %c0_111] : memref<2x18x18x4xf32, #tpu.memory_space<vmem>>, vector<2x16x16x4xf32>
    %94 = vector.shape_cast %93 : vector<2x16x16x4xf32> to vector<512x4xf32>
    %95 = tpu.transpose %94, [1, 0] : vector<512x4xf32> -> vector<4x512xf32>
    %96 = tpu.concatenate %71, %74, %77, %80, %83, %86, %89, %92, %95 in 0 : vector<4x512xf32>, vector<4x512xf32>, vector<4x512xf32>, vector<4x512xf32>, vector<4x512xf32>, vector<4x512xf32>, vector<4x512xf32>, vector<4x512xf32>, vector<4x512xf32> -> vector<36x512xf32>
    %c0_112 = arith.constant 0 : index
    %c0_113 = arith.constant 0 : index
    %97 = vector.load %arg4[%c0_112, %c0_113] : memref<4x36xf32, #tpu.memory_space<vmem>>, vector<4x36xf32>
    %cst_114 = arith.constant dense<0.000000e+00> : vector<4x512xf32>
    %98 = tpu.matmul %97, %96, %cst_114 {dimension_numbers = #tpu.dot_dimension_numbers<[1], [0], [0], [1], [0, 0, 1, 1], [], []>} : vector<4x36xf32>, vector<36x512xf32>, vector<4x512xf32> -> vector<4x512xf32>
    %cst_115 = arith.constant dense<0.000000e+00> : vector<4xf32>
    %99 = vector.multi_reduction <add>, %98, %cst_115 [1] : vector<4x512xf32> to vector<4xf32>
    %100 = vector.shape_cast %99 : vector<4xf32> to vector<4x1xf32>
    %101 = arith.mulf %98, %98 : vector<4x512xf32>
    %cst_116 = arith.constant dense<0.000000e+00> : vector<4xf32>
    %102 = vector.multi_reduction <add>, %101, %cst_116 [1] : vector<4x512xf32> to vector<4xf32>
    %103 = vector.shape_cast %102 : vector<4xf32> to vector<4x1xf32>
    %cst_117 = arith.constant 0.001953125 : f32
    %104 = vector.broadcast %cst_117 : f32 to vector<4x1xf32>
    %105 = arith.mulf %100, %104 : vector<4x1xf32>
    %cst_118 = arith.constant 0.001953125 : f32
    %106 = vector.broadcast %cst_118 : f32 to vector<4x1xf32>
    %107 = arith.mulf %103, %106 : vector<4x1xf32>
    %108 = arith.mulf %105, %105 : vector<4x1xf32>
    %109 = arith.subf %107, %108 : vector<4x1xf32>
    %c0_119 = arith.constant 0 : index
    %c0_120 = arith.constant 0 : index
    %110 = vector.load %arg5[%c0_119, %c0_120] : memref<4x1xf32, #tpu.memory_space<vmem>>, vector<4x1xf32>
    %cst_121 = arith.constant 9.99999974E-6 : f32
    %111 = vector.broadcast %cst_121 : f32 to vector<4x1xf32>
    %112 = arith.addf %109, %111 : vector<4x1xf32>
    %113 = math.rsqrt %112 : vector<4x1xf32>
    %114 = arith.mulf %110, %113 : vector<4x1xf32>
    %c0_122 = arith.constant 0 : index
    %c0_123 = arith.constant 0 : index
    %115 = vector.load %arg6[%c0_122, %c0_123] : memref<4x1xf32, #tpu.memory_space<vmem>>, vector<4x1xf32>
    %116 = arith.mulf %105, %114 : vector<4x1xf32>
    %117 = arith.subf %115, %116 : vector<4x1xf32>
    %118 = vector.broadcast %114 : vector<4x1xf32> to vector<4x512xf32>
    %119 = arith.mulf %98, %118 : vector<4x512xf32>
    %120 = vector.broadcast %117 : vector<4x1xf32> to vector<4x512xf32>
    %121 = arith.addf %119, %120 : vector<4x512xf32>
    %122 = vector.shape_cast %8 : vector<2x16x16x4xf32> to vector<512x4xf32>
    %123 = tpu.transpose %122, [1, 0] : vector<512x4xf32> -> vector<4x512xf32>
    %124 = arith.addf %121, %123 : vector<4x512xf32>
    %c0_124 = arith.constant 0 : index
    %c0_125 = arith.constant 0 : index
    %125 = vector.load %arg7[%c0_124, %c0_125] : memref<4x512xf32, #tpu.memory_space<vmem>>, vector<4x512xf32>
    tpu.vector_store %arg7[%c0_124, %c0_125], %124 {strides = array<i32>} : memref<4x512xf32, #tpu.memory_space<vmem>>, vector<4x512xf32>,
    return
  }
}

</mosaic_0001>

<bundles_post_ra>
// kernel: tpu_custom_call.1
= control target key start
LH: loop header
LB: loop body
LE: loop exit
PB: predicated region body
PF: predicated region fallthrough
CT: control target
= control target key end

     0   :  { %vm27_vm0 = vcmask 31744   ;;  %vm42_vm1 = vcmask 24576   ;;  %s7590_s0 = inlined_call_operand.vmem [shape: f32[2,16,16,4], index: 0, kind: input, shape index: {}]   ;;  %s7591_s1 = inlined_call_operand.vmem [shape: f32[4,36], index: 1, kind: input, shape index: {}]   ;;  %s7592_s2 = inlined_call_operand.vmem [shape: f32[4,1], index: 2, kind: input, shape index: {}]   ;;  %s7593_s3 = inlined_call_operand.vmem [shape: f32[4,1], index: 3, kind: input, shape index: {}]   ;;  %s7594_s4 = inlined_call_operand.vmem [shape: f32[4,36], index: 4, kind: input, shape index: {}]   ;;  %s7595_s5 = inlined_call_operand.vmem [shape: f32[4,1], index: 5, kind: input, shape index: {}]   ;;  %s7596_s6 = inlined_call_operand.vmem [shape: f32[4,1], index: 6, kind: input, shape index: {}]   ;;  %s7597_s7 = inlined_call_operand.hbm [shape: f32[4,512], index: 7, kind: output, shape index: {}]  }
   0x1   :  { %12 = vsyncpa [#allocation4], 0  ;;  %v5739_v0 = vmov 0.0   ;;  %v5787_v1 = vld [vmem:[%s7590_s0 + $0x170] sm:$0xff]  ;;  %v5947_v6 = vld [vmem:[%s7590_s0 + $0x178] sm:$0xff]  ;;  %vm30_vm2 = vcmask 25600  }
   0x2   :  { %32 = vst.msk [vmem:[#allocation2 + $0x1b0] sm:$0xff] %vm27_vm0, %v5739_v0  ;;  %v5936_v5 = vld [vmem:[%s7590_s0 + $0x70] sm:$0xff]  ;;  %v5954_v7 = vld [vmem:[%s7590_s0 + $0x78] sm:$0xff]  ;;  %v5961_v8 = vld [vmem:[%s7590_s0 + $0x100] sm:$0xff]  ;;  %vm2021_vm3 = vcmask 1043456   ;;  %vm2039_vm4 = vcmask 293888  }
   0x3   :  { %7682 = vst [vmem:[#allocation6_spill] sm:$0xff] %v5787_v1  ;;  %v5968_v9 = vld [vmem:[%s7590_s0 + $0x180] sm:$0xff]  ;;  %v5989_v13 = vld [vmem:[%s7590_s0 + $0x108] sm:$0xff]  ;;  %v6017_v21 = vld [vmem:[%s7590_s0 + $0x110] sm:$0xff]  ;;  %s4494_s23 = sshll.u32 %s7597_s7, 4  ;;  %s4495_s23 = int_to_ptr.hbm [resolvable:$true] %s4494_s23 }
   0x4   :  { %61 = vst.msk [vmem:[#allocation2 + $0x1b0] sm:$0x1] %vm42_vm1, %v5739_v0  ;;  %v5975_v10 = vld [vmem:[%s7590_s0] sm:$0xff]  ;;  %v5996_v15 = vld [vmem:[%s7590_s0 + $0x188] sm:$0xff]  ;;  %v6024_v25 = vld [vmem:[%s7590_s0 + $0x190] sm:$0xff] }
   0x5   :  { %69 = vst.msk [vmem:[#allocation2 + $0x270] sm:$0x1] %vm42_vm1, %v5739_v0  ;;  %v5982_v11 = vld [vmem:[%s7590_s0 + $0x80] sm:$0xff]  ;;  %v6003_v18 = vld [vmem:[%s7590_s0 + $0x8] sm:$0xff]  ;;  %v6031_v26 = vld [vmem:[%s7590_s0 + $0x10] sm:$0xff] }
   0x6   :  { %226 = vst.msk [vmem:[#allocation2 + $0x271] sm:$0xff] %vm27_vm0, %v5787_v1  ;;  %v6010_v19 = vld [vmem:[%s7590_s0 + $0x88] sm:$0xff]  ;;  %v6038_v27 = vld [vmem:[%s7590_s0 + $0x90] sm:$0xff]  ;;  %v6045_v31 = vld [vmem:[%s7590_s0 + $0x118] sm:$0xff] }
   0x7   :  { %28 = vst.msk [vmem:[#allocation2] sm:$0xff] %vm27_vm0, %v5739_v0  ;;  %v6052_v32 = vld [vmem:[%s7590_s0 + $0x198] sm:$0xff]  ;;  %v6075_v36 = vld [vmem:[%s7590_s0 + $0x120] sm:$0xff]  ;;  %v6108_v45 = vld [vmem:[%s7590_s0 + $0x128] sm:$0xff] }
   0x8   :  { %29 = vst.msk [vmem:[#allocation2 + $0x8] sm:$0xff] %vm27_vm0, %v5739_v0  ;;  %v6059_v33 = vld [vmem:[%s7590_s0 + $0x18] sm:$0xff]  ;;  %v6082_v39 = vld [vmem:[%s7590_s0 + $0x1a0] sm:$0xff]  ;;  %v6113_v46 = vld [vmem:[%s7590_s0 + $0x1a8] sm:$0xff] }
   0x9   :  { %33 = vst.msk [vmem:[#allocation2 + $0x1b8] sm:$0xff] %vm27_vm0, %v5739_v0  ;;  %v6068_v35 = vld [vmem:[%s7590_s0 + $0x98] sm:$0xff]  ;;  %v6089_v40 = vld [vmem:[%s7590_s0 + $0x20] sm:$0xff]  ;;  %v6120_v47 = vld [vmem:[%s7590_s0 + $0x28] sm:$0xff] }
   0xa   :  { %36 = vst.msk [vmem:[#allocation2 + $0x198] sm:$0xff] %vm27_vm0, %v5739_v0  ;;  %v6097_v41 = vld [vmem:[%s7590_s0 + $0xa0] sm:$0xff]  ;;  %v6129_v49 = vld [vmem:[%s7590_s0 + $0xa8] sm:$0xff]  ;;  %v6144_v55 = vld [vmem:[%s7590_s0 + $0x130] sm:$0xff] }
   0xb   :  { %v276_v2 = vld [vmem:[#allocation2 + $0x1b0] sm:$0xff]  ;;  %37 = vst.msk [vmem:[#allocation2 + $0x1a0] sm:$0xff] %vm27_vm0, %v5739_v0  ;;  %v6362_v1 = vld [vmem:[%s7590_s0 + $0x160] sm:$0xff] }
   0xc   :  { %39 = vst.msk [vmem:[#allocation2 + $0x348] sm:$0xff] %vm27_vm0, %v5739_v0  ;;  %v6149_v56 = vld [vmem:[%s7590_s0 + $0x1b0] sm:$0xff] }
   0xd   :  { %v292_v3 = vld [vmem:[#allocation2 + $0x270] sm:$0xff]  ;;  %40 = vst.msk [vmem:[#allocation2 + $0x350] sm:$0xff] %vm27_vm0, %v5739_v0 }
   0xe   :  { %v4633_v4 = vpack.i.bf16 %v292_v3, %v276_v2  ;;  %44 = vst.msk [vmem:[#allocation2 + $0x18] sm:$0x1] %vm42_vm1, %v5739_v0  ;;  %v6156_v57 = vld [vmem:[%s7590_s0 + $0x30] sm:$0xff]  ;;  %v6178_v3 = vld [vmem:[%s7590_s0 + $0x138] sm:$0xff] }
   0xf   :  { %45 = vst.msk [vmem:[#allocation2 + $0x30] sm:$0x1] %vm42_vm1, %v5739_v0  ;;  %v245_v23 = vld [vmem:[#allocation2 + $0x8] sm:$0xff]  ;;  %v6161_v58 = vld [vmem:[%s7590_s0 + $0xb0] sm:$0xff] }
  0x10   :  { %4634 = vxpose.xlu1.b32.start [1/16] (narrow) %v4633_v4, 8  ;;  %46 = vst.msk [vmem:[#allocation2 + $0x48] sm:$0x1] %vm42_vm1, %v5739_v0  ;;  %v277_v17 = vld [vmem:[#allocation2 + $0x1b8] sm:$0xff] }
  0x11   :  { %47 = vst.msk [vmem:[#allocation2 + $0x60] sm:$0x1] %vm42_vm1, %v5739_v0  ;;  %v6183_v4 = vld [vmem:[%s7590_s0 + $0x1b8] sm:$0xff] }
  0x12   :  { %48 = vst.msk [vmem:[#allocation2 + $0x78] sm:$0x1] %vm42_vm1, %v5739_v0 }
  0x13   :  { %49 = vst.msk [vmem:[#allocation2 + $0x90] sm:$0x1] %vm42_vm1, %v5739_v0 }
  0x14   :  { %50 = vst.msk [vmem:[#allocation2 + $0xa8] sm:$0x1] %vm42_vm1, %v5739_v0 }
  0x15   :  { %51 = vst.msk [vmem:[#allocation2 + $0xc0] sm:$0x1] %vm42_vm1, %v5739_v0 }
  0x16   :  { %52 = vst.msk [vmem:[#allocation2 + $0xd8] sm:$0x1] %vm42_vm1, %v5739_v0 }
  0x17   :  { %53 = vst.msk [vmem:[#allocation2 + $0xf0] sm:$0x1] %vm42_vm1, %v5739_v0 }
  0x18   :  { %54 = vst.msk [vmem:[#allocation2 + $0x108] sm:$0x1] %vm42_vm1, %v5739_v0 }
  0x19   :  { %55 = vst.msk [vmem:[#allocation2 + $0x120] sm:$0x1] %vm42_vm1, %v5739_v0 }
  0x1a   :  { %56 = vst.msk [vmem:[#allocation2 + $0x138] sm:$0x1] %vm42_vm1, %v5739_v0 }
  0x1b   :  { %57 = vst.msk [vmem:[#allocation2 + $0x150] sm:$0x1] %vm42_vm1, %v5739_v0 }
  0x1c   :  { %58 = vst.msk [vmem:[#allocation2 + $0x168] sm:$0x1] %vm42_vm1, %v5739_v0 }
  0x1d   :  { %59 = vst.msk [vmem:[#allocation2 + $0x180] sm:$0x1] %vm42_vm1, %v5739_v0 }
  0x1e   :  { %62 = vst.msk [vmem:[#allocation2 + $0x1c8] sm:$0x1] %vm42_vm1, %v5739_v0 }
  0x1f   :  { %63 = vst.msk [vmem:[#allocation2 + $0x1e0] sm:$0x1] %vm42_vm1, %v5739_v0 }
  0x20   :  { %64 = vst.msk [vmem:[#allocation2 + $0x1f8] sm:$0x1] %vm42_vm1, %v5739_v0 }
  0x21   :  { %65 = vst.msk [vmem:[#allocation2 + $0x210] sm:$0x1] %vm42_vm1, %v5739_v0 }
  0x22   :  { %66 = vst.msk [vmem:[#allocation2 + $0x228] sm:$0x1] %vm42_vm1, %v5739_v0 }
  0x23   :  { %67 = vst.msk [vmem:[#allocation2 + $0x240] sm:$0x1] %vm42_vm1, %v5739_v0 }
  0x24   :  { %68 = vst.msk [vmem:[#allocation2 + $0x258] sm:$0x1] %vm42_vm1, %v5739_v0 }
  0x25   :  { %70 = vst.msk [vmem:[#allocation2 + $0x288] sm:$0x1] %vm42_vm1, %v5739_v0 }
  0x26   :  { %71 = vst.msk [vmem:[#allocation2 + $0x2a0] sm:$0x1] %vm42_vm1, %v5739_v0 }
  0x27   :  { %72 = vst.msk [vmem:[#allocation2 + $0x2b8] sm:$0x1] %vm42_vm1, %v5739_v0 }
  0x28   :  { %73 = vst.msk [vmem:[#allocation2 + $0x2d0] sm:$0x1] %vm42_vm1, %v5739_v0 }
  0x29   :  { %74 = vst.msk [vmem:[#allocation2 + $0x2e8] sm:$0x1] %vm42_vm1, %v5739_v0 }
  0x2a   :  { %75 = vst.msk [vmem:[#allocation2 + $0x300] sm:$0x1] %vm42_vm1, %v5739_v0 }
  0x2b   :  { %76 = vst.msk [vmem:[#allocation2 + $0x318] sm:$0x1] %vm42_vm1, %v5739_v0 }
  0x2c   :  { %77 = vst.msk [vmem:[#allocation2 + $0x330] sm:$0x1] %vm42_vm1, %v5739_v0 }
  0x2d   :  { %80 = vst.msk [vmem:[#allocation2 + $0x29] sm:$0x1] %vm42_vm1, %v5739_v0 }
  0x2e   :  { %81 = vst.msk [vmem:[#allocation2 + $0x41] sm:$0x1] %vm42_vm1, %v5739_v0 }
  0x2f   :  { %82 = vst.msk [vmem:[#allocation2 + $0x59] sm:$0x1] %vm42_vm1, %v5739_v0 }
  0x30   :  { %83 = vst.msk [vmem:[#allocation2 + $0x71] sm:$0x1] %vm42_vm1, %v5739_v0 }
  0x31   :  { %84 = vst.msk [vmem:[#allocation2 + $0x89] sm:$0x1] %vm42_vm1, %v5739_v0 }
  0x32   :  { %85 = vst.msk [vmem:[#allocation2 + $0xa1] sm:$0x1] %vm42_vm1, %v5739_v0 }
  0x33   :  { %86 = vst.msk [vmem:[#allocation2 + $0xb9] sm:$0x1] %vm42_vm1, %v5739_v0 }
  0x34   :  { %87 = vst.msk [vmem:[#allocation2 + $0xd1] sm:$0x1] %vm42_vm1, %v5739_v0 }
  0x35   :  { %88 = vst.msk [vmem:[#allocation2 + $0xe9] sm:$0x1] %vm42_vm1, %v5739_v0 }
  0x36   :  { %89 = vst.msk [vmem:[#allocation2 + $0x101] sm:$0x1] %vm42_vm1, %v5739_v0 }
  0x37   :  { %90 = vst.msk [vmem:[#allocation2 + $0x119] sm:$0x1] %vm42_vm1, %v5739_v0 }
  0x38   :  { %91 = vst.msk [vmem:[#allocation2 + $0x131] sm:$0x1] %vm42_vm1, %v5739_v0 }
  0x39   :  { %92 = vst.msk [vmem:[#allocation2 + $0x149] sm:$0x1] %vm42_vm1, %v5739_v0 }
  0x3a   :  { %93 = vst.msk [vmem:[#allocation2 + $0x161] sm:$0x1] %vm42_vm1, %v5739_v0 }
  0x3b   :  { %94 = vst.msk [vmem:[#allocation2 + $0x179] sm:$0x1] %vm42_vm1, %v5739_v0 }
  0x3c   :  { %95 = vst.msk [vmem:[#allocation2 + $0x191] sm:$0x1] %vm42_vm1, %v5739_v0 }
  0x3d   :  { %98 = vst.msk [vmem:[#allocation2 + $0x1d9] sm:$0x1] %vm42_vm1, %v5739_v0 }
  0x3e   :  { %99 = vst.msk [vmem:[#allocation2 + $0x1f1] sm:$0x1] %vm42_vm1, %v5739_v0 }
  0x3f   :  { %100 = vst.msk [vmem:[#allocation2 + $0x209] sm:$0x1] %vm42_vm1, %v5739_v0 }
  0x40   :  { %101 = vst.msk [vmem:[#allocation2 + $0x221] sm:$0x1] %vm42_vm1, %v5739_v0 }
  0x41   :  { %102 = vst.msk [vmem:[#allocation2 + $0x239] sm:$0x1] %vm42_vm1, %v5739_v0 }
  0x42   :  { %103 = vst.msk [vmem:[#allocation2 + $0x251] sm:$0x1] %vm42_vm1, %v5739_v0 }
  0x43   :  { %104 = vst.msk [vmem:[#allocation2 + $0x269] sm:$0x1] %vm42_vm1, %v5739_v0 }
  0x44   :  { %105 = vst.msk [vmem:[#allocation2 + $0x281] sm:$0x1] %vm42_vm1, %v5739_v0 }
  0x45   :  { %106 = vst.msk [vmem:[#allocation2 + $0x299] sm:$0x1] %vm42_vm1, %v5739_v0 }
  0x46   :  { %107 = vst.msk [vmem:[#allocation2 + $0x2b1] sm:$0x1] %vm42_vm1, %v5739_v0 }
  0x47   :  { %108 = vst.msk [vmem:[#allocation2 + $0x2c9] sm:$0x1] %vm42_vm1, %v5739_v0 }
  0x48   :  { %109 = vst.msk [vmem:[#allocation2 + $0x2e1] sm:$0x1] %vm42_vm1, %v5739_v0 }
  0x49   :  { %110 = vst.msk [vmem:[#allocation2 + $0x2f9] sm:$0x1] %vm42_vm1, %v5739_v0 }
  0x4a   :  { %111 = vst.msk [vmem:[#allocation2 + $0x311] sm:$0x1] %vm42_vm1, %v5739_v0 }
  0x4b   :  { %112 = vst.msk [vmem:[#allocation2 + $0x329] sm:$0x1] %vm42_vm1, %v5739_v0 }
  0x4c   :  { %7683 = vst [vmem:[#allocation7_spill] sm:$0xff] %v5936_v5 }
  0x4d   :  { %113 = vst.msk [vmem:[#allocation2 + $0x341] sm:$0x1] %vm42_vm1, %v5739_v0 }
  0x4e   :  { %43 = vst.msk [vmem:[#allocation2] sm:$0x1] %vm42_vm1, %v5739_v0 }
  0x4f   :  { %194 = vst.msk [vmem:[#allocation2 + $0xc1] sm:$0xff] %vm27_vm0, %v5936_v5 }
  0x50   :  { %7684 = vst [vmem:[#allocation8_spill] sm:$0xff] %v5947_v6 }
  0x51   :  { %60 = vst.msk [vmem:[#allocation2 + $0x198] sm:$0x1] %vm42_vm1, %v5739_v0 }
  0x52   :  { %7685 = vst [vmem:[#allocation9_spill] sm:$0xff] %v5954_v7 }
  0x53   :  { %78 = vst.msk [vmem:[#allocation2 + $0x348] sm:$0x1] %vm42_vm1, %v5739_v0 }
  0x54   :  { %7686 = vst [vmem:[#allocation10_spill] sm:$0xff] %v5961_v8 }
  0x55   :  { %227 = vst.msk [vmem:[#allocation2 + $0x279] sm:$0xff] %vm27_vm0, %v5947_v6  ;;  %v244_v12 = vld [vmem:[#allocation2] sm:$0xff] }
  0x56   :  { %7687 = vst [vmem:[#allocation11_spill] sm:$0xff] %v5968_v9  ;;  %v260_v14 = vld [vmem:[#allocation2 + $0xc0] sm:$0xff] }
  0x57   :  { %195 = vst.msk [vmem:[#allocation2 + $0xc9] sm:$0xff] %vm27_vm0, %v5954_v7  ;;  %v4559_v16 = vpack.i.bf16 %v260_v14, %v244_v12  ;;  %v6190_v12 = vld [vmem:[%s7590_s0 + $0x38] sm:$0xff] }
  0x58   :  { %7688 = vst [vmem:[#allocation12_spill] sm:$0xff] %v5975_v10  ;;  %v6195_v14 = vld [vmem:[%s7590_s0 + $0xb8] sm:$0xff] }
  0x59   :  { %212 = vst.msk [vmem:[#allocation2 + $0x1c9] sm:$0xff] %vm27_vm0, %v5961_v8  ;;  %4560 = vxpose.xlu0.b32.start [1/16] (narrow) %v4559_v16, 8 }
  0x5a   :  { %7689 = vst [vmem:[#allocation13_spill] sm:$0xff] %v5982_v11 }
  0x5b   :  { %228 = vst.msk [vmem:[#allocation2 + $0x289] sm:$0xff] %vm27_vm0, %v5968_v9 }
  0x5c   :  { %7690 = vst [vmem:[#allocation14_spill] sm:$0xff] %v5989_v13  ;;  %v293_v20 = vld [vmem:[#allocation2 + $0x278] sm:$0xff] }
  0x5d   :  { %180 = vst.msk [vmem:[#allocation2 + $0x19] sm:$0xff] %vm27_vm0, %v5975_v10  ;;  %v4635_v22 = vpack.i.bf16 %v293_v20, %v277_v17 }
  0x5e   :  { %7691 = vst [vmem:[#allocation15_spill] sm:$0xff] %v5996_v15  ;;  %v261_v24 = vld [vmem:[#allocation2 + $0xc8] sm:$0xff] }
  0x5f   :  { %196 = vst.msk [vmem:[#allocation2 + $0xd9] sm:$0xff] %vm27_vm0, %v5982_v11  ;;  %4636 = vxpose.xlu1.b32.cont [2/16] (narrow) %v4635_v22, 8  ;;  %v4561_v28 = vpack.i.bf16 %v261_v24, %v245_v23 }
  0x60   :  { %7692 = vst [vmem:[#allocation16_spill] sm:$0xff] %v6003_v18  ;;  %v278_v29 = vld [vmem:[#allocation2 + $0x1c8] sm:$0xff] }
  0x61   :  { %213 = vst.msk [vmem:[#allocation2 + $0x1d1] sm:$0xff] %vm27_vm0, %v5989_v13  ;;  %4562 = vxpose.xlu0.b32.cont [2/16] (narrow) %v4561_v28, 8  ;;  %v6212_v28 = vld [vmem:[%s7590_s0 + $0x140] sm:$0xff]  ;;  %v468_v13 = vld [vmem:[#allocation2 + $0x1b1] sm:$0xff] }
  0x62   :  { %7693 = vst [vmem:[#allocation17_spill] sm:$0xff] %v6010_v19  ;;  %v294_v30 = vld [vmem:[#allocation2 + $0x288] sm:$0xff] }
  0x63   :  { %229 = vst.msk [vmem:[#allocation2 + $0x291] sm:$0xff] %vm27_vm0, %v5996_v15  ;;  %v6061_v34 = vpack.i.bf16 %v294_v30, %v278_v29  ;;  %v6217_v29 = vld [vmem:[%s7590_s0 + $0x1c0] sm:$0xff] }
  0x64   :  { %7694 = vst [vmem:[#allocation18_spill] sm:$0xff] %v6017_v21  ;;  %v246_v37 = vld [vmem:[#allocation2 + $0x18] sm:$0xff]  ;;  %v6224_v30 = vld [vmem:[%s7590_s0 + $0x40] sm:$0xff] }
  0x65   :  { %181 = vst.msk [vmem:[#allocation2 + $0x21] sm:$0xff] %vm27_vm0, %v6003_v18 }
  0x66   :  { %7695 = vst [vmem:[#allocation19_spill] sm:$0xff] %v6024_v25  ;;  %v262_v38 = vld [vmem:[#allocation2 + $0xd8] sm:$0xff] }
  0x67   :  { %197 = vst.msk [vmem:[#allocation2 + $0xe1] sm:$0xff] %vm27_vm0, %v6010_v19  ;;  %4638 = vxpose.xlu1.b32.cont [3/16] (narrow) %v6061_v34, 8  ;;  %v6099_v42 = vpack.i.bf16 %v262_v38, %v246_v37  ;;  %v6229_v37 = vld [vmem:[%s7590_s0 + $0xc0] sm:$0xff] }
  0x68   :  { %7696 = vst [vmem:[#allocation20_spill] sm:$0xff] %v6031_v26  ;;  %v279_v43 = vld [vmem:[#allocation2 + $0x1d0] sm:$0xff] }
  0x69   :  { %214 = vst.msk [vmem:[#allocation2 + $0x1e1] sm:$0xff] %vm27_vm0, %v6017_v21  ;;  %4564 = vxpose.xlu0.b32.cont [3/16] (narrow) %v6099_v42, 8 }
  0x6a   :  { %7697 = vst [vmem:[#allocation21_spill] sm:$0xff] %v6038_v27  ;;  %v295_v44 = vld [vmem:[#allocation2 + $0x290] sm:$0xff] }
  0x6b   :  { %230 = vst.msk [vmem:[#allocation2 + $0x2a1] sm:$0xff] %vm27_vm0, %v6024_v25  ;;  %v6122_v48 = vpack.i.bf16 %v295_v44, %v279_v43 }
  0x6c   :  { %7698 = vst [vmem:[#allocation22_spill] sm:$0xff] %v6045_v31  ;;  %v247_v50 = vld [vmem:[#allocation2 + $0x20] sm:$0xff] }
  0x6d   :  { %182 = vst.msk [vmem:[#allocation2 + $0x31] sm:$0xff] %vm27_vm0, %v6031_v26  ;;  %v645_v26 = vld [vmem:[#allocation2 + $0xca] sm:$0xff] }
  0x6e   :  { %7699 = vst [vmem:[#allocation23_spill] sm:$0xff] %v6052_v32  ;;  %v263_v51 = vld [vmem:[#allocation2 + $0xe0] sm:$0xff] }
  0x6f   :  { %198 = vst.msk [vmem:[#allocation2 + $0xf1] sm:$0xff] %vm27_vm0, %v6038_v27  ;;  %4640 = vxpose.xlu1.b32.cont [4/16] (narrow) %v6122_v48, 8  ;;  %v6139_v52 = vpack.i.bf16 %v263_v51, %v247_v50  ;;  %v455_v9 = vld [vmem:[#allocation2 + $0xe1] sm:$0xff] }
  0x70   :  { %7700 = vst [vmem:[#allocation24_spill] sm:$0xff] %v6059_v33  ;;  %v280_v53 = vld [vmem:[#allocation2 + $0x1e0] sm:$0xff] }
  0x71   :  { %215 = vst.msk [vmem:[#allocation2 + $0x1e9] sm:$0xff] %vm27_vm0, %v6045_v31  ;;  %4566 = vxpose.xlu0.b32.cont [4/16] (narrow) %v6139_v52, 8 }
  0x72   :  { %7701 = vst [vmem:[#allocation25_spill] sm:$0xff] %v6068_v35  ;;  %v296_v54 = vld [vmem:[#allocation2 + $0x2a0] sm:$0xff] }
  0x73   :  { %231 = vst.msk [vmem:[#allocation2 + $0x2a9] sm:$0xff] %vm27_vm0, %v6052_v32  ;;  %v6163_v59 = vpack.i.bf16 %v296_v54, %v280_v53  ;;  %v6246_v54 = vld [vmem:[%s7590_s0 + $0x148] sm:$0xff] }
  0x74   :  { %7702 = vst [vmem:[#allocation26_spill] sm:$0xff] %v6075_v36  ;;  %v248_v60 = vld [vmem:[#allocation2 + $0x30] sm:$0xff] }
  0x75   :  { %183 = vst.msk [vmem:[#allocation2 + $0x39] sm:$0xff] %vm27_vm0, %v6059_v33  ;;  %v484_v33 = vld [vmem:[#allocation2 + $0x271] sm:$0xff] }
  0x76   :  { %7703 = vst [vmem:[#allocation27_spill] sm:$0xff] %v6082_v39  ;;  %v264_v61 = vld [vmem:[#allocation2 + $0xf0] sm:$0xff] }
  0x77   :  { %199 = vst.msk [vmem:[#allocation2 + $0xf9] sm:$0xff] %vm27_vm0, %v6068_v35  ;;  %4642 = vxpose.xlu1.b32.cont [5/16] (narrow) %v6163_v59, 8  ;;  %v6173_v62 = vpack.i.bf16 %v264_v61, %v248_v60  ;;  %v6251_v60 = vld [vmem:[%s7590_s0 + $0x1c8] sm:$0xff] }
  0x78   :  { %7704 = vst [vmem:[#allocation28_spill] sm:$0xff] %v6089_v40  ;;  %v281_v63 = vld [vmem:[#allocation2 + $0x1e8] sm:$0xff] }
  0x79   :  { %216 = vst.msk [vmem:[#allocation2 + $0x1f9] sm:$0xff] %vm27_vm0, %v6075_v36  ;;  %4568 = vxpose.xlu0.b32.cont [5/16] (narrow) %v6173_v62, 8  ;;  %v6258_v61 = vld [vmem:[%s7590_s0 + $0x48] sm:$0xff] }
  0x7a   :  { %7705 = vst [vmem:[#allocation29_spill] sm:$0xff] %v6097_v41  ;;  %v297_v2 = vld [vmem:[#allocation2 + $0x2a8] sm:$0xff] }
  0x7b   :  { %232 = vst.msk [vmem:[#allocation2 + $0x2b9] sm:$0xff] %vm27_vm0, %v6082_v39  ;;  %v6197_v16 = vpack.i.bf16 %v297_v2, %v281_v63  ;;  %v6263_v63 = vld [vmem:[%s7590_s0 + $0xc8] sm:$0xff]  ;;  %v6322_v39 = vld [vmem:[%s7590_s0 + $0x158] sm:$0xff] }
  0x7c   :  { %184 = vst.msk [vmem:[#allocation2 + $0x49] sm:$0xff] %vm27_vm0, %v6089_v40  ;;  %v249_v17 = vld [vmem:[#allocation2 + $0x38] sm:$0xff] }
  0x7d   :  { %7706 = vst [vmem:[#allocation30_spill] sm:$0xff] %v6108_v45 }
  0x7e   :  { %7707 = vst [vmem:[#allocation31_spill] sm:$0xff] %v6113_v46  ;;  %v265_v20 = vld [vmem:[#allocation2 + $0xf8] sm:$0xff] }
  0x7f   :  { %200 = vst.msk [vmem:[#allocation2 + $0x109] sm:$0xff] %vm27_vm0, %v6097_v41  ;;  %4644 = vxpose.xlu1.b32.cont [6/16] (narrow) %v6197_v16, 8  ;;  %v6207_v22 = vpack.i.bf16 %v265_v20, %v249_v17  ;;  %v436_v17 = vld [vmem:[#allocation2 + $0x1] sm:$0xff] }
  0x80   :  { %7708 = vst [vmem:[#allocation32_spill] sm:$0xff] %v6120_v47  ;;  %v282_v23 = vld [vmem:[#allocation2 + $0x1f8] sm:$0xff]  ;;  %v452_v20 = vld [vmem:[#allocation2 + $0xc1] sm:$0xff] }
  0x81   :  { %217 = vst.msk [vmem:[#allocation2 + $0x201] sm:$0xff] %vm27_vm0, %v6108_v45  ;;  %4570 = vxpose.xlu0.b32.cont [6/16] (narrow) %v6207_v22, 8 }
  0x82   :  { %7709 = vst [vmem:[#allocation33_spill] sm:$0xff] %v6129_v49  ;;  %v298_v24 = vld [vmem:[#allocation2 + $0x2b8] sm:$0xff] }
  0x83   :  { %233 = vst.msk [vmem:[#allocation2 + $0x2c1] sm:$0xff] %vm27_vm0, %v6113_v46  ;;  %v6231_v38 = vpack.i.bf16 %v298_v24, %v282_v23  ;;  %v250_v43 = vld [vmem:[#allocation2 + $0x48] sm:$0xff]  ;;  %v490_v41 = vld [vmem:[#allocation2 + $0x2b9] sm:$0xff] }
  0x84   :  { %185 = vst.msk [vmem:[#allocation2 + $0x51] sm:$0xff] %vm27_vm0, %v6120_v47 }
  0x85   :  { %201 = vst.msk [vmem:[#allocation2 + $0x111] sm:$0xff] %vm27_vm0, %v6129_v49  ;;  %v474_v49 = vld [vmem:[#allocation2 + $0x1f9] sm:$0xff] }
  0x86   :  { %7710 = vst [vmem:[#allocation34_spill] sm:$0xff] %v6144_v55  ;;  %v266_v44 = vld [vmem:[#allocation2 + $0x108] sm:$0xff] }
  0x87   :  { %7711 = vst [vmem:[#allocation35_spill] sm:$0xff] %v6149_v56  ;;  %4646 = vxpose.xlu1.b32.cont [7/16] (narrow) %v6231_v38, 8  ;;  %v6241_v50 = vpack.i.bf16 %v266_v44, %v250_v43  ;;  %v4522_v43 = vpack.i.bf16 %v452_v20, %v436_v17  ;;  %v6283_v17 = vld [vmem:[%s7590_s0 + $0x150] sm:$0xff] }
  0x88   :  { %218 = vst.msk [vmem:[#allocation2 + $0x211] sm:$0xff] %vm27_vm0, %v6144_v55  ;;  %v283_v51 = vld [vmem:[#allocation2 + $0x200] sm:$0xff] }
  0x89   :  { %7712 = vst [vmem:[#allocation36_spill] sm:$0xff] %v6156_v57  ;;  %4572 = vxpose.xlu0.b32.cont [7/16] (narrow) %v6241_v50, 8  ;;  %4523 = vxpose.xlu2.b32.start [1/16] (narrow) %v4522_v43, 8  ;;  %v475_v27 = vld [vmem:[#allocation2 + $0x201] sm:$0xff] }
  0x8a   :  { %7713 = vst [vmem:[#allocation37_spill] sm:$0xff] %v6161_v58  ;;  %v299_v53 = vld [vmem:[#allocation2 + $0x2c0] sm:$0xff] }
  0x8b   :  { %234 = vst.msk [vmem:[#allocation2 + $0x2d1] sm:$0xff] %vm27_vm0, %v6149_v56  ;;  %v6265_v2 = vpack.i.bf16 %v299_v53, %v283_v51  ;;  %v251_v23 = vld [vmem:[#allocation2 + $0x50] sm:$0xff]  ;;  %v491_v19 = vld [vmem:[#allocation2 + $0x2c1] sm:$0xff] }
  0x8c   :  { %186 = vst.msk [vmem:[#allocation2 + $0x61] sm:$0xff] %vm27_vm0, %v6156_v57  ;;  %v267_v24 = vld [vmem:[#allocation2 + $0x110] sm:$0xff] }
  0x8d   :  { %202 = vst.msk [vmem:[#allocation2 + $0x121] sm:$0xff] %vm27_vm0, %v6161_v58  ;;  %v6275_v44 = vpack.i.bf16 %v267_v24, %v251_v23  ;;  %v6291_v23 = vld [vmem:[%s7590_s0 + $0x1d0] sm:$0xff] }
  0x8e   :  { %7714 = vst [vmem:[#allocation38_spill] sm:$0xff] %v6178_v3 }
  0x8f   :  { %7715 = vst [vmem:[#allocation39_spill] sm:$0xff] %v6183_v4  ;;  %4648 = vxpose.xlu1.b32.cont [8/16] (narrow) %v6265_v2, 8  ;;  %v284_v51 = vld [vmem:[#allocation2 + $0x210] sm:$0xff] }
  0x90   :  { %219 = vst.msk [vmem:[#allocation2 + $0x219] sm:$0xff] %vm27_vm0, %v6178_v3 }
  0x91   :  { %7716 = vst [vmem:[#allocation40_spill] sm:$0xff] %v6190_v12  ;;  %4574 = vxpose.xlu0.b32.cont [8/16] (narrow) %v6275_v44, 8 }
  0x92   :  { %7717 = vst [vmem:[#allocation41_spill] sm:$0xff] %v6195_v14  ;;  %v300_v53 = vld [vmem:[#allocation2 + $0x2d0] sm:$0xff] }
  0x93   :  { %235 = vst.msk [vmem:[#allocation2 + $0x2d9] sm:$0xff] %vm27_vm0, %v6183_v4  ;;  %v6285_v20 = vpack.i.bf16 %v300_v53, %v284_v51  ;;  %v252_v24 = vld [vmem:[#allocation2 + $0x60] sm:$0xff]  ;;  %v6306_v53 = vld [vmem:[%s7590_s0 + $0x50] sm:$0xff] }
  0x94   :  { %187 = vst.msk [vmem:[#allocation2 + $0x69] sm:$0xff] %vm27_vm0, %v6190_v12  ;;  %v268_v43 = vld [vmem:[#allocation2 + $0x120] sm:$0xff] }
  0x95   :  { %203 = vst.msk [vmem:[#allocation2 + $0x129] sm:$0xff] %vm27_vm0, %v6195_v14  ;;  %v489_v14 = vld [vmem:[#allocation2 + $0x2a9] sm:$0xff] }
  0x96   :  { %7718 = vst [vmem:[#allocation42_spill] sm:$0xff] %v6212_v28 }
  0x97   :  { %7719 = vst [vmem:[#allocation43_spill] sm:$0xff] %v6217_v29  ;;  %4650 = vxpose.xlu1.b32.cont [9/16] (narrow) %v6285_v20, 8  ;;  %v285_v4 = vld [vmem:[#allocation2 + $0x218] sm:$0xff] }
  0x98   :  { %220 = vst.msk [vmem:[#allocation2 + $0x229] sm:$0xff] %vm27_vm0, %v6212_v28 }
  0x99   :  { %7720 = vst [vmem:[#allocation44_spill] sm:$0xff] %v6224_v30 }
  0x9a   :  { %7721 = vst [vmem:[#allocation45_spill] sm:$0xff] %v6229_v37  ;;  %v301_v56 = vld [vmem:[#allocation2 + $0x2d8] sm:$0xff] }
  0x9b   :  { %236 = vst.msk [vmem:[#allocation2 + $0x2e9] sm:$0xff] %vm27_vm0, %v6217_v29  ;;  %v6308_v29 = vpack.i.bf16 %v268_v43, %v252_v24  ;;  %v6331_v24 = vpack.i.bf16 %v301_v56, %v285_v4  ;;  %v454_v43 = vld [vmem:[#allocation2 + $0xd9] sm:$0xff]  ;;  %v253_v4 = vld [vmem:[#allocation2 + $0x68] sm:$0xff] }
  0x9c   :  { %188 = vst.msk [vmem:[#allocation2 + $0x79] sm:$0xff] %vm27_vm0, %v6224_v30  ;;  %v6346_v56 = vld [vmem:[%s7590_s0 + $0xd8] sm:$0xff] }
  0x9d   :  { %204 = vst.msk [vmem:[#allocation2 + $0x139] sm:$0xff] %vm27_vm0, %v6229_v37  ;;  %4576 = vxpose.xlu0.b32.cont [9/16] (narrow) %v6308_v29, 8  ;;  %v473_v37 = vld [vmem:[#allocation2 + $0x1e9] sm:$0xff] }
  0x9e   :  { %7722 = vst [vmem:[#allocation46_spill] sm:$0xff] %v6246_v54 }
  0x9f   :  { %7723 = vst [vmem:[#allocation47_spill] sm:$0xff] %v6251_v60  ;;  %4652 = vxpose.xlu1.b32.cont [10/16] (narrow) %v6331_v24, 8  ;;  %v286_v6 = vld [vmem:[#allocation2 + $0x228] sm:$0xff] }
  0xa0   :  { %221 = vst.msk [vmem:[#allocation2 + $0x231] sm:$0xff] %vm27_vm0, %v6246_v54 }
  0xa1   :  { %7724 = vst [vmem:[#allocation48_spill] sm:$0xff] %v6258_v61 }
  0xa2   :  { %7725 = vst [vmem:[#allocation49_spill] sm:$0xff] %v6263_v63  ;;  %v302_v15 = vld [vmem:[#allocation2 + $0x2e8] sm:$0xff] }
  0xa3   :  { %237 = vst.msk [vmem:[#allocation2 + $0x2f1] sm:$0xff] %vm27_vm0, %v6251_v60  ;;  %v453_v60 = vld [vmem:[#allocation2 + $0xc9] sm:$0xff]  ;;  %v254_v7 = vld [vmem:[#allocation2 + $0x78] sm:$0xff] }
  0xa4   :  { %189 = vst.msk [vmem:[#allocation2 + $0x81] sm:$0xff] %vm27_vm0, %v6258_v61  ;;  %v462_v18 = vld [vmem:[#allocation2 + $0x139] sm:$0xff] }
  0xa5   :  { %205 = vst.msk [vmem:[#allocation2 + $0x141] sm:$0xff] %vm27_vm0, %v6263_v63 }
  0xa6   :  { %31 = vst.msk [vmem:[#allocation2 + $0x10] sm:$0x3] %vm30_vm2, %v5739_v0 }
  0xa7   :  { %34 = vst.msk [vmem:[#allocation2 + $0x1c0] sm:$0x3] %vm30_vm2, %v5739_v0 }
  0xa8   :  { %38 = vst.msk [vmem:[#allocation2 + $0x1a8] sm:$0x3] %vm30_vm2, %v5739_v0 }
  0xa9   :  { %7726 = vst [vmem:[#allocation50_spill] sm:$0xff] %v6283_v17 }
  0xaa   :  { %41 = vst.msk [vmem:[#allocation2 + $0x358] sm:$0x3] %vm30_vm2, %v5739_v0 }
  0xab   :  { %7727 = vst [vmem:[#allocation51_spill] sm:$0xff] %v6291_v23 }
  0xac   :  { %79 = vst.msk [vmem:[#allocation2 + $0x11] sm:$0x1] %vm42_vm1, %v5739_v0  ;;  %v271_v54 = vld [vmem:[#allocation2 + $0x140] sm:$0xff] }
  0xad   :  { %222 = vst.msk [vmem:[#allocation2 + $0x241] sm:$0xff] %vm27_vm0, %v6283_v17  ;;  %v437_v51 = vld [vmem:[#allocation2 + $0x9] sm:$0xff] }
  0xae   :  { %238 = vst.msk [vmem:[#allocation2 + $0x301] sm:$0xff] %vm27_vm0, %v6291_v23  ;;  %v4524_v46 = vpack.i.bf16 %v453_v60, %v437_v51  ;;  %v6315_v23 = vld [vmem:[%s7590_s0 + $0xd0] sm:$0xff]  ;;  %v6329_v60 = vld [vmem:[%s7590_s0 + $0x1d8] sm:$0xff]  ;;  %v269_v51 = vld [vmem:[#allocation2 + $0x128] sm:$0xff] }
  0xaf   :  { %96 = vst.msk [vmem:[#allocation2 + $0x1a9] sm:$0x1] %vm42_vm1, %v5739_v0  ;;  %v6357_v25 = vpack.i.bf16 %v269_v51, %v253_v4  ;;  %v6380_v4 = vld [vmem:[%s7590_s0 + $0xe0] sm:$0xff]  ;;  %v6382_v51 = vpack.i.bf16 %v302_v15, %v286_v6  ;;  %v287_v15 = vld [vmem:[#allocation2 + $0x230] sm:$0xff]  ;;  %v6404_v17 = vld [vmem:[%s7590_s0 + $0x1e8] sm:$0xff] }
  0xb0   :  { %7728 = vst [vmem:[#allocation52_spill] sm:$0xff] %v6306_v53  ;;  %4525 = vxpose.xlu2.b32.cont [2/16] (narrow) %v4524_v46, 8  ;;  %v438_v46 = vld [vmem:[#allocation2 + $0x19] sm:$0xff] }
  0xb1   :  { %97 = vst.msk [vmem:[#allocation2 + $0x1c1] sm:$0x1] %vm42_vm1, %v5739_v0  ;;  %v6350_v32 = vpack.i.bf16 %v454_v43, %v438_v46  ;;  %v6367_v46 = vld [vmem:[%s7590_s0 + $0x1e0] sm:$0xff]  ;;  %4578 = vxpose.xlu0.b32.cont [10/16] (narrow) %v6357_v25, 8  ;;  %4654 = vxpose.xlu1.b32.cont [11/16] (narrow) %v6382_v51, 8 }
  0xb2   :  { %7729 = vst [vmem:[#allocation53_spill] sm:$0xff] %v6315_v23  ;;  %v6375_v43 = vld [vmem:[%s7590_s0 + $0x60] sm:$0xff] }
  0xb3   :  { %114 = vst.msk [vmem:[#allocation2 + $0x359] sm:$0x1] %vm42_vm1, %v5739_v0  ;;  %v6338_v0 = vld [vmem:[%s7590_s0 + $0x58] sm:$0xff] }
  0xb4   :  { %7730 = vst [vmem:[#allocation54_spill] sm:$0xff] %v6322_v39  ;;  %v469_v10 = vld [vmem:[#allocation2 + $0x1b9] sm:$0xff] }
  0xb5   :  { %190 = vst.msk [vmem:[#allocation2 + $0x91] sm:$0xff] %vm27_vm0, %v6306_v53  ;;  %v457_v53 = vld [vmem:[#allocation2 + $0xf9] sm:$0xff] }
  0xb6   :  { %7731 = vst [vmem:[#allocation55_spill] sm:$0xff] %v6329_v60 }
  0xb7   :  { %206 = vst.msk [vmem:[#allocation2 + $0x151] sm:$0xff] %vm27_vm0, %v6315_v23  ;;  %v488_v23 = vld [vmem:[#allocation2 + $0x2a1] sm:$0xff] }
  0xb8   :  { %7732 = vst [vmem:[#allocation56_spill] sm:$0xff] %v6338_v0  ;;  %4527 = vxpose.xlu2.b32.cont [3/16] (narrow) %v6350_v32, 8 }
  0xb9   :  { %223 = vst.msk [vmem:[#allocation2 + $0x249] sm:$0xff] %vm27_vm0, %v6322_v39  ;;  %v6399_v39 = vld [vmem:[%s7590_s0 + $0x168] sm:$0xff] }
  0xba   :  { %7733 = vst [vmem:[#allocation57_spill] sm:$0xff] %v6346_v56 }
  0xbb   :  { %239 = vst.msk [vmem:[#allocation2 + $0x309] sm:$0xff] %vm27_vm0, %v6329_v60  ;;  %v439_v60 = vld [vmem:[#allocation2 + $0x21] sm:$0xff] }
  0xbc   :  { %191 = vst.msk [vmem:[#allocation2 + $0x99] sm:$0xff] %vm27_vm0, %v6338_v0  ;;  %v6391_v5 = vpack.i.bf16 %v455_v9, %v439_v60  ;;  %v440_v60 = vld [vmem:[#allocation2 + $0x31] sm:$0xff] }
  0xbd   :  { %207 = vst.msk [vmem:[#allocation2 + $0x159] sm:$0xff] %vm27_vm0, %v6346_v56  ;;  %v256_v3 = vld [vmem:[#allocation2 + $0x90] sm:$0xff]  ;;  %v646_v56 = vld [vmem:[#allocation2 + $0xda] sm:$0xff] }
  0xbe   :  { %7734 = vst [vmem:[#allocation58_spill] sm:$0xff] %v6362_v1  ;;  %v272_v61 = vld [vmem:[#allocation2 + $0x150] sm:$0xff] }
  0xbf   :  { %7735 = vst [vmem:[#allocation59_spill] sm:$0xff] %v6367_v46 }
  0xc0   :  { %224 = vst.msk [vmem:[#allocation2 + $0x259] sm:$0xff] %vm27_vm0, %v6362_v1  ;;  %v270_v1 = vld [vmem:[#allocation2 + $0x138] sm:$0xff]  ;;  %4529 = vxpose.xlu2.b32.cont [4/16] (narrow) %v6391_v5, 8 }
  0xc1   :  { %7736 = vst [vmem:[#allocation60_spill] sm:$0xff] %v6375_v43  ;;  %v6394_v6 = vpack.i.bf16 %v270_v1, %v254_v7  ;;  %v6412_v1 = vld [vmem:[%s7590_s0 + $0x68] sm:$0xff] }
  0xc2   :  { %7737 = vst [vmem:[#allocation61_spill] sm:$0xff] %v6380_v4  ;;  %v6417_v7 = vld [vmem:[%s7590_s0 + $0xe8] sm:$0xff] }
  0xc3   :  { %240 = vst.msk [vmem:[#allocation2 + $0x319] sm:$0xff] %vm27_vm0, %v6367_v46  ;;  %v303_v46 = vld [vmem:[#allocation2 + $0x2f0] sm:$0xff]  ;;  %4580 = vxpose.xlu0.b32.cont [11/16] (narrow) %v6394_v6, 8  ;;  %v257_v30 = vld [vmem:[#allocation2 + $0x98] sm:$0xff] }
  0xc4   :  { %192 = vst.msk [vmem:[#allocation2 + $0xa9] sm:$0xff] %vm27_vm0, %v6375_v43  ;;  %v6419_v9 = vpack.i.bf16 %v303_v46, %v287_v15  ;;  %v456_v43 = vld [vmem:[#allocation2 + $0xf1] sm:$0xff]  ;;  %v288_v15 = vld [vmem:[#allocation2 + $0x240] sm:$0xff] }
  0xc5   :  { %208 = vst.msk [vmem:[#allocation2 + $0x169] sm:$0xff] %vm27_vm0, %v6380_v4  ;;  %v6428_v0 = vpack.i.bf16 %v456_v43, %v440_v60  ;;  %v6440_v43 = vpack.i.bf16 %v272_v61, %v256_v3  ;;  %v273_v45 = vld [vmem:[#allocation2 + $0x158] sm:$0xff] }
  0xc6   :  { %7738 = vst [vmem:[#allocation62_spill] sm:$0xff] %v6399_v39  ;;  %4656 = vxpose.xlu1.b32.cont [12/16] (narrow) %v6419_v9, 8  ;;  %v630_v4 = vld [vmem:[#allocation2 + $0x1a] sm:$0xff] }
  0xc7   :  { %7739 = vst [vmem:[#allocation63_spill] sm:$0xff] %v6404_v17  ;;  %v290_v3 = vld [vmem:[#allocation2 + $0x258] sm:$0xff] }
  0xc8   :  { %225 = vst.msk [vmem:[#allocation2 + $0x261] sm:$0xff] %vm27_vm0, %v6399_v39  ;;  %v255_v39 = vld [vmem:[#allocation2 + $0x80] sm:$0xff]  ;;  %4531 = vxpose.xlu2.b32.cont [5/16] (narrow) %v6428_v0, 8 }
  0xc9   :  { %7740 = vst [vmem:[#allocation64_spill] sm:$0xff] %v6412_v1  ;;  %v6431_v46 = vpack.i.bf16 %v271_v54, %v255_v39  ;;  %v289_v39 = vld [vmem:[#allocation2 + $0x248] sm:$0xff] }
  0xca   :  { %7741 = vst [vmem:[#allocation65_spill] sm:$0xff] %v6417_v7  ;;  %v305_v54 = vld [vmem:[#allocation2 + $0x308] sm:$0xff]  ;;  %v306_v61 = vld [vmem:[#allocation2 + $0x318] sm:$0xff] }
  0xcb   :  { %241 = vst.msk [vmem:[#allocation2 + $0x321] sm:$0xff] %vm27_vm0, %v6404_v17  ;;  %v304_v17 = vld [vmem:[#allocation2 + $0x300] sm:$0xff]  ;;  %4582 = vxpose.xlu0.b32.cont [12/16] (narrow) %v6431_v46, 8  ;;  %v6443_v60 = vpack.i.bf16 %v305_v54, %v289_v39  ;;  %v443_v39 = vld [vmem:[#allocation2 + $0x51] sm:$0xff]  ;;  %v258_v36 = vld [vmem:[#allocation2 + $0xa8] sm:$0xff] }
  0xcc   :  { %193 = vst.msk [vmem:[#allocation2 + $0xb1] sm:$0xff] %vm27_vm0, %v6412_v1  ;;  %v6434_v28 = vpack.i.bf16 %v304_v17, %v288_v15  ;;  %v441_v1 = vld [vmem:[#allocation2 + $0x39] sm:$0xff]  ;;  %v442_v17 = vld [vmem:[#allocation2 + $0x49] sm:$0xff]  ;;  %v459_v54 = vld [vmem:[#allocation2 + $0x111] sm:$0xff] }
  0xcd   :  { %209 = vst.msk [vmem:[#allocation2 + $0x171] sm:$0xff] %vm27_vm0, %v6417_v7  ;;  %v6437_v55 = vpack.i.bf16 %v457_v53, %v441_v1  ;;  %v458_v15 = vld [vmem:[#allocation2 + $0x109] sm:$0xff]  ;;  %v6449_v53 = vpack.i.bf16 %v273_v45, %v257_v30  ;;  %v6452_v1 = vpack.i.bf16 %v306_v61, %v290_v3  ;;  %v6455_v31 = vpack.i.bf16 %v459_v54, %v443_v39  ;;  %v444_v3 = vld [vmem:[#allocation2 + $0x61] sm:$0xff] }
  0xce   :  { %4658 = vxpose.xlu1.b32.cont [13/16] (narrow) %v6434_v28, 8  ;;  %v6446_v12 = vpack.i.bf16 %v458_v15, %v442_v17  ;;  %v274_v57 = vld [vmem:[#allocation2 + $0x168] sm:$0xff] }
  0xcf   :  { %v6458_v17 = vpack.i.bf16 %v274_v57, %v258_v36  ;;  %v291_v45 = vld [vmem:[#allocation2 + $0x260] sm:$0xff] }
  0xd0   :  { %4533 = vxpose.xlu2.b32.cont [6/16] (narrow) %v6437_v55, 8  ;;  %v460_v61 = vld [vmem:[#allocation2 + $0x121] sm:$0xff] }
  0xd1   :  { %v6464_v40 = vpack.i.bf16 %v460_v61, %v444_v3  ;;  %v628_v36 = vld [vmem:[#allocation2 + $0x2] sm:$0xff]  ;;  %v4596_v3 = vpack.i.bf16 %v484_v33, %v468_v13  ;;  %v629_v61 = vld [vmem:[#allocation2 + $0xa] sm:$0xff] }
  0xd2   :  { %v307_v30 = vld [vmem:[#allocation2 + $0x320] sm:$0xff] }
  0xd3   :  { %4584 = vxpose.xlu0.b32.cont [13/16] (narrow) %v6440_v43, 8  ;;  %v6461_v15 = vpack.i.bf16 %v307_v30, %v291_v45  ;;  %v259_v47 = vld [vmem:[#allocation2 + $0xb0] sm:$0xff]  ;;  %v644_v57 = vld [vmem:[#allocation2 + $0xc2] sm:$0xff] }
  0xd4   :  { %v275_v21 = vld [vmem:[#allocation2 + $0x170] sm:$0xff]  ;;  %v4670_v54 = vpack.i.bf16 %v644_v57, %v628_v36  ;;  %v485_v36 = vld [vmem:[#allocation2 + $0x279] sm:$0xff]  ;;  %v447_v13 = vld [vmem:[#allocation2 + $0x81] sm:$0xff] }
  0xd5   :  { %v6467_v39 = vpack.i.bf16 %v275_v21, %v259_v47  ;;  %v445_v45 = vld [vmem:[#allocation2 + $0x69] sm:$0xff]  ;;  %v4672_v21 = vpack.i.bf16 %v645_v26, %v629_v61  ;;  %v446_v47 = vld [vmem:[#allocation2 + $0x79] sm:$0xff]  ;;  %v4598_v7 = vpack.i.bf16 %v485_v36, %v469_v10  ;;  %v463_v33 = vld [vmem:[#allocation2 + $0x141] sm:$0xff] }
  0xd6   :  { %4660 = vxpose.xlu1.b32.cont [14/16] (narrow) %v6443_v60, 8  ;;  %v461_v30 = vld [vmem:[#allocation2 + $0x129] sm:$0xff]  ;;  %v6474_v57 = vpack.i.bf16 %v462_v18, %v446_v47 }
  0xd7   :  { %v6471_v8 = vpack.i.bf16 %v461_v30, %v445_v45  ;;  %v470_v45 = vld [vmem:[#allocation2 + $0x1c9] sm:$0xff]  ;;  %v6479_v30 = vpack.i.bf16 %v463_v33, %v447_v13  ;;  %v632_v13 = vld [vmem:[#allocation2 + $0x32] sm:$0xff] }
  0xd8   :  { %4535 = vxpose.xlu2.b32.cont [7/16] (narrow) %v6446_v12, 8  ;;  %v486_v26 = vld [vmem:[#allocation2 + $0x289] sm:$0xff]  ;;  %v648_v33 = vld [vmem:[#allocation2 + $0xf2] sm:$0xff] }
  0xd9   :  { %v631_v18 = vld [vmem:[#allocation2 + $0x22] sm:$0xff] }
  0xda   :  { %v647_v61 = vld [vmem:[#allocation2 + $0xe2] sm:$0xff] }
  0xdb   :  { %4586 = vxpose.xlu0.b32.cont [14/16] (narrow) %v6449_v53, 8  ;;  %v6485_v10 = vpack.i.bf16 %v647_v61, %v631_v18  ;;  %v465_v18 = vld [vmem:[#allocation2 + $0x159] sm:$0xff]  ;;  %v472_v61 = vld [vmem:[#allocation2 + $0x1e1] sm:$0xff] }
  0xde   :  { %4662 = vxpose.xlu1.b32.cont [15/16] (narrow) %v6452_v1, 8 }
  0xe0   :  { %4537 = vxpose.xlu2.b32.cont [8/16] (narrow) %v6455_v31, 8 }
  0xe3   :  { %4588 = vxpose.xlu0.b32.cont [15/16] (narrow) %v6458_v17, 8 }
  0xe6   :  { %4664 = vxpose.xlu1.b32.end [16/16] (narrow) %v6461_v15, 8 }
  0xe8   :  { %4539 = vxpose.xlu2.b32.cont [9/16] (narrow) %v6464_v40, 8 }
  0xeb   :  { %4590 = vxpose.xlu0.b32.end [16/16] (narrow) %v6467_v39, 8 }
  0xee   :  { %4671 = vxpose.xlu1.b32.start [1/16] (narrow) %v4670_v54, 8  ;;  %v6477_v54 = vpack.i.bf16 %v646_v56, %v630_v4  ;;  %v448_v56 = vld [vmem:[#allocation2 + $0x91] sm:$0xff] }
  0xef   :  { %v464_v4 = vld [vmem:[#allocation2 + $0x151] sm:$0xff] }
  0xf0   :  { %4541 = vxpose.xlu2.b32.cont [10/16] (narrow) %v6471_v8, 8  ;;  %v6488_v47 = vpack.i.bf16 %v464_v4, %v448_v56  ;;  %v6500_v56 = vpack.i.bf16 %v488_v23, %v472_v61  ;;  %v633_v4 = vld [vmem:[#allocation2 + $0x3a] sm:$0xff]  ;;  %v634_v23 = vld [vmem:[#allocation2 + $0x4a] sm:$0xff] }
  0xf3   :  { %4597 = vxpose.xlu0.b32.start [1/16] (narrow) %v4596_v3, 8  ;;  %v6482_v3 = vpack.i.bf16 %v486_v26, %v470_v45  ;;  %v6494_v45 = vpack.i.bf16 %v648_v33, %v632_v13  ;;  %v449_v26 = vld [vmem:[#allocation2 + $0x99] sm:$0xff]  ;;  %v450_v13 = vld [vmem:[#allocation2 + $0xa9] sm:$0xff] }
  0xf4   :  { %v6497_v63 = vpack.i.bf16 %v465_v18, %v449_v26  ;;  %v466_v33 = vld [vmem:[#allocation2 + $0x169] sm:$0xff]  ;;  %v6509_v26 = vpack.i.bf16 %v489_v14, %v473_v37  ;;  %v635_v14 = vld [vmem:[#allocation2 + $0x52] sm:$0xff] }
  0xf5   :  { %v6506_v58 = vpack.i.bf16 %v466_v33, %v450_v13  ;;  %v650_v18 = vld [vmem:[#allocation2 + $0x10a] sm:$0xff]  ;;  %v6518_v13 = vpack.i.bf16 %v490_v41, %v474_v49  ;;  %v651_v37 = vld [vmem:[#allocation2 + $0x112] sm:$0xff]  ;;  %v652_v41 = vld [vmem:[#allocation2 + $0x122] sm:$0xff] }
  0xf6   :  { %4673 = vxpose.xlu1.b32.cont [2/16] (narrow) %v4672_v21, 8  ;;  %v487_v21 = vld [vmem:[#allocation2 + $0x291] sm:$0xff]  ;;  %7742 = vst [vmem:[#allocation66_spill] sm:$0xff] %v6509_v26  ;;  %v6512_v61 = vpack.i.bf16 %v650_v18, %v634_v23  ;;  %v6521_v33 = vpack.i.bf16 %v651_v37, %v635_v14  ;;  %v661_v14 = vld [vmem:[#allocation2 + $0x1ba] sm:$0xff] }
  0xf7   :  { %7745 = vst [vmem:[#allocation69_spill] sm:$0xff] %v6518_v13  ;;  %v660_v23 = vld [vmem:[#allocation2 + $0x1b2] sm:$0xff]  ;;  %v677_v37 = vld [vmem:[#allocation2 + $0x27a] sm:$0xff] }
  0xf8   :  { %4543 = vxpose.xlu2.b32.cont [11/16] (narrow) %v6474_v57, 8  ;;  %7743 = vst [vmem:[#allocation67_spill] sm:$0xff] %v6512_v61  ;;  %v676_v18 = vld [vmem:[#allocation2 + $0x272] sm:$0xff] }
  0xf9   :  { %v4707_v11 = vpack.i.bf16 %v676_v18, %v660_v23  ;;  %v637_v23 = vld [vmem:[#allocation2 + $0x6a] sm:$0xff] }
  0xfa   :  { %v653_v18 = vld [vmem:[#allocation2 + $0x12a] sm:$0xff] }
  0xfb   :  { %4599 = vxpose.xlu0.b32.cont [2/16] (narrow) %v4598_v7, 8  ;;  %v471_v7 = vld [vmem:[#allocation2 + $0x1d1] sm:$0xff] }
  0xfc   :  { %v6491_v36 = vpack.i.bf16 %v487_v21, %v471_v7  ;;  %v649_v7 = vld [vmem:[#allocation2 + $0xfa] sm:$0xff] }
  0xfd   :  { %v6503_v21 = vpack.i.bf16 %v649_v7, %v633_v4  ;;  %v451_v4 = vld [vmem:[#allocation2 + $0xb1] sm:$0xff] }
  0xfe   :  { %4675 = vxpose.xlu1.b32.cont [3/16] (narrow) %v6477_v54, 8  ;;  %v467_v7 = vld [vmem:[#allocation2 + $0x171] sm:$0xff] }
  0xff   :  { %v6515_v35 = vpack.i.bf16 %v467_v7, %v451_v4  ;;  %v6525_v4 = vpack.i.bf16 %v491_v19, %v475_v27  ;;  %v636_v7 = vld [vmem:[#allocation2 + $0x62] sm:$0xff]  ;;  %v6533_v19 = vpack.i.bf16 %v653_v18, %v637_v23  ;;  %v678_v27 = vld [vmem:[#allocation2 + $0x28a] sm:$0xff]  ;;  %v679_v23 = vld [vmem:[#allocation2 + $0x292] sm:$0xff] }
 0x100   :  { %4545 = vxpose.xlu2.b32.cont [12/16] (narrow) %v6479_v30, 8  ;;  %v6527_v49 = vpack.i.bf16 %v652_v41, %v636_v7  ;;  %v477_v7 = vld [vmem:[#allocation2 + $0x219] sm:$0xff]  ;;  %v478_v18 = vld [vmem:[#allocation2 + $0x229] sm:$0xff] }
 0x101   :  { %7744 = vst [vmem:[#allocation68_spill] sm:$0xff] %v6515_v35  ;;  %v493_v41 = vld [vmem:[#allocation2 + $0x2d9] sm:$0xff] }
 0x102   :  { %7746 = vst [vmem:[#allocation70_spill] sm:$0xff] %v6525_v4 }
 0x103   :  { %4601 = vxpose.xlu0.b32.cont [3/16] (narrow) %v6482_v3, 8  ;;  %7747 = vst [vmem:[#allocation71_spill] sm:$0xff] %v6527_v49 }
 0x104   :  { %7749 = vst [vmem:[#allocation73_spill] sm:$0xff] %v6533_v19 }
 0x106   :  { %4677 = vxpose.xlu1.b32.cont [4/16] (narrow) %v6485_v10, 8 }
 0x108   :  { %4547 = vxpose.xlu2.b32.cont [13/16] (narrow) %v6488_v47, 8 }
 0x10b   :  { %4603 = vxpose.xlu0.b32.cont [4/16] (narrow) %v6491_v36, 8 }
 0x10e   :  { %4679 = vxpose.xlu1.b32.cont [5/16] (narrow) %v6494_v45, 8 }
 0x110   :  { %4549 = vxpose.xlu2.b32.cont [14/16] (narrow) %v6497_v63, 8 }
 0x113   :  { %4605 = vxpose.xlu0.b32.cont [5/16] (narrow) %v6500_v56, 8 }
 0x116   :  { %4681 = vxpose.xlu1.b32.cont [6/16] (narrow) %v6503_v21, 8 }
 0x118   :  { %4551 = vxpose.xlu2.b32.cont [15/16] (narrow) %v6506_v58, 8 }
 0x11b   :  { %4607 = vxpose.xlu0.b32.cont [6/16] (narrow) %v6509_v26, 8 }
 0x11e   :  { %4683 = vxpose.xlu1.b32.cont [7/16] (narrow) %v6512_v61, 8  ;;  %v4709_v61 = vpack.i.bf16 %v677_v37, %v661_v14  ;;  %v6539_v14 = vpack.i.bf16 %v493_v41, %v477_v7  ;;  %v638_v37 = vld [vmem:[#allocation2 + $0x7a] sm:$0xff]  ;;  %v655_v7 = vld [vmem:[#allocation2 + $0x142] sm:$0xff] }
 0x120   :  { %4553 = vxpose.xlu2.b32.end [16/16] (narrow) %v6515_v35, 8  ;;  %v476_v35 = vld [vmem:[#allocation2 + $0x211] sm:$0xff]  ;;  %7751 = vst [vmem:[#allocation75_spill] sm:$0xff] %v6539_v14 }
 0x123   :  { %4609 = vxpose.xlu0.b32.cont [7/16] (narrow) %v6518_v13, 8  ;;  %v492_v13 = vld [vmem:[#allocation2 + $0x2d1] sm:$0xff] }
 0x124   :  { %v6531_v26 = vpack.i.bf16 %v492_v13, %v476_v35  ;;  %v654_v35 = vld [vmem:[#allocation2 + $0x13a] sm:$0xff] }
 0x125   :  { %v6542_v13 = vpack.i.bf16 %v654_v35, %v638_v37  ;;  %v664_v37 = vld [vmem:[#allocation2 + $0x1e2] sm:$0xff] }
 0x126   :  { %4685 = vxpose.xlu1.b32.cont [8/16] (narrow) %v6521_v33, 8  ;;  %7748 = vst [vmem:[#allocation72_spill] sm:$0xff] %v6531_v26  ;;  %v680_v35 = vld [vmem:[#allocation2 + $0x2a2] sm:$0xff] }
 0x127   :  { %7752 = vst [vmem:[#allocation76_spill] sm:$0xff] %v6542_v13 }
 0x128   :  { %4708 = vxpose.xlu2.b32.start [1/16] (narrow) %v4707_v11, 8  ;;  %v662_v11 = vld [vmem:[#allocation2 + $0x1ca] sm:$0xff] }
 0x12b   :  { %4611 = vxpose.xlu0.b32.cont [8/16] (narrow) %v6525_v4, 8  ;;  %v6536_v4 = vpack.i.bf16 %v678_v27, %v662_v11  ;;  %v639_v27 = vld [vmem:[#allocation2 + $0x82] sm:$0xff] }
 0x12c   :  { %v6551_v41 = vpack.i.bf16 %v655_v7, %v639_v27  ;;  %v665_v27 = vld [vmem:[#allocation2 + $0x1ea] sm:$0xff] }
 0x12d   :  { %7750 = vst [vmem:[#allocation74_spill] sm:$0xff] %v6536_v4  ;;  %v681_v7 = vld [vmem:[#allocation2 + $0x2aa] sm:$0xff] }
 0x12e   :  { %4687 = vxpose.xlu1.b32.cont [9/16] (narrow) %v6527_v49, 8  ;;  %7755 = vst [vmem:[#allocation79_spill] sm:$0xff] %v6551_v41 }
 0x130   :  { %4710 = vxpose.xlu2.b32.cont [2/16] (narrow) %v4709_v61, 8  ;;  %v663_v61 = vld [vmem:[#allocation2 + $0x1d2] sm:$0xff] }
 0x131   :  { %v6545_v49 = vpack.i.bf16 %v679_v23, %v663_v61  ;;  %v656_v23 = vld [vmem:[#allocation2 + $0x152] sm:$0xff] }
 0x133   :  { %4613 = vxpose.xlu0.b32.cont [9/16] (narrow) %v6531_v26, 8  ;;  %v494_v26 = vld [vmem:[#allocation2 + $0x2e9] sm:$0xff]  ;;  %7753 = vst [vmem:[#allocation77_spill] sm:$0xff] %v6545_v49 }
 0x134   :  { %v6548_v11 = vpack.i.bf16 %v494_v26, %v478_v18  ;;  %v640_v26 = vld [vmem:[#allocation2 + $0x92] sm:$0xff] }
 0x135   :  { %v6560_v18 = vpack.i.bf16 %v656_v23, %v640_v26  ;;  %v666_v26 = vld [vmem:[#allocation2 + $0x1fa] sm:$0xff] }
 0x136   :  { %4689 = vxpose.xlu1.b32.cont [10/16] (narrow) %v6533_v19, 8  ;;  %7754 = vst [vmem:[#allocation78_spill] sm:$0xff] %v6548_v11  ;;  %v6554_v19 = vpack.i.bf16 %v680_v35, %v664_v37  ;;  %v682_v23 = vld [vmem:[#allocation2 + $0x2ba] sm:$0xff] }
 0x137   :  { %7758 = vst [vmem:[#allocation82_spill] sm:$0xff] %v6560_v18 }
 0x138   :  { %4712 = vxpose.xlu2.b32.cont [3/16] (narrow) %v6536_v4, 8  ;;  %v495_v4 = vld [vmem:[#allocation2 + $0x2f1] sm:$0xff]  ;;  %7756 = vst [vmem:[#allocation80_spill] sm:$0xff] %v6554_v19 }
 0x13b   :  { %4615 = vxpose.xlu0.b32.cont [10/16] (narrow) %v6539_v14, 8  ;;  %v479_v14 = vld [vmem:[#allocation2 + $0x231] sm:$0xff] }
 0x13c   :  { %v6557_v61 = vpack.i.bf16 %v495_v4, %v479_v14  ;;  %v641_v4 = vld [vmem:[#allocation2 + $0x9a] sm:$0xff] }
 0x13d   :  { %v657_v14 = vld [vmem:[#allocation2 + $0x15a] sm:$0xff] }
 0x13e   :  { %4691 = vxpose.xlu1.b32.cont [11/16] (narrow) %v6542_v13, 8  ;;  %7757 = vst [vmem:[#allocation81_spill] sm:$0xff] %v6557_v61  ;;  %v6563_v13 = vpack.i.bf16 %v681_v7, %v665_v27  ;;  %v6569_v35 = vpack.i.bf16 %v657_v14, %v641_v4  ;;  %v667_v4 = vld [vmem:[#allocation2 + $0x202] sm:$0xff] }
 0x13f   :  { %v683_v14 = vld [vmem:[#allocation2 + $0x2c2] sm:$0xff] }
 0x140   :  { %4714 = vxpose.xlu2.b32.cont [4/16] (narrow) %v6545_v49, 8  ;;  %v496_v49 = vld [vmem:[#allocation2 + $0x301] sm:$0xff]  ;;  %7759 = vst [vmem:[#allocation83_spill] sm:$0xff] %v6563_v13 }
 0x141   :  { %7761 = vst [vmem:[#allocation85_spill] sm:$0xff] %v6569_v35 }
 0x143   :  { %4617 = vxpose.xlu0.b32.cont [11/16] (narrow) %v6548_v11, 8  ;;  %v480_v11 = vld [vmem:[#allocation2 + $0x241] sm:$0xff] }
 0x144   :  { %v6566_v37 = vpack.i.bf16 %v496_v49, %v480_v11  ;;  %v642_v49 = vld [vmem:[#allocation2 + $0xaa] sm:$0xff] }
 0x145   :  { %v658_v11 = vld [vmem:[#allocation2 + $0x16a] sm:$0xff] }
 0x146   :  { %4693 = vxpose.xlu1.b32.cont [12/16] (narrow) %v6551_v41, 8  ;;  %7760 = vst [vmem:[#allocation84_spill] sm:$0xff] %v6566_v37  ;;  %v6572_v41 = vpack.i.bf16 %v682_v23, %v666_v26  ;;  %v6578_v7 = vpack.i.bf16 %v658_v11, %v642_v49  ;;  %v668_v49 = vld [vmem:[#allocation2 + $0x212] sm:$0xff] }
 0x147   :  { %v684_v11 = vld [vmem:[#allocation2 + $0x2d2] sm:$0xff] }
 0x148   :  { %4716 = vxpose.xlu2.b32.cont [5/16] (narrow) %v6554_v19, 8  ;;  %v497_v19 = vld [vmem:[#allocation2 + $0x309] sm:$0xff]  ;;  %7762 = vst [vmem:[#allocation86_spill] sm:$0xff] %v6572_v41 }
 0x14b   :  { %4619 = vxpose.xlu0.b32.cont [12/16] (narrow) %v6557_v61, 8  ;;  %v481_v61 = vld [vmem:[#allocation2 + $0x249] sm:$0xff] }
 0x14c   :  { %v6575_v27 = vpack.i.bf16 %v497_v19, %v481_v61  ;;  %v643_v19 = vld [vmem:[#allocation2 + $0xb2] sm:$0xff] }
 0x14d   :  { %v659_v61 = vld [vmem:[#allocation2 + $0x172] sm:$0xff] }
 0x14e   :  { %4695 = vxpose.xlu1.b32.cont [13/16] (narrow) %v6560_v18, 8  ;;  %7763 = vst [vmem:[#allocation87_spill] sm:$0xff] %v6575_v27  ;;  %v6581_v18 = vpack.i.bf16 %v683_v14, %v667_v4  ;;  %v6587_v23 = vpack.i.bf16 %v659_v61, %v643_v19  ;;  %v670_v19 = vld [vmem:[#allocation2 + $0x22a] sm:$0xff] }
 0x14f   :  { %v686_v61 = vld [vmem:[#allocation2 + $0x2ea] sm:$0xff] }
 0x150   :  { %4718 = vxpose.xlu2.b32.cont [6/16] (narrow) %v6563_v13, 8  ;;  %v498_v13 = vld [vmem:[#allocation2 + $0x319] sm:$0xff] }
 0x153   :  { %4621 = vxpose.xlu0.b32.cont [13/16] (narrow) %v6566_v37, 8  ;;  %v482_v37 = vld [vmem:[#allocation2 + $0x259] sm:$0xff] }
 0x154   :  { %v6584_v26 = vpack.i.bf16 %v498_v13, %v482_v37  ;;  %v669_v13 = vld [vmem:[#allocation2 + $0x21a] sm:$0xff] }
 0x155   :  { %v685_v37 = vld [vmem:[#allocation2 + $0x2da] sm:$0xff] }
 0x156   :  { %4697 = vxpose.xlu1.b32.cont [14/16] (narrow) %v6569_v35, 8  ;;  %v6590_v35 = vpack.i.bf16 %v684_v11, %v668_v49  ;;  %v6597_v14 = vpack.i.bf16 %v685_v37, %v669_v13  ;;  %v6602_v49 = vpack.i.bf16 %v686_v61, %v670_v19 }
 0x158   :  { %4720 = vxpose.xlu2.b32.cont [7/16] (narrow) %v6572_v41, 8  ;;  %v499_v41 = vld [vmem:[#allocation2 + $0x321] sm:$0xff] }
 0x15b   :  { %4623 = vxpose.xlu0.b32.cont [14/16] (narrow) %v6575_v27, 8  ;;  %v483_v27 = vld [vmem:[#allocation2 + $0x261] sm:$0xff] }
 0x15c   :  { %v6593_v4 = vpack.i.bf16 %v499_v41, %v483_v27  ;;  %v671_v41 = vld [vmem:[#allocation2 + $0x232] sm:$0xff] }
 0x15d   :  { %v687_v27 = vld [vmem:[#allocation2 + $0x2f2] sm:$0xff] }
 0x15e   :  { %4699 = vxpose.xlu1.b32.cont [15/16] (narrow) %v6578_v7, 8  ;;  %v6607_v11 = vpack.i.bf16 %v687_v27, %v671_v41  ;;  %v7784_v41 = vld [vmem:[#allocation85_spill] sm:$0xff]  ;;  %v7785_v27 = vld [vmem:[#allocation86_spill] sm:$0xff] }
 0x160   :  { %4722 = vxpose.xlu2.b32.cont [8/16] (narrow) %v6581_v18, 8 }
 0x163   :  { %4625 = vxpose.xlu0.b32.cont [15/16] (narrow) %v6584_v26, 8 }
 0x166   :  { %4701 = vxpose.xlu1.b32.end [16/16] (narrow) %v6587_v23, 8 }
 0x168   :  { %4724 = vxpose.xlu2.b32.cont [9/16] (narrow) %v6590_v35, 8 }
 0x16b   :  { %4627 = vxpose.xlu0.b32.end [16/16] (narrow) %v6593_v4, 8 }
 0x16e   :  { %4782 = vxpose.xlu1.b32.start [1/16] (narrow) %v6061_v34, 8  ;;  %v672_v34 = vld [vmem:[#allocation2 + $0x242] sm:$0xff] }
 0x170   :  { %4726 = vxpose.xlu2.b32.cont [10/16] (narrow) %v6597_v14, 8 }
 0x173   :  { %4745 = vxpose.xlu0.b32.start [1/16] (narrow) %v6099_v42, 8  ;;  %v688_v42 = vld [vmem:[#allocation2 + $0x302] sm:$0xff] }
 0x174   :  { %v6612_v13 = vpack.i.bf16 %v688_v42, %v672_v34  ;;  %v7786_v34 = vld [vmem:[#allocation87_spill] sm:$0xff]  ;;  %v6739_v42 = vld [vmem:[#allocation2 + $0xc2] sm:$0xff] }
 0x176   :  { %4784 = vxpose.xlu1.b32.cont [2/16] (narrow) %v6122_v48, 8  ;;  %v673_v48 = vld [vmem:[#allocation2 + $0x24a] sm:$0xff] }
 0x178   :  { %4728 = vxpose.xlu2.b32.cont [11/16] (narrow) %v6602_v49, 8 }
 0x17b   :  { %4747 = vxpose.xlu0.b32.cont [2/16] (narrow) %v6139_v52, 8  ;;  %v689_v52 = vld [vmem:[#allocation2 + $0x30a] sm:$0xff] }
 0x17c   :  { %v6617_v37 = vpack.i.bf16 %v689_v52, %v673_v48 }
 0x17e   :  { %4786 = vxpose.xlu1.b32.cont [3/16] (narrow) %v6163_v59, 8  ;;  %v674_v59 = vld [vmem:[#allocation2 + $0x25a] sm:$0xff] }
 0x180   :  { %4730 = vxpose.xlu2.b32.cont [12/16] (narrow) %v6607_v11, 8 }
 0x183   :  { %4749 = vxpose.xlu0.b32.cont [3/16] (narrow) %v6173_v62, 8  ;;  %v690_v62 = vld [vmem:[#allocation2 + $0x31a] sm:$0xff] }
 0x184   :  { %v6622_v19 = vpack.i.bf16 %v690_v62, %v674_v59  ;;  %v1058_v59 = vld [vmem:[#allocation2 + $0x271] sm:$0xff] }
 0x186   :  { %4788 = vxpose.xlu1.b32.cont [4/16] (narrow) %v6197_v16, 8  ;;  %v675_v16 = vld [vmem:[#allocation2 + $0x262] sm:$0xff] }
 0x188   :  { %4732 = vxpose.xlu2.b32.cont [13/16] (narrow) %v6612_v13, 8 }
 0x18b   :  { %4751 = vxpose.xlu0.b32.cont [4/16] (narrow) %v6207_v22, 8  ;;  %v691_v22 = vld [vmem:[#allocation2 + $0x322] sm:$0xff] }
 0x18c   :  { %v6627_v61 = vpack.i.bf16 %v691_v22, %v675_v16  ;;  %v1429_v22 = vld [vmem:[#allocation2 + $0x1e0] sm:$0xff] }
 0x18e   :  { %4790 = vxpose.xlu1.b32.cont [5/16] (narrow) %v6231_v38, 8  ;;  %v6642_v38 = vld [vmem:[%s7590_s0 + $0x1f0] sm:$0xff] }
 0x18f   :  { %242 = vst.msk [vmem:[#allocation2 + $0x331] sm:$0xff] %vm27_vm0, %v6642_v38 }
 0x190   :  { %4734 = vxpose.xlu2.b32.cont [14/16] (narrow) %v6617_v37, 8 }
 0x193   :  { %4753 = vxpose.xlu0.b32.cont [5/16] (narrow) %v6241_v50, 8  ;;  %v834_v50 = vld [vmem:[#allocation2 + $0xc0] sm:$0xff] }
 0x196   :  { %4792 = vxpose.xlu1.b32.cont [6/16] (narrow) %v6265_v2, 8  ;;  %v1074_v62 = vld [vmem:[#allocation2 + $0x331] sm:$0xff] }
 0x198   :  { %4736 = vxpose.xlu2.b32.cont [15/16] (narrow) %v6622_v19, 8 }
 0x19b   :  { %4755 = vxpose.xlu0.b32.cont [6/16] (narrow) %v6275_v44, 8  ;;  %v867_v44 = vld [vmem:[#allocation2 + $0x278] sm:$0xff] }
 0x19e   :  { %4794 = vxpose.xlu1.b32.cont [7/16] (narrow) %v6285_v20, 8 }
 0x1a0   :  { %4738 = vxpose.xlu2.b32.end [16/16] (narrow) %v6627_v61, 8 }
 0x1a3   :  { %4757 = vxpose.xlu0.b32.cont [7/16] (narrow) %v6308_v29, 8  ;;  %v6647_v29 = vld [vmem:[%s7590_s0 + $0xf0] sm:$0xff] }
 0x1a4   :  { %210 = vst.msk [vmem:[#allocation2 + $0x181] sm:$0xff] %vm27_vm0, %v6647_v29 }
 0x1a6   :  { %4796 = vxpose.xlu1.b32.cont [8/16] (narrow) %v6331_v24, 8  ;;  %v835_v24 = vld [vmem:[#allocation2 + $0xc8] sm:$0xff] }
 0x1a8   :  { %4819 = vxpose.xlu2.b32.start [1/16] (narrow) %v6350_v32, 8  ;;  %v866_v32 = vld [vmem:[#allocation2 + $0x270] sm:$0xff] }
 0x1ab   :  { %4759 = vxpose.xlu0.b32.cont [8/16] (narrow) %v6357_v25, 8  ;;  %v6664_v25 = vld [vmem:[%s7590_s0 + $0xf8] sm:$0xff] }
 0x1ac   :  { %211 = vst.msk [vmem:[#allocation2 + $0x189] sm:$0xff] %vm27_vm0, %v6664_v25 }
 0x1ae   :  { %4798 = vxpose.xlu1.b32.cont [9/16] (narrow) %v6382_v51, 8  ;;  %v7766_v51 = vld [vmem:[#allocation67_spill] sm:$0xff] }
 0x1b0   :  { %4821 = vxpose.xlu2.b32.cont [2/16] (narrow) %v6391_v5, 8  ;;  %v6659_v5 = vld [vmem:[%s7590_s0 + $0x1f8] sm:$0xff] }
 0x1b1   :  { %7764 = vst [vmem:[#allocation88_spill] sm:$0xff] %v6659_v5 }
 0x1b2   :  { %243 = vst.msk [vmem:[#allocation2 + $0x339] sm:$0xff] %vm27_vm0, %v6659_v5 }
 0x1b3   :  { %4761 = vxpose.xlu0.b32.cont [9/16] (narrow) %v6394_v6, 8  ;;  %v7767_v6 = vld [vmem:[#allocation68_spill] sm:$0xff] }
 0x1b4   :  { %v6741_v48 = vld [vmem:[#allocation2 + $0x182] sm:$0xff] }
 0x1b5   :  { %v4920_v52 = vpack.i.bf16 %v6741_v48, %v6739_v42 }
 0x1b6   :  { %4800 = vxpose.xlu1.b32.cont [10/16] (narrow) %v6419_v9, 8  ;;  %v7768_v9 = vld [vmem:[#allocation69_spill] sm:$0xff] }
 0x1b8   :  { %4823 = vxpose.xlu2.b32.cont [3/16] (narrow) %v6428_v0, 8 }
 0x1b9   :  { %v1075_v16 = vld [vmem:[#allocation2 + $0x339] sm:$0xff] }
 0x1bb   :  { %4763 = vxpose.xlu0.b32.cont [10/16] (narrow) %v6431_v46, 8  ;;  %v1026_v46 = vld [vmem:[#allocation2 + $0xc1] sm:$0xff] }
 0x1be   :  { %4802 = vxpose.xlu1.b32.cont [11/16] (narrow) %v6434_v28, 8 }
 0x1c0   :  { %4825 = vxpose.xlu2.b32.cont [4/16] (narrow) %v6437_v55, 8  ;;  %v882_v55 = vld [vmem:[#allocation2 + $0x330] sm:$0xff] }
 0x1c1   :  { %v6680_v28 = vpack.i.bf16 %v882_v55, %v866_v32  ;;  %v1445_v32 = vld [vmem:[#allocation2 + $0x2a0] sm:$0xff] }
 0x1c2   :  { %v5003_v55 = vpack.i.bf16 %v1445_v32, %v1429_v22  ;;  %v1436_v22 = vld [vmem:[#allocation2 + $0x230] sm:$0xff] }
 0x1c3   :  { %4765 = vxpose.xlu0.b32.cont [11/16] (narrow) %v6440_v43, 8  ;;  %v1042_v43 = vld [vmem:[#allocation2 + $0x181] sm:$0xff]  ;;  %v1452_v32 = vld [vmem:[#allocation2 + $0x2f0] sm:$0xff] }
 0x1c6   :  { %4804 = vxpose.xlu1.b32.cont [12/16] (narrow) %v6443_v60, 8  ;;  %v6710_v60 = vpack.i.bf16 %v1042_v43, %v1026_v46  ;;  %v1399_v46 = vld [vmem:[#allocation2 + $0x48] sm:$0xff] }
 0x1c7   :  { %v1415_v43 = vld [vmem:[#allocation2 + $0x108] sm:$0xff] }
 0x1c8   :  { %4827 = vxpose.xlu2.b32.cont [5/16] (narrow) %v6446_v12, 8  ;;  %v850_v12 = vld [vmem:[#allocation2 + $0x180] sm:$0xff] }
 0x1c9   :  { %v6684_v2 = vpack.i.bf16 %v850_v12, %v834_v50  ;;  %v1397_v50 = vld [vmem:[#allocation2 + $0x30] sm:$0xff] }
 0x1ca   :  { %v1413_v12 = vld [vmem:[#allocation2 + $0xf0] sm:$0xff] }
 0x1cb   :  { %4767 = vxpose.xlu0.b32.cont [12/16] (narrow) %v6449_v53, 8  ;;  %v1027_v53 = vld [vmem:[#allocation2 + $0xc9] sm:$0xff] }
 0x1ce   :  { %4806 = vxpose.xlu1.b32.cont [13/16] (narrow) %v6452_v1, 8 }
 0x1d0   :  { %4829 = vxpose.xlu2.b32.cont [6/16] (narrow) %v6455_v31, 8  ;;  %v883_v31 = vld [vmem:[#allocation2 + $0x338] sm:$0xff] }
 0x1d1   :  { %v6687_v20 = vpack.i.bf16 %v883_v31, %v867_v44  ;;  %v1430_v44 = vld [vmem:[#allocation2 + $0x1e8] sm:$0xff] }
 0x1d2   :  { %v1446_v31 = vld [vmem:[#allocation2 + $0x2a8] sm:$0xff] }
 0x1d3   :  { %4769 = vxpose.xlu0.b32.cont [13/16] (narrow) %v6458_v17, 8  ;;  %v7770_v17 = vld [vmem:[#allocation71_spill] sm:$0xff] }
 0x1d6   :  { %4808 = vxpose.xlu1.b32.cont [14/16] (narrow) %v6461_v15, 8  ;;  %v7771_v15 = vld [vmem:[#allocation72_spill] sm:$0xff] }
 0x1d8   :  { %4831 = vxpose.xlu2.b32.cont [7/16] (narrow) %v6464_v40, 8  ;;  %v851_v40 = vld [vmem:[#allocation2 + $0x188] sm:$0xff] }
 0x1d9   :  { %v6691_v0 = vpack.i.bf16 %v851_v40, %v835_v24  ;;  %v5005_v24 = vpack.i.bf16 %v1446_v31, %v1430_v44  ;;  %v1398_v40 = vld [vmem:[#allocation2 + $0x38] sm:$0xff]  ;;  %v1420_v44 = vld [vmem:[#allocation2 + $0x140] sm:$0xff] }
 0x1db   :  { %4771 = vxpose.xlu0.b32.cont [14/16] (narrow) %v6467_v39, 8  ;;  %v7772_v39 = vld [vmem:[#allocation73_spill] sm:$0xff] }
 0x1de   :  { %4810 = vxpose.xlu1.b32.cont [15/16] (narrow) %v6680_v28, 8 }
 0x1e0   :  { %4833 = vxpose.xlu2.b32.cont [8/16] (narrow) %v6471_v8, 8  ;;  %v7765_v8 = vld [vmem:[#allocation66_spill] sm:$0xff] }
 0x1e3   :  { %4773 = vxpose.xlu0.b32.cont [15/16] (narrow) %v6684_v2, 8 }
 0x1e6   :  { %4812 = vxpose.xlu1.b32.end [16/16] (narrow) %v6687_v20, 8 }
 0x1e8   :  { %4835 = vxpose.xlu2.b32.cont [9/16] (narrow) %v6474_v57, 8  ;;  %v7773_v57 = vld [vmem:[#allocation74_spill] sm:$0xff] }
 0x1eb   :  { %4775 = vxpose.xlu0.b32.end [16/16] (narrow) %v6691_v0, 8 }
 0x1ee   :  { %4893 = vxpose.xlu1.b32.start [1/16] (narrow) %v6477_v54, 8  ;;  %v7774_v54 = vld [vmem:[#allocation75_spill] sm:$0xff] }
 0x1f0   :  { %4837 = vxpose.xlu2.b32.cont [10/16] (narrow) %v6479_v30, 8  ;;  %v7775_v30 = vld [vmem:[#allocation76_spill] sm:$0xff] }
 0x1f3   :  { %4856 = vxpose.xlu0.b32.start [1/16] (narrow) %v6482_v3, 8  ;;  %v7776_v3 = vld [vmem:[#allocation77_spill] sm:$0xff] }
 0x1f6   :  { %4895 = vxpose.xlu1.b32.cont [2/16] (narrow) %v6485_v10, 8  ;;  %v7777_v10 = vld [vmem:[#allocation78_spill] sm:$0xff] }
 0x1f8   :  { %4839 = vxpose.xlu2.b32.cont [11/16] (narrow) %v6488_v47, 8  ;;  %v7778_v47 = vld [vmem:[#allocation79_spill] sm:$0xff] }
 0x1fb   :  { %4858 = vxpose.xlu0.b32.cont [2/16] (narrow) %v6491_v36, 8  ;;  %v7779_v36 = vld [vmem:[#allocation80_spill] sm:$0xff] }
 0x1fe   :  { %4897 = vxpose.xlu1.b32.cont [3/16] (narrow) %v6494_v45, 8  ;;  %v7780_v45 = vld [vmem:[#allocation81_spill] sm:$0xff] }
 0x200   :  { %4841 = vxpose.xlu2.b32.cont [12/16] (narrow) %v6497_v63, 8  ;;  %v7769_v63 = vld [vmem:[#allocation70_spill] sm:$0xff] }
 0x203   :  { %4860 = vxpose.xlu0.b32.cont [3/16] (narrow) %v6500_v56, 8  ;;  %v7781_v56 = vld [vmem:[#allocation82_spill] sm:$0xff] }
 0x206   :  { %4899 = vxpose.xlu1.b32.cont [4/16] (narrow) %v6503_v21, 8  ;;  %v7782_v21 = vld [vmem:[#allocation83_spill] sm:$0xff] }
 0x208   :  { %4843 = vxpose.xlu2.b32.cont [13/16] (narrow) %v6506_v58, 8  ;;  %v1043_v58 = vld [vmem:[#allocation2 + $0x189] sm:$0xff] }
 0x209   :  { %v6715_v1 = vpack.i.bf16 %v1043_v58, %v1027_v53  ;;  %v1432_v53 = vld [vmem:[#allocation2 + $0x200] sm:$0xff] }
 0x20a   :  { %v1448_v58 = vld [vmem:[#allocation2 + $0x2c0] sm:$0xff] }
 0x20b   :  { %4862 = vxpose.xlu0.b32.cont [4/16] (narrow) %v7765_v8, 8  ;;  %v1414_v8 = vld [vmem:[#allocation2 + $0xf8] sm:$0xff] }
 0x20e   :  { %4901 = vxpose.xlu1.b32.cont [5/16] (narrow) %v7766_v51, 8  ;;  %v4968_v51 = vpack.i.bf16 %v1414_v8, %v1398_v40  ;;  %v1437_v40 = vld [vmem:[#allocation2 + $0x240] sm:$0xff] }
 0x20f   :  { %v1453_v8 = vld [vmem:[#allocation2 + $0x300] sm:$0xff] }
 0x210   :  { %4845 = vxpose.xlu2.b32.cont [14/16] (narrow) %v7767_v6, 8  ;;  %v1431_v6 = vld [vmem:[#allocation2 + $0x1f8] sm:$0xff] }
 0x213   :  { %4864 = vxpose.xlu0.b32.cont [5/16] (narrow) %v7768_v9, 8  ;;  %v1447_v9 = vld [vmem:[#allocation2 + $0x2b8] sm:$0xff] }
 0x216   :  { %4903 = vxpose.xlu1.b32.cont [6/16] (narrow) %v6521_v33, 8  ;;  %v7783_v33 = vld [vmem:[#allocation84_spill] sm:$0xff] }
 0x218   :  { %4847 = vxpose.xlu2.b32.cont [15/16] (narrow) %v6710_v60, 8 }
 0x21b   :  { %4866 = vxpose.xlu0.b32.cont [6/16] (narrow) %v7769_v63, 8  ;;  %v4970_v63 = vpack.i.bf16 %v1415_v43, %v1399_v46  ;;  %v1421_v46 = vld [vmem:[#allocation2 + $0x150] sm:$0xff] }
 0x21e   :  { %4905 = vxpose.xlu1.b32.cont [7/16] (narrow) %v7770_v17, 8  ;;  %v1400_v17 = vld [vmem:[#allocation2 + $0x50] sm:$0xff] }
 0x220   :  { %4849 = vxpose.xlu2.b32.end [16/16] (narrow) %v6715_v1, 8 }
 0x223   :  { %4868 = vxpose.xlu0.b32.cont [7/16] (narrow) %v7771_v15, 8  ;;  %v1416_v15 = vld [vmem:[#allocation2 + $0x110] sm:$0xff] }
 0x226   :  { %4907 = vxpose.xlu1.b32.cont [8/16] (narrow) %v7772_v39, 8  ;;  %v4972_v39 = vpack.i.bf16 %v1416_v15, %v1400_v17  ;;  %v1591_v17 = vld [vmem:[#allocation2 + $0x49] sm:$0xff] }
 0x227   :  { %v1607_v15 = vld [vmem:[#allocation2 + $0x109] sm:$0xff] }
 0x228   :  { %4930 = vxpose.xlu2.b32.start [1/16] (narrow) %v7773_v57, 8  ;;  %v1433_v57 = vld [vmem:[#allocation2 + $0x210] sm:$0xff] }
 0x22b   :  { %4870 = vxpose.xlu0.b32.cont [8/16] (narrow) %v7774_v54, 8  ;;  %v1449_v54 = vld [vmem:[#allocation2 + $0x2d0] sm:$0xff] }
 0x22e   :  { %4909 = vxpose.xlu1.b32.cont [9/16] (narrow) %v7775_v30, 8  ;;  %v1401_v30 = vld [vmem:[#allocation2 + $0x60] sm:$0xff] }
 0x230   :  { %4932 = vxpose.xlu2.b32.cont [2/16] (narrow) %v7776_v3, 8  ;;  %v1417_v3 = vld [vmem:[#allocation2 + $0x120] sm:$0xff] }
 0x233   :  { %4872 = vxpose.xlu0.b32.cont [9/16] (narrow) %v7777_v10, 8  ;;  %v4974_v10 = vpack.i.bf16 %v1417_v3, %v1401_v30  ;;  %v1439_v30 = vld [vmem:[#allocation2 + $0x258] sm:$0xff] }
 0x234   :  { %v1455_v3 = vld [vmem:[#allocation2 + $0x318] sm:$0xff] }
 0x236   :  { %4911 = vxpose.xlu1.b32.cont [10/16] (narrow) %v7778_v47, 8  ;;  %v1434_v47 = vld [vmem:[#allocation2 + $0x218] sm:$0xff] }
 0x238   :  { %4934 = vxpose.xlu2.b32.cont [3/16] (narrow) %v7779_v36, 8  ;;  %v1450_v36 = vld [vmem:[#allocation2 + $0x2d8] sm:$0xff] }
 0x23b   :  { %4874 = vxpose.xlu0.b32.cont [10/16] (narrow) %v7780_v45, 8  ;;  %v6766_v45 = vld [vmem:[#allocation2 + $0x272] sm:$0xff] }
 0x23e   :  { %4913 = vxpose.xlu1.b32.cont [11/16] (narrow) %v7781_v56, 8  ;;  %v6768_v56 = vld [vmem:[#allocation2 + $0x332] sm:$0xff] }
 0x240   :  { %4936 = vxpose.xlu2.b32.cont [4/16] (narrow) %v7782_v21, 8  ;;  %v1402_v21 = vld [vmem:[#allocation2 + $0x68] sm:$0xff] }
 0x243   :  { %4876 = vxpose.xlu0.b32.cont [11/16] (narrow) %v7783_v33, 8  ;;  %v1418_v33 = vld [vmem:[#allocation2 + $0x128] sm:$0xff] }
 0x246   :  { %4915 = vxpose.xlu1.b32.cont [12/16] (narrow) %v7784_v41, 8  ;;  %v4976_v41 = vpack.i.bf16 %v1418_v33, %v1402_v21  ;;  %v1423_v21 = vld [vmem:[#allocation2 + $0x168] sm:$0xff] }
 0x248   :  { %4938 = vxpose.xlu2.b32.cont [5/16] (narrow) %v7785_v27, 8  ;;  %v1435_v27 = vld [vmem:[#allocation2 + $0x228] sm:$0xff] }
 0x24b   :  { %4878 = vxpose.xlu0.b32.cont [12/16] (narrow) %v7786_v34, 8  ;;  %v1451_v34 = vld [vmem:[#allocation2 + $0x2e8] sm:$0xff] }
 0x24e   :  { %4917 = vxpose.xlu1.b32.cont [13/16] (narrow) %v6578_v7, 8  ;;  %v6747_v7 = vpack.i.bf16 %v1074_v62, %v1058_v59  ;;  %v6772_v59 = vld [vmem:[#allocation2 + $0x27a] sm:$0xff] }
 0x24f   :  { %v1403_v62 = vld [vmem:[#allocation2 + $0x78] sm:$0xff] }
 0x250   :  { %4940 = vxpose.xlu2.b32.cont [6/16] (narrow) %v6581_v18, 8  ;;  %v6749_v18 = vld [vmem:[#allocation2 + $0xca] sm:$0xff] }
 0x253   :  { %4880 = vxpose.xlu0.b32.cont [13/16] (narrow) %v6584_v26, 8  ;;  %v6751_v26 = vld [vmem:[#allocation2 + $0x18a] sm:$0xff] }
 0x256   :  { %4919 = vxpose.xlu1.b32.cont [14/16] (narrow) %v6587_v23, 8  ;;  %v4922_v23 = vpack.i.bf16 %v6751_v26, %v6749_v18 }
 0x258   :  { %4942 = vxpose.xlu2.b32.cont [7/16] (narrow) %v6590_v35, 8  ;;  %v1059_v35 = vld [vmem:[#allocation2 + $0x279] sm:$0xff] }
 0x25b   :  { %4882 = vxpose.xlu0.b32.cont [14/16] (narrow) %v6593_v4, 8  ;;  %v6757_v4 = vpack.i.bf16 %v1075_v16, %v1059_v35 }
 0x25e   :  { %4921 = vxpose.xlu1.b32.cont [15/16] (narrow) %v4920_v52, 8  ;;  %v5015_v52 = vpack.i.bf16 %v1451_v34, %v1435_v27  ;;  %v1456_v27 = vld [vmem:[#allocation2 + $0x320] sm:$0xff] }
 0x260   :  { %4944 = vxpose.xlu2.b32.cont [8/16] (narrow) %v6597_v14, 8  ;;  %v4966_v14 = vpack.i.bf16 %v1413_v12, %v1397_v50  ;;  %v1589_v50 = vld [vmem:[#allocation2 + $0x31] sm:$0xff] }
 0x261   :  { %v1605_v12 = vld [vmem:[#allocation2 + $0xf1] sm:$0xff] }
 0x262   :  { %v5040_v31 = vpack.i.bf16 %v1605_v12, %v1589_v50  ;;  %v1595_v12 = vld [vmem:[#allocation2 + $0x79] sm:$0xff] }
 0x263   :  { %4884 = vxpose.xlu0.b32.cont [15/16] (narrow) %v6747_v7, 8 }
 0x266   :  { %4923 = vxpose.xlu1.b32.end [16/16] (narrow) %v4922_v23, 8  ;;  %v1419_v23 = vld [vmem:[#allocation2 + $0x138] sm:$0xff] }
 0x267   :  { %v4978_v16 = vpack.i.bf16 %v1419_v23, %v1403_v62  ;;  %v1609_v62 = vld [vmem:[#allocation2 + $0x121] sm:$0xff]  ;;  %v1408_v23 = vld [vmem:[#allocation2 + $0xb0] sm:$0xff] }
 0x268   :  { %4946 = vxpose.xlu2.b32.cont [9/16] (narrow) %v6602_v49, 8  ;;  %v5007_v49 = vpack.i.bf16 %v1447_v9, %v1431_v6  ;;  %v1590_v6 = vld [vmem:[#allocation2 + $0x39] sm:$0xff] }
 0x269   :  { %v1606_v9 = vld [vmem:[#allocation2 + $0xf9] sm:$0xff] }
 0x26a   :  { %v5042_v43 = vpack.i.bf16 %v1606_v9, %v1590_v6  ;;  %v1411_v6 = vld [vmem:[#allocation2 + $0xd8] sm:$0xff] }
 0x26b   :  { %4886 = vxpose.xlu0.b32.end [16/16] (narrow) %v6757_v4, 8  ;;  %v1427_v9 = vld [vmem:[#allocation2 + $0x198] sm:$0xff] }
 0x26e   :  { %5004 = vxpose.xlu1.b32.start [1/16] (narrow) %v5003_v55, 8  ;;  %v5017_v55 = vpack.i.bf16 %v1452_v32, %v1436_v22  ;;  %v1594_v32 = vld [vmem:[#allocation2 + $0x69] sm:$0xff] }
 0x270   :  { %4948 = vxpose.xlu2.b32.cont [10/16] (narrow) %v6607_v11, 8  ;;  %v5009_v11 = vpack.i.bf16 %v1448_v58, %v1432_v53  ;;  %v1438_v53 = vld [vmem:[#allocation2 + $0x248] sm:$0xff] }
 0x271   :  { %v1454_v58 = vld [vmem:[#allocation2 + $0x308] sm:$0xff] }
 0x273   :  { %4967 = vxpose.xlu0.b32.start [1/16] (narrow) %v4966_v14, 8  ;;  %v1404_v14 = vld [vmem:[#allocation2 + $0x80] sm:$0xff] }
 0x276   :  { %5006 = vxpose.xlu1.b32.cont [2/16] (narrow) %v5005_v24, 8  ;;  %v4980_v24 = vpack.i.bf16 %v1420_v44, %v1404_v14  ;;  %v1611_v14 = vld [vmem:[#allocation2 + $0x139] sm:$0xff] }
 0x277   :  { %v5052_v44 = vpack.i.bf16 %v1611_v14, %v1595_v12  ;;  %v1641_v12 = vld [vmem:[#allocation2 + $0x2d1] sm:$0xff] }
 0x278   :  { %4950 = vxpose.xlu2.b32.cont [11/16] (narrow) %v6612_v13, 8  ;;  %v5011_v13 = vpack.i.bf16 %v1449_v54, %v1433_v57  ;;  %v1422_v57 = vld [vmem:[#allocation2 + $0x158] sm:$0xff]  ;;  %v5044_v54 = vpack.i.bf16 %v1607_v15, %v1591_v17 }
 0x279   :  { %v1598_v15 = vld [vmem:[#allocation2 + $0x99] sm:$0xff] }
 0x27b   :  { %4969 = vxpose.xlu0.b32.cont [2/16] (narrow) %v4968_v51, 8  ;;  %v5019_v51 = vpack.i.bf16 %v1453_v8, %v1437_v40  ;;  %v1596_v8 = vld [vmem:[#allocation2 + $0x81] sm:$0xff] }
 0x27e   :  { %5008 = vxpose.xlu1.b32.cont [3/16] (narrow) %v5007_v49, 8  ;;  %v1405_v49 = vld [vmem:[#allocation2 + $0x90] sm:$0xff] }
 0x280   :  { %4952 = vxpose.xlu2.b32.cont [12/16] (narrow) %v6617_v37, 8  ;;  %v5013_v37 = vpack.i.bf16 %v1450_v36, %v1434_v47  ;;  %v1592_v47 = vld [vmem:[#allocation2 + $0x51] sm:$0xff] }
 0x281   :  { %v1608_v36 = vld [vmem:[#allocation2 + $0x111] sm:$0xff] }
 0x282   :  { %v5046_v33 = vpack.i.bf16 %v1608_v36, %v1592_v47  ;;  %v1615_v47 = vld [vmem:[#allocation2 + $0x169] sm:$0xff] }
 0x283   :  { %4971 = vxpose.xlu0.b32.cont [3/16] (narrow) %v4970_v63, 8  ;;  %v4982_v63 = vpack.i.bf16 %v1421_v46, %v1405_v49  ;;  %v1444_v46 = vld [vmem:[#allocation2 + $0x290] sm:$0xff] }
 0x284   :  { %v1622_v36 = vld [vmem:[#allocation2 + $0x1e9] sm:$0xff] }
 0x286   :  { %5010 = vxpose.xlu1.b32.cont [4/16] (narrow) %v5009_v11, 8  ;;  %v5021_v11 = vpack.i.bf16 %v1454_v58, %v1438_v53  ;;  %v1412_v53 = vld [vmem:[#allocation2 + $0xe0] sm:$0xff] }
 0x287   :  { %v1428_v58 = vld [vmem:[#allocation2 + $0x1a0] sm:$0xff] }
 0x288   :  { %4954 = vxpose.xlu2.b32.cont [13/16] (narrow) %v6622_v19, 8  ;;  %v4957_v19 = vpack.i.bf16 %v6768_v56, %v6766_v45  ;;  %v4996_v17 = vpack.i.bf16 %v1428_v58, %v1412_v53  ;;  %v1797_v53 = vld [vmem:[#allocation2 + $0xf2] sm:$0xff] }
 0x28b   :  { %4973 = vxpose.xlu0.b32.cont [4/16] (narrow) %v4972_v39, 8  ;;  %v1406_v39 = vld [vmem:[#allocation2 + $0x98] sm:$0xff] }
 0x28e   :  { %5012 = vxpose.xlu1.b32.cont [5/16] (narrow) %v5011_v13, 8  ;;  %v4984_v13 = vpack.i.bf16 %v1422_v57, %v1406_v39  ;;  %v1614_v39 = vld [vmem:[#allocation2 + $0x159] sm:$0xff]  ;;  %v1621_v57 = vld [vmem:[#allocation2 + $0x1e1] sm:$0xff] }
 0x290   :  { %4956 = vxpose.xlu2.b32.cont [14/16] (narrow) %v6627_v61, 8  ;;  %v6774_v61 = vld [vmem:[#allocation2 + $0x33a] sm:$0xff] }
 0x291   :  { %v4959_v35 = vpack.i.bf16 %v6774_v61, %v6772_v59 }
 0x293   :  { %4975 = vxpose.xlu0.b32.cont [5/16] (narrow) %v4974_v10, 8  ;;  %v5023_v10 = vpack.i.bf16 %v1455_v3, %v1439_v30  ;;  %v1782_v3 = vld [vmem:[#allocation2 + $0x3a] sm:$0xff] }
 0x296   :  { %5014 = vxpose.xlu1.b32.cont [6/16] (narrow) %v5013_v37, 8  ;;  %v1407_v37 = vld [vmem:[#allocation2 + $0xa8] sm:$0xff] }
 0x298   :  { %4958 = vxpose.xlu2.b32.cont [15/16] (narrow) %v4957_v19, 8  ;;  %v4986_v19 = vpack.i.bf16 %v1423_v21, %v1407_v37  ;;  %v1638_v37 = vld [vmem:[#allocation2 + $0x2a9] sm:$0xff] }
 0x29b   :  { %4977 = vxpose.xlu0.b32.cont [6/16] (narrow) %v4976_v41, 8  ;;  %v1440_v41 = vld [vmem:[#allocation2 + $0x260] sm:$0xff] }
 0x29c   :  { %v5025_v34 = vpack.i.bf16 %v1456_v27, %v1440_v41  ;;  %v1600_v41 = vld [vmem:[#allocation2 + $0xb1] sm:$0xff] }
 0x29d   :  { %v1616_v27 = vld [vmem:[#allocation2 + $0x171] sm:$0xff] }
 0x29e   :  { %5016 = vxpose.xlu1.b32.cont [7/16] (narrow) %v5015_v52, 8  ;;  %v1593_v52 = vld [vmem:[#allocation2 + $0x61] sm:$0xff] }
 0x2a0   :  { %4960 = vxpose.xlu2.b32.end [16/16] (narrow) %v4959_v35, 8  ;;  %v1424_v35 = vld [vmem:[#allocation2 + $0x170] sm:$0xff] }
 0x2a1   :  { %v4988_v22 = vpack.i.bf16 %v1424_v35, %v1408_v23  ;;  %v1784_v35 = vld [vmem:[#allocation2 + $0x52] sm:$0xff] }
 0x2a3   :  { %4979 = vxpose.xlu0.b32.cont [7/16] (narrow) %v4978_v16, 8  ;;  %v5048_v16 = vpack.i.bf16 %v1609_v62, %v1593_v52  ;;  %v1639_v52 = vld [vmem:[#allocation2 + $0x2b9] sm:$0xff]  ;;  %v5062_v62 = vpack.i.bf16 %v1616_v27, %v1600_v41  ;;  %v1648_v41 = vld [vmem:[#allocation2 + $0x321] sm:$0xff] }
 0x2a4   :  { %v1801_v27 = vld [vmem:[#allocation2 + $0x122] sm:$0xff] }
 0x2a6   :  { %5018 = vxpose.xlu1.b32.cont [8/16] (narrow) %v5017_v55, 8  ;;  %v1610_v55 = vld [vmem:[#allocation2 + $0x129] sm:$0xff] }
 0x2a7   :  { %v5050_v50 = vpack.i.bf16 %v1610_v55, %v1594_v32  ;;  %v1785_v55 = vld [vmem:[#allocation2 + $0x62] sm:$0xff] }
 0x2a8   :  { %5041 = vxpose.xlu2.b32.start [1/16] (narrow) %v5040_v31, 8  ;;  %v1443_v31 = vld [vmem:[#allocation2 + $0x288] sm:$0xff] }
 0x2ab   :  { %4981 = vxpose.xlu0.b32.cont [8/16] (narrow) %v4980_v24, 8  ;;  %v1459_v24 = vld [vmem:[#allocation2 + $0x348] sm:$0xff] }
 0x2ac   :  { %v5031_v40 = vpack.i.bf16 %v1459_v24, %v1443_v31  ;;  %v1603_v31 = vld [vmem:[#allocation2 + $0xd9] sm:$0xff] }
 0x2ad   :  { %v1619_v24 = vld [vmem:[#allocation2 + $0x199] sm:$0xff] }
 0x2ae   :  { %5020 = vxpose.xlu1.b32.cont [9/16] (narrow) %v5019_v51, 8  ;;  %v1612_v51 = vld [vmem:[#allocation2 + $0x141] sm:$0xff] }
 0x2af   :  { %v5054_v49 = vpack.i.bf16 %v1612_v51, %v1596_v8  ;;  %v1642_v8 = vld [vmem:[#allocation2 + $0x2d9] sm:$0xff]  ;;  %v5068_v51 = vpack.i.bf16 %v1619_v24, %v1603_v31  ;;  %v1807_v31 = vld [vmem:[#allocation2 + $0x16a] sm:$0xff] }
 0x2b0   :  { %5043 = vxpose.xlu2.b32.cont [2/16] (narrow) %v5042_v43, 8  ;;  %v1814_v24 = vld [vmem:[#allocation2 + $0x1ea] sm:$0xff] }
 0x2b3   :  { %4983 = vxpose.xlu0.b32.cont [9/16] (narrow) %v4982_v63, 8  ;;  %v1597_v63 = vld [vmem:[#allocation2 + $0x91] sm:$0xff] }
 0x2b6   :  { %5022 = vxpose.xlu1.b32.cont [10/16] (narrow) %v5021_v11, 8 }
 0x2b8   :  { %5045 = vxpose.xlu2.b32.cont [3/16] (narrow) %v5044_v54, 8  ;;  %v1637_v54 = vld [vmem:[#allocation2 + $0x2a1] sm:$0xff] }
 0x2b9   :  { %v5077_v30 = vpack.i.bf16 %v1637_v54, %v1621_v57  ;;  %v1790_v57 = vld [vmem:[#allocation2 + $0x9a] sm:$0xff]  ;;  %v1630_v54 = vld [vmem:[#allocation2 + $0x249] sm:$0xff] }
 0x2bb   :  { %4985 = vxpose.xlu0.b32.cont [10/16] (narrow) %v4984_v13, 8  ;;  %v5058_v13 = vpack.i.bf16 %v1614_v39, %v1598_v15  ;;  %v1798_v15 = vld [vmem:[#allocation2 + $0xfa] sm:$0xff] }
 0x2be   :  { %5024 = vxpose.xlu1.b32.cont [11/16] (narrow) %v5023_v10, 8  ;;  %v1599_v10 = vld [vmem:[#allocation2 + $0xa9] sm:$0xff] }
 0x2bf   :  { %v5060_v21 = vpack.i.bf16 %v1615_v47, %v1599_v10  ;;  %v1791_v10 = vld [vmem:[#allocation2 + $0xaa] sm:$0xff]  ;;  %v1631_v47 = vld [vmem:[#allocation2 + $0x259] sm:$0xff] }
 0x2c0   :  { %5047 = vxpose.xlu2.b32.cont [4/16] (narrow) %v5046_v33, 8  ;;  %v5079_v33 = vpack.i.bf16 %v1638_v37, %v1622_v36  ;;  %v1647_v36 = vld [vmem:[#allocation2 + $0x319] sm:$0xff] }
 0x2c1   :  { %v1800_v37 = vld [vmem:[#allocation2 + $0x112] sm:$0xff] }
 0x2c3   :  { %4987 = vxpose.xlu0.b32.cont [11/16] (narrow) %v4986_v19, 8  ;;  %v1783_v19 = vld [vmem:[#allocation2 + $0x4a] sm:$0xff] }
 0x2c6   :  { %5026 = vxpose.xlu1.b32.cont [12/16] (narrow) %v5025_v34, 8  ;;  %v1623_v34 = vld [vmem:[#allocation2 + $0x1f9] sm:$0xff] }
 0x2c7   :  { %v5081_v23 = vpack.i.bf16 %v1639_v52, %v1623_v34  ;;  %v1802_v52 = vld [vmem:[#allocation2 + $0x12a] sm:$0xff] }
 0x2c8   :  { %5049 = vxpose.xlu2.b32.cont [5/16] (narrow) %v5048_v16, 8  ;;  %v1624_v16 = vld [vmem:[#allocation2 + $0x201] sm:$0xff] }
 0x2cb   :  { %4989 = vxpose.xlu0.b32.cont [12/16] (narrow) %v4988_v22, 8  ;;  %v1640_v22 = vld [vmem:[#allocation2 + $0x2c1] sm:$0xff] }
 0x2cc   :  { %v5083_v32 = vpack.i.bf16 %v1640_v22, %v1624_v16  ;;  %v1651_v16 = vld [vmem:[#allocation2 + $0x349] sm:$0xff] }
 0x2cd   :  { %v1804_v22 = vld [vmem:[#allocation2 + $0x142] sm:$0xff] }
 0x2ce   :  { %5028 = vxpose.xlu1.b32.cont [13/16] (narrow) %v6680_v28, 8  ;;  %v4994_v28 = vpack.i.bf16 %v1427_v9, %v1411_v6  ;;  %v1604_v9 = vld [vmem:[#allocation2 + $0xe1] sm:$0xff] }
 0x2d0   :  { %5051 = vxpose.xlu2.b32.cont [6/16] (narrow) %v5050_v50, 8  ;;  %v1625_v50 = vld [vmem:[#allocation2 + $0x211] sm:$0xff] }
 0x2d1   :  { %v5085_v14 = vpack.i.bf16 %v1641_v12, %v1625_v50  ;;  %v1652_v50 = vld [vmem:[#allocation2 + $0x351] sm:$0xff] }
 0x2d2   :  { %v1805_v12 = vld [vmem:[#allocation2 + $0x152] sm:$0xff] }
 0x2d3   :  { %4991 = vxpose.xlu0.b32.cont [13/16] (narrow) %v6684_v2, 8  ;;  %v1460_v2 = vld [vmem:[#allocation2 + $0x350] sm:$0xff] }
 0x2d4   :  { %v5033_v43 = vpack.i.bf16 %v1460_v2, %v1444_v46  ;;  %v1643_v46 = vld [vmem:[#allocation2 + $0x2e9] sm:$0xff] }
 0x2d6   :  { %5030 = vxpose.xlu1.b32.cont [14/16] (narrow) %v6687_v20, 8  ;;  %v1613_v20 = vld [vmem:[#allocation2 + $0x151] sm:$0xff] }
 0x2d7   :  { %v5056_v11 = vpack.i.bf16 %v1613_v20, %v1597_v63  ;;  %v1628_v63 = vld [vmem:[#allocation2 + $0x231] sm:$0xff] }
 0x2d8   :  { %5053 = vxpose.xlu2.b32.cont [7/16] (narrow) %v5052_v44, 8  ;;  %v1786_v44 = vld [vmem:[#allocation2 + $0x6a] sm:$0xff] }
 0x2d9   :  { %v1644_v20 = vld [vmem:[#allocation2 + $0x2f1] sm:$0xff] }
 0x2da   :  { %v5091_v58 = vpack.i.bf16 %v1644_v20, %v1628_v63  ;;  %v1835_v63 = vld [vmem:[#allocation2 + $0x2ea] sm:$0xff]  ;;  %v6794_v20 = vpop.trf.xlu0 }
 0x2db   :  { %4993 = vxpose.xlu0.b32.cont [14/16] (narrow) %v6691_v0, 8  ;;  %v1781_v0 = vld [vmem:[#allocation2 + $0x32] sm:$0xff] }
 0x2de   :  { %5032 = vxpose.xlu1.b32.cont [15/16] (narrow) %v5031_v40, 8  ;;  %v1626_v40 = vld [vmem:[#allocation2 + $0x219] sm:$0xff] }
 0x2df   :  { %v5087_v6 = vpack.i.bf16 %v1642_v8, %v1626_v40  ;;  %v1831_v40 = vld [vmem:[#allocation2 + $0x2ba] sm:$0xff]  ;;  %v1808_v8 = vld [vmem:[#allocation2 + $0x172] sm:$0xff] }
 0x2e0   :  { %5055 = vxpose.xlu2.b32.cont [8/16] (narrow) %v5054_v49, 8  ;;  %v1620_v49 = vld [vmem:[#allocation2 + $0x1a1] sm:$0xff] }
 0x2e1   :  { %v5070_v2 = vpack.i.bf16 %v1620_v49, %v1604_v9  ;;  %v1833_v9 = vld [vmem:[#allocation2 + $0x2d2] sm:$0xff] }
 0x2e2   :  { %v1817_v49 = vld [vmem:[#allocation2 + $0x212] sm:$0xff] }
 0x2e3   :  { %4995 = vxpose.xlu0.b32.cont [15/16] (narrow) %v4994_v28, 8  ;;  %v1627_v28 = vld [vmem:[#allocation2 + $0x229] sm:$0xff] }
 0x2e6   :  { %5034 = vxpose.xlu1.b32.end [16/16] (narrow) %v5033_v43, 8  ;;  %v5089_v43 = vpack.i.bf16 %v1643_v46, %v1627_v28  ;;  %v1834_v28 = vld [vmem:[#allocation2 + $0x2da] sm:$0xff]  ;;  %v6790_v46 = vpop.trf.xlu1 }
 0x2e8   :  { %5057 = vxpose.xlu2.b32.cont [9/16] (narrow) %v5056_v11, 8  ;;  %v1789_v11 = vld [vmem:[#allocation2 + $0x92] sm:$0xff] }
 0x2eb   :  { %4997 = vxpose.xlu0.b32.end [16/16] (narrow) %v4996_v17, 8  ;;  %v1629_v17 = vld [vmem:[#allocation2 + $0x241] sm:$0xff] }
 0x2ee   :  { %1845 = vxpose.xlu1.b32.start [1/16] (narrow) %v1781_v0, 8  ;;  %v1645_v0 = vld [vmem:[#allocation2 + $0x301] sm:$0xff] }
 0x2ef   :  { %v5093_v39 = vpack.i.bf16 %v1645_v0, %v1629_v17  ;;  %v6800_v17 = vpop.trf.xlu0 }
 0x2f0   :  { %5059 = vxpose.xlu2.b32.cont [10/16] (narrow) %v5058_v13, 8  ;;  %v1646_v13 = vld [vmem:[#allocation2 + $0x309] sm:$0xff] }
 0x2f3   :  { %5078 = vxpose.xlu0.b32.start [1/16] (narrow) %v5077_v30, 8  ;;  %v1799_v30 = vld [vmem:[#allocation2 + $0x10a] sm:$0xff] }
 0x2f6   :  { %1846 = vxpose.xlu1.b32.cont [2/16] (narrow) %v1782_v3, 8  ;;  %v5095_v3 = vpack.i.bf16 %v1646_v13, %v1630_v54 }
 0x2f7   :  { %v4776_v54 = vpop.trf.xlu0 }
 0x2f8   :  { %5061 = vxpose.xlu2.b32.cont [11/16] (narrow) %v5060_v21, 8  ;;  %v5097_v21 = vpack.i.bf16 %v1647_v36, %v1631_v47 }
 0x2fb   :  { %5080 = vxpose.xlu0.b32.cont [2/16] (narrow) %v5079_v33, 8  ;;  %v1792_v33 = vld [vmem:[#allocation2 + $0xb2] sm:$0xff] }
 0x2fe   :  { %1847 = vxpose.xlu1.b32.cont [3/16] (narrow) %v1783_v19, 8  ;;  %v1632_v19 = vld [vmem:[#allocation2 + $0x261] sm:$0xff] }
 0x2ff   :  { %v5099_v34 = vpack.i.bf16 %v1648_v41, %v1632_v19  ;;  %v6806_v47 = vpop.trf.xlu0 }
 0x300   :  { %5063 = vxpose.xlu2.b32.cont [12/16] (narrow) %v5062_v62, 8  ;;  %v1803_v62 = vld [vmem:[#allocation2 + $0x13a] sm:$0xff] }
 0x303   :  { %5082 = vxpose.xlu0.b32.cont [3/16] (narrow) %v5081_v23, 8  ;;  %v1795_v23 = vld [vmem:[#allocation2 + $0xda] sm:$0xff] }
 0x306   :  { %1848 = vxpose.xlu1.b32.cont [4/16] (narrow) %v1784_v35, 8  ;;  %v1635_v35 = vld [vmem:[#allocation2 + $0x289] sm:$0xff] }
 0x308   :  { %5065 = vxpose.xlu2.b32.cont [13/16] (narrow) %v6710_v60, 8  ;;  %v1787_v60 = vld [vmem:[#allocation2 + $0x7a] sm:$0xff] }
 0x30b   :  { %5084 = vxpose.xlu0.b32.cont [4/16] (narrow) %v5083_v32, 8  ;;  %v5105_v32 = vpack.i.bf16 %v1651_v16, %v1635_v35 }
 0x30e   :  { %1849 = vxpose.xlu1.b32.cont [5/16] (narrow) %v1785_v55, 8  ;;  %v1796_v55 = vld [vmem:[#allocation2 + $0xe2] sm:$0xff] }
 0x310   :  { %5067 = vxpose.xlu2.b32.cont [14/16] (narrow) %v6715_v1, 8  ;;  %v1788_v1 = vld [vmem:[#allocation2 + $0x82] sm:$0xff] }
 0x313   :  { %5086 = vxpose.xlu0.b32.cont [5/16] (narrow) %v5085_v14, 8  ;;  %v1806_v14 = vld [vmem:[#allocation2 + $0x15a] sm:$0xff] }
 0x316   :  { %1850 = vxpose.xlu1.b32.cont [6/16] (narrow) %v1786_v44, 8  ;;  %v1830_v44 = vld [vmem:[#allocation2 + $0x2aa] sm:$0xff] }
 0x317   :  { %v4998_v19 = vpop.trf.xlu0 }
 0x318   :  { %5069 = vxpose.xlu2.b32.cont [15/16] (narrow) %v5068_v51, 8  ;;  %v1815_v51 = vld [vmem:[#allocation2 + $0x1fa] sm:$0xff]  ;;  %v4999_v35 = vunpack.i.l.bf16 %v4998_v19 }
 0x31b   :  { %5088 = vxpose.xlu0.b32.cont [6/16] (narrow) %v5087_v6, 8  ;;  %v1832_v6 = vld [vmem:[#allocation2 + $0x2c2] sm:$0xff] }
 0x31e   :  { %1851 = vxpose.xlu1.b32.cont [7/16] (narrow) %v1787_v60, 8  ;;  %v1816_v60 = vld [vmem:[#allocation2 + $0x202] sm:$0xff] }
 0x320   :  { %5071 = vxpose.xlu2.b32.end [16/16] (narrow) %v5070_v2, 8  ;;  %v6792_v2 = vpop.trf.xlu2 }
 0x323   :  { %5090 = vxpose.xlu0.b32.cont [7/16] (narrow) %v5089_v43, 8  ;;  %v1811_v43 = vld [vmem:[#allocation2 + $0x19a] sm:$0xff] }
 0x326   :  { %1852 = vxpose.xlu1.b32.cont [8/16] (narrow) %v1788_v1, 8  ;;  %v1818_v1 = vld [vmem:[#allocation2 + $0x21a] sm:$0xff] }
 0x328   :  { %1877 = vxpose.xlu2.b32.start [1/16] (narrow) %v1797_v53, 8  ;;  %v6798_v53 = vpop.trf.xlu2 }
 0x32b   :  { %5092 = vxpose.xlu0.b32.cont [8/16] (narrow) %v5091_v58, 8  ;;  %v1819_v58 = vld [vmem:[#allocation2 + $0x22a] sm:$0xff] }
 0x32e   :  { %1853 = vxpose.xlu1.b32.cont [9/16] (narrow) %v1789_v11, 8  ;;  %v1836_v11 = vld [vmem:[#allocation2 + $0x2f2] sm:$0xff] }
 0x330   :  { %1878 = vxpose.xlu2.b32.cont [2/16] (narrow) %v1798_v15, 8  ;;  %v4850_v15 = vpop.trf.xlu2 }
 0x333   :  { %5094 = vxpose.xlu0.b32.cont [9/16] (narrow) %v5093_v39, 8  ;;  %v1820_v39 = vld [vmem:[#allocation2 + $0x232] sm:$0xff] }
 0x336   :  { %1854 = vxpose.xlu1.b32.cont [10/16] (narrow) %v1790_v57, 8  ;;  %v1837_v57 = vld [vmem:[#allocation2 + $0x302] sm:$0xff] }
 0x338   :  { %1879 = vxpose.xlu2.b32.cont [3/16] (narrow) %v1799_v30, 8  ;;  %v6804_v30 = vpop.trf.xlu2 }
 0x33b   :  { %5096 = vxpose.xlu0.b32.cont [10/16] (narrow) %v5095_v3, 8  ;;  %v1821_v3 = vld [vmem:[#allocation2 + $0x242] sm:$0xff] }
 0x33e   :  { %1855 = vxpose.xlu1.b32.cont [11/16] (narrow) %v1791_v10, 8  ;;  %v1838_v10 = vld [vmem:[#allocation2 + $0x30a] sm:$0xff] }
 0x340   :  { %1880 = vxpose.xlu2.b32.cont [4/16] (narrow) %v1800_v37, 8 }
 0x341   :  { %v5072_v37 = vpop.trf.xlu2 }
 0x343   :  { %5098 = vxpose.xlu0.b32.cont [11/16] (narrow) %v5097_v21, 8  ;;  %v1822_v21 = vld [vmem:[#allocation2 + $0x24a] sm:$0xff] }
 0x346   :  { %1856 = vxpose.xlu1.b32.cont [12/16] (narrow) %v1792_v33, 8  ;;  %v1839_v33 = vld [vmem:[#allocation2 + $0x31a] sm:$0xff] }
 0x348   :  { %1881 = vxpose.xlu2.b32.cont [5/16] (narrow) %v1801_v27, 8  ;;  %v1823_v27 = vld [vmem:[#allocation2 + $0x25a] sm:$0xff] }
 0x34b   :  { %5100 = vxpose.xlu0.b32.cont [12/16] (narrow) %v5099_v34, 8  ;;  %v5073_v34 = vunpack.i.l.bf16 %v5072_v37 }
 0x34e   :  { %1857 = vxpose.xlu1.b32.cont [13/16] (narrow) %v6739_v42, 8  ;;  %v1636_v42 = vld [vmem:[#allocation2 + $0x291] sm:$0xff] }
 0x350   :  { %1882 = vxpose.xlu2.b32.cont [6/16] (narrow) %v1802_v52, 8  ;;  %v5076_v52 = vunpack.i.h.bf16 %v5072_v37 }
 0x352   :  { %v2014_v16 = vrot.slane %v5076_v52, 4  ;;  %v1827_v52 = vld [vmem:[#allocation2 + $0x28a] sm:$0xff] }
 0x353   :  { %5102 = vxpose.xlu0.b32.cont [13/16] (narrow) %v6747_v7, 8  ;;  %v5107_v7 = vpack.i.bf16 %v1652_v50, %v1636_v42  ;;  %v4851_v42 = vunpack.i.l.bf16 %v4850_v15 }
 0x356   :  { %1858 = vxpose.xlu1.b32.cont [14/16] (narrow) %v6749_v18, 8  ;;  %v1829_v18 = vld [vmem:[#allocation2 + $0x2a2] sm:$0xff] }
 0x358   :  { %1883 = vxpose.xlu2.b32.cont [7/16] (narrow) %v1803_v62, 8 }
 0x35b   :  { %5104 = vxpose.xlu0.b32.cont [14/16] (narrow) %v6757_v4, 8  ;;  %v1813_v4 = vld [vmem:[#allocation2 + $0x1e2] sm:$0xff] }
 0x35e   :  { %1859 = vxpose.xlu1.b32.cont [15/16] (narrow) %v1795_v23, 8  ;;  %v2013_v23 = vrot.slane %v5073_v34, 4 }
 0x360   :  { %1884 = vxpose.xlu2.b32.cont [8/16] (narrow) %v1804_v22, 8  ;;  %v5002_v22 = vunpack.i.h.bf16 %v4998_v19  ;;  %v4740_v19 = vunpack.i.l.bf16 %v6798_v53 }
 0x363   :  { %5106 = vxpose.xlu0.b32.cont [15/16] (narrow) %v5105_v32, 8  ;;  %v1840_v32 = vld [vmem:[#allocation2 + $0x322] sm:$0xff] }
 0x366   :  { %1860 = vxpose.xlu1.b32.end [16/16] (narrow) %v1796_v55, 8 }
 0x368   :  { %1885 = vxpose.xlu2.b32.cont [9/16] (narrow) %v1805_v12, 8  ;;  %v4854_v12 = vunpack.i.h.bf16 %v4850_v15 }
 0x36b   :  { %5108 = vxpose.xlu0.b32.end [16/16] (narrow) %v5107_v7, 8  ;;  %v2034_v7 = vsel %vm2021_vm3, %v4999_v35, %v2013_v23  ;;  %v4891_v23 = vunpack.i.h.bf16 %v6806_v47 }
 0x36e   :  { %1941 = vxpose.xlu1.b32.start [1/16] (narrow) %v1829_v18, 8  ;;  %v2035_v18 = vsel %vm2021_vm3, %v5002_v22, %v2014_v16  ;;  %v1844_v16 = vld [vmem:[#allocation2 + $0x352] sm:$0xff] }
 0x36f   :  { %v1828_v22 = vld [vmem:[#allocation2 + $0x292] sm:$0xff] }
 0x370   :  { %1886 = vxpose.xlu2.b32.cont [10/16] (narrow) %v1806_v14, 8 }
 0x373   :  { %1909 = vxpose.xlu0.b32.start [1/16] (narrow) %v1813_v4, 8  ;;  %v4777_v4 = vunpack.i.l.bf16 %v4776_v54 }
 0x376   :  { %1942 = vxpose.xlu1.b32.cont [2/16] (narrow) %v1830_v44, 8 }
 0x378   :  { %1887 = vxpose.xlu2.b32.cont [11/16] (narrow) %v1807_v31, 8 }
 0x37b   :  { %1910 = vxpose.xlu0.b32.cont [2/16] (narrow) %v1814_v24, 8 }
 0x37e   :  { %1943 = vxpose.xlu1.b32.cont [3/16] (narrow) %v1831_v40, 8  ;;  %v4780_v40 = vunpack.i.h.bf16 %v4776_v54 }
 0x380   :  { %1888 = vxpose.xlu2.b32.cont [12/16] (narrow) %v1808_v8, 8  ;;  %v1989_v8 = vrot.slane %v4777_v4, 4 }
 0x383   :  { %1911 = vxpose.xlu0.b32.cont [3/16] (narrow) %v1815_v51, 8  ;;  %v4555_v51 = vunpack.i.l.bf16 %v6792_v2 }
 0x386   :  { %1944 = vxpose.xlu1.b32.cont [4/16] (narrow) %v1832_v6, 8  ;;  %v4558_v6 = vunpack.i.h.bf16 %v6792_v2  ;;  %v4629_v2 = vunpack.i.l.bf16 %v6800_v17 }
 0x388   :  { %1889 = vxpose.xlu2.b32.cont [13/16] (narrow) %v6741_v48, 8  ;;  %v6796_v48 = vpop.trf.xlu1 }
 0x389   :  { %v4703_v14 = vunpack.i.l.bf16 %v6796_v48  ;;  %v4706_v24 = vunpack.i.h.bf16 %v6796_v48  ;;  %v1978_v48 = vrot.slane %v4558_v6, 4 }
 0x38b   :  { %1912 = vxpose.xlu0.b32.cont [4/16] (narrow) %v1816_v60, 8 }
 0x38e   :  { %1945 = vxpose.xlu1.b32.cont [5/16] (narrow) %v1833_v9, 8 }
 0x390   :  { %1890 = vxpose.xlu2.b32.cont [14/16] (narrow) %v6751_v26, 8  ;;  %v1812_v26 = vld [vmem:[#allocation2 + $0x1a2] sm:$0xff]  ;;  %v6802_v0 = vpop.trf.xlu1 }
 0x391   :  { %v4817_v37 = vunpack.i.h.bf16 %v6802_v0 }
 0x393   :  { %1913 = vxpose.xlu0.b32.cont [5/16] (narrow) %v1817_v49, 8  ;;  %v1990_v49 = vrot.slane %v4780_v40, 4 }
 0x396   :  { %1946 = vxpose.xlu1.b32.cont [6/16] (narrow) %v1834_v28, 8  ;;  %v1824_v28 = vld [vmem:[#allocation2 + $0x262] sm:$0xff] }
 0x398   :  { %1891 = vxpose.xlu2.b32.cont [15/16] (narrow) %v1811_v43, 8  ;;  %v4924_v13 = vpop.trf.xlu1  ;;  %v2026_v43 = vsel %vm2021_vm3, %v4703_v14, %v1989_v8 }
 0x399   :  { %v4925_v55 = vunpack.i.l.bf16 %v4924_v13  ;;  %v4928_v50 = vunpack.i.h.bf16 %v4924_v13  ;;  %v5109_v13 = vpop.trf.xlu0 }
 0x39b   :  { %1914 = vxpose.xlu0.b32.cont [6/16] (narrow) %v1818_v1, 8  ;;  %v2001_v44 = vrot.slane %v4925_v55, 4  ;;  %v2002_v31 = vrot.slane %v4928_v50, 4  ;;  %v1977_v1 = vrot.slane %v4555_v51, 4 }
 0x39d   :  { %v2030_v60 = vsel %vm2021_vm3, %v4851_v42, %v2001_v44  ;;  %v2031_v9 = vsel %vm2021_vm3, %v4854_v12, %v2002_v31  ;;  %v5110_v42 = vunpack.i.l.bf16 %v5109_v13 }
 0x39e   :  { %1947 = vxpose.xlu1.b32.cont [7/16] (narrow) %v1835_v63, 8  ;;  %v4592_v63 = vunpack.i.l.bf16 %v6794_v20 }
 0x3a0   :  { %1892 = vxpose.xlu2.b32.end [16/16] (narrow) %v1812_v26, 8  ;;  %v6808_v36 = vpop.trf.xlu1  ;;  %v2027_v26 = vsel %vm2021_vm3, %v4706_v24, %v1990_v49  ;;  %v2022_v15 = vsel %vm2021_vm3, %v4592_v63, %v1977_v1 }
 0x3a3   :  { %1915 = vxpose.xlu0.b32.cont [7/16] (narrow) %v1819_v58, 8  ;;  %v4595_v58 = vunpack.i.h.bf16 %v6794_v20 }
 0x3a5   :  { %v2023_v54 = vsel %vm2021_vm3, %v4595_v58, %v1978_v48 }
 0x3a6   :  { %1948 = vxpose.xlu1.b32.cont [8/16] (narrow) %v1836_v11, 8  ;;  %v4632_v11 = vunpack.i.h.bf16 %v6800_v17 }
 0x3a8   :  { %v1861_v41 = vpop.trf.xlu1 }
 0x3a9   :  { %4503 = vmatpush.msk.msra.mxu0 %vm2021_vm3, %v1861_v41  ;;  %v1992_v41 = vrot.slane %v4817_v37, 4 }
 0x3ab   :  { %1916 = vxpose.xlu0.b32.cont [8/16] (narrow) %v1820_v39, 8  ;;  %2067 = vmatpush.msra.mxu0 %v2034_v7  ;;  %v4666_v39 = vunpack.i.l.bf16 %v6790_v46  ;;  %v5036_v7 = vunpack.i.l.bf16 %v6808_v36 }
 0x3ad   :  { %2068 = vmatpush.msra.mxu0 %v2030_v60 }
 0x3ae   :  { %1949 = vxpose.xlu1.b32.cont [9/16] (narrow) %v1837_v57, 8  ;;  %v4669_v57 = vunpack.i.h.bf16 %v6790_v46  ;;  %v4814_v46 = vunpack.i.l.bf16 %v6802_v0 }
 0x3af   :  { %2069 = vmatpush.msra.mxu0 %v2026_v43 }
 0x3b1   :  { %2070 = vmatpush.msra.mxu0 %v2022_v15 }
 0x3b3   :  { %1917 = vxpose.xlu0.b32.cont [9/16] (narrow) %v1821_v3, 8  ;;  %v1979_v3 = vrot.slane %v4629_v2, 4 }
 0x3b5   :  { %v2024_v20 = vsel %vm2021_vm3, %v4666_v39, %v1979_v3 }
 0x3b6   :  { %1950 = vxpose.xlu1.b32.cont [10/16] (narrow) %v1838_v10, 8  ;;  %v1980_v10 = vrot.slane %v4632_v11, 4 }
 0x3b8   :  { %v2025_v17 = vsel %vm2021_vm3, %v4669_v57, %v1980_v10  ;;  %v7680_v57 = vmov 0  }
 0x3bb   :  { %1918 = vxpose.xlu0.b32.cont [10/16] (narrow) %v1822_v21, 8  ;;  %v1843_v21 = vld [vmem:[#allocation2 + $0x34a] sm:$0xff] }
 0x3be   :  { %1951 = vxpose.xlu1.b32.cont [11/16] (narrow) %v1839_v33, 8  ;;  %v1991_v33 = vrot.slane %v4814_v46, 4 }
 0x3c1   :  { %v1893_v62 = vpop.trf.xlu2 }
 0x3c2   :  { %4505 = vmatpush.msk.msra.mxu1 %vm2021_vm3, %v1893_v62 }
 0x3c3   :  { %1919 = vxpose.xlu0.b32.cont [11/16] (narrow) %v1823_v27, 8  ;;  %v4743_v27 = vunpack.i.h.bf16 %v6798_v53 }
 0x3c4   :  { %2087 = vmatpush.msra.mxu1 %v2035_v18  ;;  %v2015_v18 = vrot.slane %v5110_v42, 4 }
 0x3c5   :  { %v2029_v34 = vsel %vm2021_vm3, %v4743_v27, %v1992_v41  ;;  %v2161_v27 = vld [vmem:[%s7592_s2] sm:$0xf] }
 0x3c6   :  { %1952 = vxpose.xlu1.b32.cont [12/16] (narrow) %v1840_v32, 8  ;;  %2088 = vmatpush.msra.mxu1 %v2031_v9  ;;  %v5113_v32 = vunpack.i.h.bf16 %v5109_v13  ;;  %v2036_v4 = vsel %vm2021_vm3, %v5036_v7, %v2015_v18 }
 0x3c8   :  { %2089 = vmatpush.msra.mxu1 %v2027_v26  ;;  %v2016_v55 = vrot.slane %v5113_v32, 4 }
 0x3ca   :  { %2090 = vmatpush.msra.mxu1 %v2023_v54 }
 0x3cb   :  { %1920 = vxpose.xlu0.b32.cont [12/16] (narrow) %v1824_v28, 8 }
 0x3ce   :  { %1953 = vxpose.xlu1.b32.cont [13/16] (narrow) %v6768_v56, 8  ;;  %v4962_v56 = vunpack.i.l.bf16 %v6804_v30 }
 0x3d0   :  { %v2003_v0 = vrot.slane %v4962_v56, 4 }
 0x3d3   :  { %1921 = vxpose.xlu0.b32.cont [13/16] (narrow) %v6766_v45, 8  ;;  %v4965_v45 = vunpack.i.h.bf16 %v6804_v30  ;;  %v2038_v30 = vld [vmem:[%s7591_s1] sm:$0xf] }
 0x3d4   :  { %4504 = vmatmul.msk.f32.vlgmr.msra.gmra.mxu0 %vm2039_vm4, %v2038_v30  ;;  %4506 = vmatmul.msk.f32.vlgmr.msra.gmra.mxu1 %vm2039_vm4, %v2038_v30 }
 0x3d5   :  { %v2004_v62 = vrot.slane %v4965_v45, 4 }
 0x3d6   :  { %1954 = vxpose.xlu1.b32.cont [14/16] (narrow) %v6774_v61, 8  ;;  %v2028_v61 = vsel %vm2021_vm3, %v4740_v19, %v1991_v33 }
 0x3d7   :  { %v2033_v53 = vsel %vm2021_vm3, %v4891_v23, %v2004_v62 }
 0x3db   :  { %1922 = vxpose.xlu0.b32.cont [14/16] (narrow) %v6772_v59, 8  ;;  %v4888_v59 = vunpack.i.l.bf16 %v6806_v47  ;;  %v5039_v47 = vunpack.i.h.bf16 %v6808_v36 }
 0x3dd   :  { %v2032_v35 = vsel %vm2021_vm3, %v4888_v59, %v2003_v0  ;;  %v2037_v12 = vsel %vm2021_vm3, %v5039_v47, %v2016_v55 }
 0x3de   :  { %1955 = vxpose.xlu1.b32.cont [15/16] (narrow) %v1843_v21, 8 }
 0x3e3   :  { %1923 = vxpose.xlu0.b32.cont [15/16] (narrow) %v1827_v52, 8 }
 0x3e6   :  { %1956 = vxpose.xlu1.b32.end [16/16] (narrow) %v1844_v16, 8 }
 0x3eb   :  { %1924 = vxpose.xlu0.b32.end [16/16] (narrow) %v1828_v22, 8 }
 0x402   :  { %5114 = vset.pattern.permute.xlu2 %v7680_v57 }
 0x412   :  { %v1957_v50 = vpop.trf.xlu1 }
 0x413   :  { %4509 = vmatpush.msk.msra.mxu3 %vm2021_vm3, %v1957_v50 }
 0x415   :  { %2127 = vmatpush.msra.mxu3 %v2037_v12 }
 0x417   :  { %v1925_v14 = vpop.trf.xlu0  ;;  %2128 = vmatpush.msra.mxu3 %v2033_v53 }
 0x418   :  { %4507 = vmatpush.msk.msra.mxu2 %vm2021_vm3, %v1925_v14 }
 0x419   :  { %2129 = vmatpush.msra.mxu3 %v2029_v34  ;;  %v2174_v34 = vld [vmem:[%s7593_s3] sm:$0xf] }
 0x41a   :  { %2107 = vmatpush.msra.mxu2 %v2036_v4 }
 0x41b   :  { %2130 = vmatpush.msra.mxu3 %v2025_v17 }
 0x41c   :  { %2108 = vmatpush.msra.mxu2 %v2032_v35  ;;  %4510 = vmatmul.msk.f32.vlgmr.msra.gmra.mxu3 %vm2039_vm4, %v2038_v30 }
 0x41e   :  { %2109 = vmatpush.msra.mxu2 %v2028_v61 }
 0x420   :  { %2110 = vmatpush.msra.mxu2 %v2024_v20 }
 0x421   :  { %4508 = vmatmul.msk.f32.vlgmr.msra.gmra.mxu2 %vm2039_vm4, %v2038_v30 }
 0x451   :  { %v2072_v44 = vpop.f32.mrf.mxu0  ;;  %v6861_v36 = vpop.f32.mrf.mxu1 }
 0x452   :  { %v2135_v31 = vsel %vm2021_vm3, %v2072_v44, 0.0  ;;  %v2136_v24 = vsel %vm2021_vm3, %v6861_v36, 0.0  ;;  %v2144_v40 = vmul.f32 %v2072_v44, %v2072_v44  ;;  %v2145_v8 = vmul.f32 %v6861_v36, %v6861_v36  ;;  %5115 = vset.pattern.permute.xlu0 %v7680_v57 }
 0x453   :  { %v2137_v51 = vadd.f32 %v2136_v24, %v2135_v31 }
 0x454   :  { %v2148_v60 = vsel %vm2021_vm3, %v2144_v40, 0.0  ;;  %v2149_v49 = vsel %vm2021_vm3, %v2145_v8, 0.0 }
 0x455   :  { %v2150_v26 = vadd.f32 %v2149_v49, %v2148_v60 }
 0x49f   :  { %v2132_v6 = vpop.f32.mrf.mxu3 }
 0x4a0   :  { %v2140_v1 = vsel %vm2021_vm3, %v2132_v6, 0.0  ;;  %v2147_v58 = vmul.f32 %v2132_v6, %v2132_v6 }
 0x4a2   :  { %v2153_v15 = vsel %vm2021_vm3, %v2147_v58, 0.0 }
 0x4a4   :  { %v2112_v9 = vpop.f32.mrf.mxu2 }
 0x4a5   :  { %v2138_v28 = vsel %vm2021_vm3, %v2112_v9, 0.0  ;;  %v2146_v43 = vmul.f32 %v2112_v9, %v2112_v9 }
 0x4a6   :  { %v2139_v63 = vadd.f32 %v2138_v28, %v2137_v51 }
 0x4a7   :  { %v2151_v2 = vsel %vm2021_vm3, %v2146_v43, 0.0 }
 0x4a8   :  { %v2141_v48 = vadd.f32 %v2140_v1, %v2139_v63  ;;  %v2152_v11 = vadd.f32 %v2151_v2, %v2150_v26 }
 0x4aa   :  { %2142 = vadd.xlane.f32.xlu2 %v2141_v48  ;;  %v2154_v39 = vadd.f32 %v2153_v15, %v2152_v11 }
 0x4b2   :  { %2155 = vadd.xlane.f32.xlu2 %v2154_v39 }
 0x51d   :  { %v2143_v54 = vpop.xlane.xlu2 %2142 }
 0x51e   :  { %v2157_v13 = vmul.f32 0.001953125, %v2143_v54 }
 0x520   :  { %v2159_v10 = vmul.f32 %v2157_v13, %v2157_v13 }
 0x525   :  { %v2156_v3 = vpop.xlane.xlu2 %2155 }
 0x526   :  { %v2158_v20 = vmul.f32 0.001953125, %v2156_v3 }
 0x528   :  { %v2160_v17 = vsub.f32 %v2158_v20, %v2159_v10 }
 0x52a   :  { %v2162_v46 = vadd.f32 1e-05, %v2160_v17 }
 0x52c   :  { %5709 = vrsqrt.f32 %v2162_v46  ;;  %vm2169_vm6 = vweird.f32 %v2162_v46 }
 0x532   :  { %v5710_v37 = vpop.eup %5709 }
 0x533   :  { %v2164_v21 = vmul.f32 %v5710_v37, %v2162_v46  ;;  %vm2170_vm5 = vweird.f32 %v5710_v37 }
 0x534   :  { %vm2171_vm7 = vmor %vm2169_vm6, %vm2170_vm5 }
 0x535   :  { %v2165_v33 = vmul.f32 %v5710_v37, %v2164_v21 }
 0x537   :  { %v2166_v19 = vmul.f32 0.5, %v2165_v33 }
 0x539   :  { %v2167_v41 = vsub.f32 1.5, %v2166_v19 }
 0x53b   :  { %v2168_v56 = vmul.f32 %v5710_v37, %v2167_v41 }
 0x53d   :  { %v2172_v45 = vsel %vm2171_vm7, %v5710_v37, %v2168_v56  ;;  %v2427_v37 = vld [vmem:[#allocation2 + $0x1b0] sm:$0xff] }
 0x53e   :  { %v2173_v61 = vmul.f32 %v2172_v45, %v2161_v27  ;;  %v2428_v27 = vld [vmem:[#allocation2 + $0x1b8] sm:$0xff] }
 0x540   :  { %2179 = vperm.xlu2 %5114, %v2173_v61   ;;  %v2175_v52 = vmul.f32 %v2173_v61, %v2157_v13 }
 0x542   :  { %v2176_v0 = vsub.f32 %v2174_v34, %v2175_v52  ;;  %v2587_v34 = vld [vmem:[#allocation2 + $0x1] sm:$0xff] }
 0x543   :  { %v2395_v52 = vld [vmem:[#allocation2] sm:$0xff] }
 0x544   :  { %2188 = vperm.xlu0 %5115, %v2176_v0  }
 0x59a   :  { %v2180_v59 = vpop.permute.xlu2 %2179 }
 0x59b   :  { %v2184_v62 = vmul.f32 %v2180_v59, %v2112_v9  ;;  %v2182_v23 = vmul.f32 %v2180_v59, %v2072_v44  ;;  %v2185_v55 = vmul.f32 %v2180_v59, %v2132_v6  ;;  %v2183_v42 = vmul.f32 %v2180_v59, %v6861_v36 }
 0x5b6   :  { %v2189_v35 = vpop.permute.xlu0 %2188 }
 0x5b7   :  { %v2193_v53 = vadd.f32 %v2189_v35, %v2184_v62  ;;  %v2191_v16 = vadd.f32 %v2189_v35, %v2182_v23  ;;  %v2194_v50 = vadd.f32 %v2189_v35, %v2185_v55  ;;  %v2192_v12 = vadd.f32 %v2189_v35, %v2183_v42 }
 0x5b9   :  { %v2197_v22 = vmul.f32 0.2, %v2193_v53  ;;  %v2195_v30 = vmul.f32 0.2, %v2191_v16  ;;  %v2198_v7 = vmul.f32 0.2, %v2194_v50 }
 0x5ba   :  { %v2196_v18 = vmul.f32 0.2, %v2192_v12 }
 0x5bb   :  { %v2201_v32 = vmax.f32 %v2193_v53, %v2197_v22  ;;  %v2199_v47 = vmax.f32 %v2191_v16, %v2195_v30  ;;  %v2202_v14 = vmax.f32 %v2194_v50, %v2198_v7 }
 0x5bc   :  { %v2200_v4 = vmax.f32 %v2192_v12, %v2196_v18 }
 0x5bd   :  { %2267 = vxpose.xlu2.b32.start.end [1/1] (short) %v2201_v32, 128  ;;  %2203 = vxpose.xlu1.b32.start.end [1/1] (short) %v2199_v47, 128  ;;  %v2588_v32 = vld [vmem:[#allocation2 + $0x9] sm:$0xff] }
 0x5be   :  { %v2396_v47 = vld [vmem:[#allocation2 + $0x8] sm:$0xff] }
 0x63d   :  { %2299 = vxpose.xlu2.b32.start.end [1/1] (short) %v2202_v14, 128  ;;  %2235 = vxpose.xlu1.b32.start.end [1/1] (short) %v2200_v4, 128 }
 0x656   :  { %v2283_v44 = vpop.trf.xlu2 }
 0x657   :  { %2363 = vst.msk [vmem:[#allocation2 + $0x1c9] sm:$0xff] %vm27_vm0, %v2283_v44 }
 0x65e   :  { %v2284_v31 = vpop.trf.xlu2  ;;  %v2429_v16 = vld [vmem:[#allocation2 + $0x1c8] sm:$0xff] }
 0x65f   :  { %2364 = vst.msk [vmem:[#allocation2 + $0x1d1] sm:$0xff] %vm27_vm0, %v2284_v31 }
 0x661   :  { %v2219_v24 = vpop.trf.xlu1 }
 0x662   :  { %2331 = vst.msk [vmem:[#allocation2 + $0x19] sm:$0xff] %vm27_vm0, %v2219_v24 }
 0x666   :  { %v2285_v40 = vpop.trf.xlu2  ;;  %v2430_v14 = vld [vmem:[#allocation2 + $0x1d0] sm:$0xff] }
 0x667   :  { %2365 = vst.msk [vmem:[#allocation2 + $0x1e1] sm:$0xff] %vm27_vm0, %v2285_v40 }
 0x669   :  { %v2220_v36 = vpop.trf.xlu1  ;;  %v2589_v31 = vld [vmem:[#allocation2 + $0x19] sm:$0xff] }
 0x66a   :  { %2332 = vst.msk [vmem:[#allocation2 + $0x21] sm:$0xff] %vm27_vm0, %v2220_v36  ;;  %v2397_v36 = vld [vmem:[#allocation2 + $0x18] sm:$0xff] }
 0x66e   :  { %v2286_v8 = vpop.trf.xlu2 }
 0x66f   :  { %2366 = vst.msk [vmem:[#allocation2 + $0x1e9] sm:$0xff] %vm27_vm0, %v2286_v8 }
 0x671   :  { %v2221_v51 = vpop.trf.xlu1 }
 0x672   :  { %2333 = vst.msk [vmem:[#allocation2 + $0x31] sm:$0xff] %vm27_vm0, %v2221_v51 }
 0x676   :  { %v2287_v6 = vpop.trf.xlu2 }
 0x677   :  { %2367 = vst.msk [vmem:[#allocation2 + $0x1f9] sm:$0xff] %vm27_vm0, %v2287_v6 }
 0x679   :  { %v2222_v60 = vpop.trf.xlu1 }
 0x67a   :  { %2334 = vst.msk [vmem:[#allocation2 + $0x39] sm:$0xff] %vm27_vm0, %v2222_v60 }
 0x67e   :  { %v2288_v9 = vpop.trf.xlu2 }
 0x67f   :  { %2368 = vst.msk [vmem:[#allocation2 + $0x201] sm:$0xff] %vm27_vm0, %v2288_v9  ;;  %v2431_v9 = vld [vmem:[#allocation2 + $0x1e0] sm:$0xff] }
 0x681   :  { %v2223_v49 = vpop.trf.xlu1 }
 0x682   :  { %2335 = vst.msk [vmem:[#allocation2 + $0x49] sm:$0xff] %vm27_vm0, %v2223_v49 }
 0x686   :  { %v2289_v28 = vpop.trf.xlu2 }
 0x687   :  { %2369 = vst.msk [vmem:[#allocation2 + $0x211] sm:$0xff] %vm27_vm0, %v2289_v28 }
 0x689   :  { %v2224_v43 = vpop.trf.xlu1 }
 0x68a   :  { %2336 = vst.msk [vmem:[#allocation2 + $0x51] sm:$0xff] %vm27_vm0, %v2224_v43  ;;  %v2590_v43 = vld [vmem:[#allocation2 + $0x21] sm:$0xff] }
 0x68e   :  { %v2290_v1 = vpop.trf.xlu2 }
 0x68f   :  { %2370 = vst.msk [vmem:[#allocation2 + $0x219] sm:$0xff] %vm27_vm0, %v2290_v1 }
 0x691   :  { %v2225_v63 = vpop.trf.xlu1 }
 0x692   :  { %2337 = vst.msk [vmem:[#allocation2 + $0x61] sm:$0xff] %vm27_vm0, %v2225_v63 }
 0x696   :  { %v2291_v48 = vpop.trf.xlu2 }
 0x697   :  { %2371 = vst.msk [vmem:[#allocation2 + $0x229] sm:$0xff] %vm27_vm0, %v2291_v48  ;;  %v2398_v48 = vld [vmem:[#allocation2 + $0x20] sm:$0xff] }
 0x699   :  { %v2226_v26 = vpop.trf.xlu1 }
 0x69a   :  { %2338 = vst.msk [vmem:[#allocation2 + $0x69] sm:$0xff] %vm27_vm0, %v2226_v26 }
 0x69e   :  { %v2292_v58 = vpop.trf.xlu2 }
 0x69f   :  { %2372 = vst.msk [vmem:[#allocation2 + $0x231] sm:$0xff] %vm27_vm0, %v2292_v58 }
 0x6a1   :  { %v2227_v2 = vpop.trf.xlu1 }
 0x6a2   :  { %2339 = vst.msk [vmem:[#allocation2 + $0x79] sm:$0xff] %vm27_vm0, %v2227_v2 }
 0x6a6   :  { %v2293_v11 = vpop.trf.xlu2 }
 0x6a7   :  { %2373 = vst.msk [vmem:[#allocation2 + $0x241] sm:$0xff] %vm27_vm0, %v2293_v11 }
 0x6a9   :  { %v2228_v15 = vpop.trf.xlu1 }
 0x6aa   :  { %2340 = vst.msk [vmem:[#allocation2 + $0x81] sm:$0xff] %vm27_vm0, %v2228_v15  ;;  %v2432_v15 = vld [vmem:[#allocation2 + $0x1e8] sm:$0xff] }
 0x6ae   :  { %v2294_v39 = vpop.trf.xlu2 }
 0x6af   :  { %2374 = vst.msk [vmem:[#allocation2 + $0x249] sm:$0xff] %vm27_vm0, %v2294_v39 }
 0x6b1   :  { %v2229_v54 = vpop.trf.xlu1 }
 0x6b2   :  { %2341 = vst.msk [vmem:[#allocation2 + $0x91] sm:$0xff] %vm27_vm0, %v2229_v54 }
 0x6b6   :  { %v2295_v13 = vpop.trf.xlu2 }
 0x6b7   :  { %2375 = vst.msk [vmem:[#allocation2 + $0x259] sm:$0xff] %vm27_vm0, %v2295_v13  ;;  %v2591_v13 = vld [vmem:[#allocation2 + $0x31] sm:$0xff] }
 0x6b9   :  { %v2230_v3 = vpop.trf.xlu1 }
 0x6ba   :  { %2342 = vst.msk [vmem:[#allocation2 + $0x99] sm:$0xff] %vm27_vm0, %v2230_v3 }
 0x6be   :  { %v2296_v10 = vpop.trf.xlu2 }
 0x6bf   :  { %2376 = vst.msk [vmem:[#allocation2 + $0x261] sm:$0xff] %vm27_vm0, %v2296_v10 }
 0x6c1   :  { %v2231_v20 = vpop.trf.xlu1 }
 0x6c2   :  { %2343 = vst.msk [vmem:[#allocation2 + $0xa9] sm:$0xff] %vm27_vm0, %v2231_v20  ;;  %v2399_v20 = vld [vmem:[#allocation2 + $0x30] sm:$0xff] }
 0x6c6   :  { %v2297_v17 = vpop.trf.xlu2 }
 0x6c7   :  { %2377 = vst.msk [vmem:[#allocation2 + $0x271] sm:$0xff] %vm27_vm0, %v2297_v17 }
 0x6c9   :  { %v2232_v46 = vpop.trf.xlu1 }
 0x6ca   :  { %2344 = vst.msk [vmem:[#allocation2 + $0xb1] sm:$0xff] %vm27_vm0, %v2232_v46 }
 0x6ce   :  { %v2298_v21 = vpop.trf.xlu2  ;;  %v2443_v33 = vld [vmem:[#allocation2 + $0x270] sm:$0xff] }
 0x6cf   :  { %2378 = vst.msk [vmem:[#allocation2 + $0x279] sm:$0xff] %vm27_vm0, %v2298_v21  ;;  %v5153_v19 = vpack.i.bf16 %v2443_v33, %v2427_v37  ;;  %v2433_v33 = vld [vmem:[#allocation2 + $0x1f8] sm:$0xff] }
 0x6d1   :  { %5154 = vxpose.xlu1.b32.start [1/16] (narrow) %v5153_v19, 8  ;;  %v2233_v41 = vpop.trf.xlu1 }
 0x6d2   :  { %2345 = vst.msk [vmem:[#allocation2 + $0xc1] sm:$0xff] %vm27_vm0, %v2233_v41 }
 0x6d6   :  { %v2315_v56 = vpop.trf.xlu2  ;;  %v2444_v45 = vld [vmem:[#allocation2 + $0x278] sm:$0xff] }
 0x6d7   :  { %2379 = vst.msk [vmem:[#allocation2 + $0x289] sm:$0xff] %vm27_vm0, %v2315_v56  ;;  %v5155_v61 = vpack.i.bf16 %v2444_v45, %v2428_v27  ;;  %v2592_v27 = vld [vmem:[#allocation2 + $0x39] sm:$0xff] }
 0x6d9   :  { %5156 = vxpose.xlu1.b32.cont [2/16] (narrow) %v5155_v61, 8  ;;  %v2234_v0 = vpop.trf.xlu1  ;;  %v2603_v59 = vld [vmem:[#allocation2 + $0xc1] sm:$0xff]  ;;  %v2400_v61 = vld [vmem:[#allocation2 + $0x38] sm:$0xff] }
 0x6da   :  { %v6915_v62 = vld [vmem:[#allocation2 + $0xc0] sm:$0xff]  ;;  %2346 = vst.msk [vmem:[#allocation2 + $0xc9] sm:$0xff] %vm27_vm0, %v2234_v0  ;;  %v5190_v23 = vpack.i.bf16 %v2603_v59, %v2587_v34 }
 0x6db   :  { %v5116_v35 = vpack.i.bf16 %v6915_v62, %v2395_v52 }
 0x6dc   :  { %5191 = vxpose.xlu2.b32.start [1/16] (narrow) %v5190_v23, 8  ;;  %v2434_v23 = vld [vmem:[#allocation2 + $0x200] sm:$0xff] }
 0x6dd   :  { %5117 = vxpose.xlu0.b32.start [1/16] (narrow) %v5116_v35, 8 }
 0x6de   :  { %v2316_v53 = vpop.trf.xlu2  ;;  %v2445_v22 = vld [vmem:[#allocation2 + $0x288] sm:$0xff] }
 0x6df   :  { %2380 = vst.msk [vmem:[#allocation2 + $0x291] sm:$0xff] %vm27_vm0, %v2316_v53  ;;  %v6920_v30 = vpack.i.bf16 %v2445_v22, %v2429_v16  ;;  %v2593_v16 = vld [vmem:[#allocation2 + $0x49] sm:$0xff] }
 0x6e1   :  { %5158 = vxpose.xlu1.b32.cont [3/16] (narrow) %v6920_v30, 8  ;;  %v2251_v55 = vpop.trf.xlu1  ;;  %v2604_v42 = vld [vmem:[#allocation2 + $0xc9] sm:$0xff] }
 0x6e2   :  { %v6923_v50 = vld [vmem:[#allocation2 + $0xc8] sm:$0xff]  ;;  %2347 = vst.msk [vmem:[#allocation2 + $0xd9] sm:$0xff] %vm27_vm0, %v2251_v55  ;;  %v5192_v12 = vpack.i.bf16 %v2604_v42, %v2588_v32 }
 0x6e3   :  { %v5118_v7 = vpack.i.bf16 %v6923_v50, %v2396_v47  ;;  %v2401_v47 = vld [vmem:[#allocation2 + $0x48] sm:$0xff] }
 0x6e4   :  { %5193 = vxpose.xlu2.b32.cont [2/16] (narrow) %v5192_v12, 8 }
 0x6e5   :  { %5119 = vxpose.xlu0.b32.cont [2/16] (narrow) %v5118_v7, 8 }
 0x6e6   :  { %v2317_v18 = vpop.trf.xlu2  ;;  %v2446_v4 = vld [vmem:[#allocation2 + $0x290] sm:$0xff] }
 0x6e7   :  { %2381 = vst.msk [vmem:[#allocation2 + $0x2a1] sm:$0xff] %vm27_vm0, %v2317_v18  ;;  %v6928_v44 = vpack.i.bf16 %v2446_v4, %v2430_v14  ;;  %v2435_v18 = vld [vmem:[#allocation2 + $0x210] sm:$0xff] }
 0x6e9   :  { %5160 = vxpose.xlu1.b32.cont [4/16] (narrow) %v6928_v44, 8  ;;  %v2252_v24 = vpop.trf.xlu1  ;;  %v2605_v40 = vld [vmem:[#allocation2 + $0xd9] sm:$0xff] }
 0x6ea   :  { %v2413_v8 = vld [vmem:[#allocation2 + $0xd8] sm:$0xff]  ;;  %2348 = vst.msk [vmem:[#allocation2 + $0xe1] sm:$0xff] %vm27_vm0, %v2252_v24  ;;  %v5194_v51 = vpack.i.bf16 %v2605_v40, %v2589_v31 }
 0x6eb   :  { %v6932_v6 = vpack.i.bf16 %v2413_v8, %v2397_v36  ;;  %v2594_v31 = vld [vmem:[#allocation2 + $0x51] sm:$0xff] }
 0x6ec   :  { %5195 = vxpose.xlu2.b32.cont [3/16] (narrow) %v5194_v51, 8  ;;  %v2402_v36 = vld [vmem:[#allocation2 + $0x50] sm:$0xff] }
 0x6ed   :  { %5121 = vxpose.xlu0.b32.cont [3/16] (narrow) %v6932_v6, 8 }
 0x6ee   :  { %v2318_v60 = vpop.trf.xlu2  ;;  %v2447_v49 = vld [vmem:[#allocation2 + $0x2a0] sm:$0xff] }
 0x6ef   :  { %2382 = vst.msk [vmem:[#allocation2 + $0x2a9] sm:$0xff] %vm27_vm0, %v2318_v60  ;;  %v6936_v28 = vpack.i.bf16 %v2447_v49, %v2431_v9  ;;  %v2436_v49 = vld [vmem:[#allocation2 + $0x218] sm:$0xff] }
 0x6f1   :  { %5162 = vxpose.xlu1.b32.cont [5/16] (narrow) %v6936_v28, 8  ;;  %v2253_v1 = vpop.trf.xlu1  ;;  %v2606_v63 = vld [vmem:[#allocation2 + $0xe1] sm:$0xff] }
 0x6f2   :  { %v2414_v26 = vld [vmem:[#allocation2 + $0xe0] sm:$0xff]  ;;  %2349 = vst.msk [vmem:[#allocation2 + $0xf1] sm:$0xff] %vm27_vm0, %v2253_v1  ;;  %v5196_v58 = vpack.i.bf16 %v2606_v63, %v2590_v43 }
 0x6f3   :  { %v6940_v2 = vpack.i.bf16 %v2414_v26, %v2398_v48  ;;  %v2595_v63 = vld [vmem:[#allocation2 + $0x61] sm:$0xff] }
 0x6f4   :  { %5197 = vxpose.xlu2.b32.cont [4/16] (narrow) %v5196_v58, 8  ;;  %v2403_v58 = vld [vmem:[#allocation2 + $0x60] sm:$0xff] }
 0x6f5   :  { %5123 = vxpose.xlu0.b32.cont [4/16] (narrow) %v6940_v2, 8 }
 0x6f6   :  { %v2319_v11 = vpop.trf.xlu2  ;;  %v2448_v39 = vld [vmem:[#allocation2 + $0x2a8] sm:$0xff] }
 0x6f7   :  { %2383 = vst.msk [vmem:[#allocation2 + $0x2b9] sm:$0xff] %vm27_vm0, %v2319_v11  ;;  %v6944_v54 = vpack.i.bf16 %v2448_v39, %v2432_v15  ;;  %v3788_v5 = vld [vmem:[#allocation2 + $0x2a9] sm:$0xff] }
 0x6f9   :  { %5164 = vxpose.xlu1.b32.cont [6/16] (narrow) %v6944_v54, 8  ;;  %v2254_v3 = vpop.trf.xlu1  ;;  %v2607_v10 = vld [vmem:[#allocation2 + $0xf1] sm:$0xff] }
 0x6fa   :  { %v2415_v17 = vld [vmem:[#allocation2 + $0xf0] sm:$0xff]  ;;  %2350 = vst.msk [vmem:[#allocation2 + $0xf9] sm:$0xff] %vm27_vm0, %v2254_v3  ;;  %v5198_v46 = vpack.i.bf16 %v2607_v10, %v2591_v13  ;;  %v2437_v3 = vld [vmem:[#allocation2 + $0x228] sm:$0xff] }
 0x6fb   :  { %v6948_v37 = vpack.i.bf16 %v2415_v17, %v2399_v20  ;;  %v2596_v17 = vld [vmem:[#allocation2 + $0x69] sm:$0xff] }
 0x6fc   :  { %5199 = vxpose.xlu2.b32.cont [5/16] (narrow) %v5198_v46, 8 }
 0x6fd   :  { %5125 = vxpose.xlu0.b32.cont [5/16] (narrow) %v6948_v37, 8 }
 0x6fe   :  { %v2320_v21 = vpop.trf.xlu2  ;;  %v2449_v19 = vld [vmem:[#allocation2 + $0x2b8] sm:$0xff] }
 0x6ff   :  { %2384 = vst.msk [vmem:[#allocation2 + $0x2c1] sm:$0xff] %vm27_vm0, %v2320_v21  ;;  %v6952_v41 = vpack.i.bf16 %v2449_v19, %v2433_v33  ;;  %v2404_v33 = vld [vmem:[#allocation2 + $0x68] sm:$0xff] }
 0x701   :  { %5166 = vxpose.xlu1.b32.cont [7/16] (narrow) %v6952_v41, 8  ;;  %v2255_v56 = vpop.trf.xlu1  ;;  %v2608_v45 = vld [vmem:[#allocation2 + $0xf9] sm:$0xff] }
 0x702   :  { %v2416_v34 = vld [vmem:[#allocation2 + $0xf8] sm:$0xff]  ;;  %2351 = vst.msk [vmem:[#allocation2 + $0x109] sm:$0xff] %vm27_vm0, %v2255_v56  ;;  %v5200_v52 = vpack.i.bf16 %v2608_v45, %v2592_v27 }
 0x703   :  { %v6956_v0 = vpack.i.bf16 %v2416_v34, %v2400_v61  ;;  %v2438_v61 = vld [vmem:[#allocation2 + $0x230] sm:$0xff] }
 0x704   :  { %5201 = vxpose.xlu2.b32.cont [6/16] (narrow) %v5200_v52, 8 }
 0x705   :  { %5127 = vxpose.xlu0.b32.cont [6/16] (narrow) %v6956_v0, 8 }
 0x706   :  { %v2321_v59 = vpop.trf.xlu2  ;;  %v2450_v35 = vld [vmem:[#allocation2 + $0x2c0] sm:$0xff] }
 0x707   :  { %2385 = vst.msk [vmem:[#allocation2 + $0x2d1] sm:$0xff] %vm27_vm0, %v2321_v59  ;;  %v6960_v53 = vpack.i.bf16 %v2450_v35, %v2434_v23  ;;  %v2597_v59 = vld [vmem:[#allocation2 + $0x79] sm:$0xff] }
 0x709   :  { %5168 = vxpose.xlu1.b32.cont [8/16] (narrow) %v6960_v53, 8  ;;  %v2256_v22 = vpop.trf.xlu1  ;;  %v2609_v32 = vld [vmem:[#allocation2 + $0x109] sm:$0xff] }
 0x70a   :  { %v2417_v55 = vld [vmem:[#allocation2 + $0x108] sm:$0xff]  ;;  %2352 = vst.msk [vmem:[#allocation2 + $0x111] sm:$0xff] %vm27_vm0, %v2256_v22  ;;  %v5202_v42 = vpack.i.bf16 %v2609_v32, %v2593_v16  ;;  %v2405_v16 = vld [vmem:[#allocation2 + $0x78] sm:$0xff] }
 0x70b   :  { %v6964_v12 = vpack.i.bf16 %v2417_v55, %v2401_v47 }
 0x70c   :  { %5203 = vxpose.xlu2.b32.cont [7/16] (narrow) %v5202_v42, 8  ;;  %v2439_v42 = vld [vmem:[#allocation2 + $0x240] sm:$0xff] }
 0x70d   :  { %5129 = vxpose.xlu0.b32.cont [7/16] (narrow) %v6964_v12, 8 }
 0x70e   :  { %v2322_v7 = vpop.trf.xlu2  ;;  %v2451_v14 = vld [vmem:[#allocation2 + $0x2d0] sm:$0xff] }
 0x70f   :  { %2386 = vst.msk [vmem:[#allocation2 + $0x2d9] sm:$0xff] %vm27_vm0, %v2322_v7  ;;  %v6968_v4 = vpack.i.bf16 %v2451_v14, %v2435_v18  ;;  %v2598_v14 = vld [vmem:[#allocation2 + $0x81] sm:$0xff] }
 0x711   :  { %5170 = vxpose.xlu1.b32.cont [9/16] (narrow) %v6968_v4, 8  ;;  %v2257_v24 = vpop.trf.xlu1  ;;  %v2610_v40 = vld [vmem:[#allocation2 + $0x111] sm:$0xff] }
 0x712   :  { %v2418_v8 = vld [vmem:[#allocation2 + $0x110] sm:$0xff]  ;;  %2353 = vst.msk [vmem:[#allocation2 + $0x121] sm:$0xff] %vm27_vm0, %v2257_v24  ;;  %v5204_v51 = vpack.i.bf16 %v2610_v40, %v2594_v31  ;;  %v2406_v40 = vld [vmem:[#allocation2 + $0x80] sm:$0xff] }
 0x713   :  { %v6972_v60 = vpack.i.bf16 %v2418_v8, %v2402_v36 }
 0x714   :  { %5205 = vxpose.xlu2.b32.cont [8/16] (narrow) %v5204_v51, 8 }
 0x715   :  { %5131 = vxpose.xlu0.b32.cont [8/16] (narrow) %v6972_v60, 8 }
 0x716   :  { %v2323_v9 = vpop.trf.xlu2  ;;  %v2452_v43 = vld [vmem:[#allocation2 + $0x2d8] sm:$0xff] }
 0x717   :  { %2387 = vst.msk [vmem:[#allocation2 + $0x2e9] sm:$0xff] %vm27_vm0, %v2323_v9  ;;  %v6976_v1 = vpack.i.bf16 %v2452_v43, %v2436_v49  ;;  %v2440_v49 = vld [vmem:[#allocation2 + $0x248] sm:$0xff] }
 0x719   :  { %5172 = vxpose.xlu1.b32.cont [10/16] (narrow) %v6976_v1, 8  ;;  %v2258_v48 = vpop.trf.xlu1  ;;  %v2611_v26 = vld [vmem:[#allocation2 + $0x121] sm:$0xff] }
 0x71a   :  { %v2419_v11 = vld [vmem:[#allocation2 + $0x120] sm:$0xff]  ;;  %2354 = vst.msk [vmem:[#allocation2 + $0x129] sm:$0xff] %vm27_vm0, %v2258_v48  ;;  %v5206_v15 = vpack.i.bf16 %v2611_v26, %v2595_v63  ;;  %v2599_v48 = vld [vmem:[#allocation2 + $0x91] sm:$0xff] }
 0x71b   :  { %v6980_v39 = vpack.i.bf16 %v2419_v11, %v2403_v58  ;;  %v2407_v11 = vld [vmem:[#allocation2 + $0x90] sm:$0xff] }
 0x71c   :  { %5207 = vxpose.xlu2.b32.cont [9/16] (narrow) %v5206_v15, 8 }
 0x71d   :  { %5133 = vxpose.xlu0.b32.cont [9/16] (narrow) %v6980_v39, 8 }
 0x71e   :  { %v2324_v13 = vpop.trf.xlu2  ;;  %v2453_v10 = vld [vmem:[#allocation2 + $0x2e8] sm:$0xff] }
 0x71f   :  { %2388 = vst.msk [vmem:[#allocation2 + $0x2f1] sm:$0xff] %vm27_vm0, %v2324_v13  ;;  %v6984_v20 = vpack.i.bf16 %v2453_v10, %v2437_v3 }
 0x721   :  { %5174 = vxpose.xlu1.b32.cont [11/16] (narrow) %v6984_v20, 8  ;;  %v2259_v46 = vpop.trf.xlu1  ;;  %v2612_v21 = vld [vmem:[#allocation2 + $0x129] sm:$0xff] }
 0x722   :  { %v2420_v19 = vld [vmem:[#allocation2 + $0x128] sm:$0xff]  ;;  %2355 = vst.msk [vmem:[#allocation2 + $0x139] sm:$0xff] %vm27_vm0, %v2259_v46  ;;  %v5208_v27 = vpack.i.bf16 %v2612_v21, %v2596_v17  ;;  %v2441_v17 = vld [vmem:[#allocation2 + $0x258] sm:$0xff] }
 0x723   :  { %v6988_v56 = vpack.i.bf16 %v2420_v19, %v2404_v33  ;;  %v2600_v33 = vld [vmem:[#allocation2 + $0x99] sm:$0xff] }
 0x724   :  { %5209 = vxpose.xlu2.b32.cont [10/16] (narrow) %v5208_v27, 8 }
 0x725   :  { %5135 = vxpose.xlu0.b32.cont [10/16] (narrow) %v6988_v56, 8 }
 0x726   :  { %v2325_v45 = vpop.trf.xlu2  ;;  %v2454_v34 = vld [vmem:[#allocation2 + $0x2f0] sm:$0xff] }
 0x727   :  { %2389 = vst.msk [vmem:[#allocation2 + $0x301] sm:$0xff] %vm27_vm0, %v2325_v45  ;;  %v6992_v52 = vpack.i.bf16 %v2454_v34, %v2438_v61  ;;  %v2408_v45 = vld [vmem:[#allocation2 + $0x98] sm:$0xff] }
 0x729   :  { %5176 = vxpose.xlu1.b32.cont [12/16] (narrow) %v6992_v52, 8  ;;  %v2260_v23 = vpop.trf.xlu1  ;;  %v2613_v35 = vld [vmem:[#allocation2 + $0x139] sm:$0xff] }
 0x72a   :  { %v2421_v22 = vld [vmem:[#allocation2 + $0x138] sm:$0xff]  ;;  %2356 = vst.msk [vmem:[#allocation2 + $0x141] sm:$0xff] %vm27_vm0, %v2260_v23  ;;  %v5210_v32 = vpack.i.bf16 %v2613_v35, %v2597_v59  ;;  %v2442_v35 = vld [vmem:[#allocation2 + $0x260] sm:$0xff] }
 0x72b   :  { %v6996_v47 = vpack.i.bf16 %v2421_v22, %v2405_v16 }
 0x72c   :  { %5211 = vxpose.xlu2.b32.cont [11/16] (narrow) %v5210_v32, 8  ;;  %v2601_v32 = vld [vmem:[#allocation2 + $0xa9] sm:$0xff] }
 0x72d   :  { %5137 = vxpose.xlu0.b32.cont [11/16] (narrow) %v6996_v47, 8 }
 0x72e   :  { %v2326_v55 = vpop.trf.xlu2  ;;  %v2455_v7 = vld [vmem:[#allocation2 + $0x300] sm:$0xff] }
 0x72f   :  { %2390 = vst.msk [vmem:[#allocation2 + $0x309] sm:$0xff] %vm27_vm0, %v2326_v55  ;;  %v7000_v18 = vpack.i.bf16 %v2455_v7, %v2439_v42  ;;  %v2409_v7 = vld [vmem:[#allocation2 + $0xa8] sm:$0xff] }
 0x731   :  { %5178 = vxpose.xlu1.b32.cont [13/16] (narrow) %v7000_v18, 8  ;;  %v2261_v31 = vpop.trf.xlu1  ;;  %v2614_v24 = vld [vmem:[#allocation2 + $0x141] sm:$0xff] }
 0x732   :  { %v2422_v36 = vld [vmem:[#allocation2 + $0x140] sm:$0xff]  ;;  %2357 = vst.msk [vmem:[#allocation2 + $0x151] sm:$0xff] %vm27_vm0, %v2261_v31  ;;  %v5212_v8 = vpack.i.bf16 %v2614_v24, %v2598_v14 }
 0x733   :  { %v7004_v51 = vpack.i.bf16 %v2422_v36, %v2406_v40  ;;  %v2779_v40 = vld [vmem:[#allocation2 + $0x2] sm:$0xff] }
 0x734   :  { %5213 = vxpose.xlu2.b32.cont [12/16] (narrow) %v5212_v8, 8  ;;  %v2795_v36 = vld [vmem:[#allocation2 + $0xc2] sm:$0xff] }
 0x735   :  { %5139 = vxpose.xlu0.b32.cont [12/16] (narrow) %v7004_v51, 8 }
 0x736   :  { %v2327_v9 = vpop.trf.xlu2  ;;  %v2456_v43 = vld [vmem:[#allocation2 + $0x308] sm:$0xff] }
 0x737   :  { %2391 = vst.msk [vmem:[#allocation2 + $0x319] sm:$0xff] %vm27_vm0, %v2327_v9  ;;  %v7008_v63 = vpack.i.bf16 %v2456_v43, %v2440_v49  ;;  %v5264_v9 = vpack.i.bf16 %v2795_v36, %v2779_v40  ;;  %v2602_v49 = vld [vmem:[#allocation2 + $0xb1] sm:$0xff] }
 0x738   :  { %v2783_v40 = vld [vmem:[#allocation2 + $0x32] sm:$0xff] }
 0x739   :  { %5180 = vxpose.xlu1.b32.cont [14/16] (narrow) %v7008_v63, 8  ;;  %v2262_v26 = vpop.trf.xlu1  ;;  %v2615_v58 = vld [vmem:[#allocation2 + $0x151] sm:$0xff] }
 0x73a   :  { %v2423_v15 = vld [vmem:[#allocation2 + $0x150] sm:$0xff]  ;;  %2358 = vst.msk [vmem:[#allocation2 + $0x159] sm:$0xff] %vm27_vm0, %v2262_v26  ;;  %v5214_v13 = vpack.i.bf16 %v2615_v58, %v2599_v48 }
 0x73b   :  { %v7012_v3 = vpack.i.bf16 %v2423_v15, %v2407_v11  ;;  %v2410_v26 = vld [vmem:[#allocation2 + $0xb0] sm:$0xff] }
 0x73c   :  { %5215 = vxpose.xlu2.b32.cont [13/16] (narrow) %v5214_v13, 8  ;;  %v2780_v13 = vld [vmem:[#allocation2 + $0xa] sm:$0xff] }
 0x73d   :  { %5141 = vxpose.xlu0.b32.cont [13/16] (narrow) %v7012_v3, 8 }
 0x73e   :  { %v2328_v10 = vpop.trf.xlu2  ;;  %v2457_v46 = vld [vmem:[#allocation2 + $0x318] sm:$0xff] }
 0x73f   :  { %2392 = vst.msk [vmem:[#allocation2 + $0x321] sm:$0xff] %vm27_vm0, %v2328_v10  ;;  %v7016_v21 = vpack.i.bf16 %v2457_v46, %v2441_v17  ;;  %v2796_v10 = vld [vmem:[#allocation2 + $0xca] sm:$0xff] }
 0x740   :  { %v5266_v17 = vpack.i.bf16 %v2796_v10, %v2780_v13  ;;  %v2619_v46 = vld [vmem:[#allocation2 + $0x1b1] sm:$0xff] }
 0x741   :  { %5182 = vxpose.xlu1.b32.cont [15/16] (narrow) %v7016_v21, 8  ;;  %v2263_v19 = vpop.trf.xlu1  ;;  %v2616_v27 = vld [vmem:[#allocation2 + $0x159] sm:$0xff]  ;;  %v2785_v13 = vld [vmem:[#allocation2 + $0x4a] sm:$0xff] }
 0x742   :  { %v2424_v61 = vld [vmem:[#allocation2 + $0x158] sm:$0xff]  ;;  %2359 = vst.msk [vmem:[#allocation2 + $0x169] sm:$0xff] %vm27_vm0, %v2263_v19  ;;  %v5216_v34 = vpack.i.bf16 %v2616_v27, %v2600_v33 }
 0x743   :  { %v7020_v59 = vpack.i.bf16 %v2424_v61, %v2408_v45  ;;  %v7036_v33 = vld [vmem:[#allocation2 + $0x271] sm:$0xff]  ;;  %v2797_v45 = vld [vmem:[#allocation2 + $0xda] sm:$0xff] }
 0x744   :  { %5217 = vxpose.xlu2.b32.cont [14/16] (narrow) %v5216_v34, 8  ;;  %v5227_v27 = vpack.i.bf16 %v7036_v33, %v2619_v46  ;;  %v2781_v61 = vld [vmem:[#allocation2 + $0x1a] sm:$0xff] }
 0x745   :  { %5143 = vxpose.xlu0.b32.cont [14/16] (narrow) %v7020_v59, 8  ;;  %v7041_v34 = vpack.i.bf16 %v2797_v45, %v2781_v61  ;;  %v2625_v61 = vld [vmem:[#allocation2 + $0x1f9] sm:$0xff] }
 0x746   :  { %v2329_v23 = vpop.trf.xlu2  ;;  %v2458_v16 = vld [vmem:[#allocation2 + $0x320] sm:$0xff] }
 0x747   :  { %2393 = vst.msk [vmem:[#allocation2 + $0x331] sm:$0xff] %vm27_vm0, %v2329_v23  ;;  %v7024_v22 = vpack.i.bf16 %v2458_v16, %v2442_v35  ;;  %v2620_v23 = vld [vmem:[#allocation2 + $0x1b9] sm:$0xff] }
 0x748   :  { %v7043_v35 = vld [vmem:[#allocation2 + $0x279] sm:$0xff] }
 0x749   :  { %5184 = vxpose.xlu1.b32.end [16/16] (narrow) %v7024_v22, 8  ;;  %v2264_v55 = vpop.trf.xlu1  ;;  %v2617_v42 = vld [vmem:[#allocation2 + $0x169] sm:$0xff]  ;;  %v5229_v16 = vpack.i.bf16 %v7043_v35, %v2620_v23 }
 0x74a   :  { %v2425_v14 = vld [vmem:[#allocation2 + $0x168] sm:$0xff]  ;;  %2360 = vst.msk [vmem:[#allocation2 + $0x171] sm:$0xff] %vm27_vm0, %v2264_v55  ;;  %v5218_v31 = vpack.i.bf16 %v2617_v42, %v2601_v32 }
 0x74b   :  { %v7028_v24 = vpack.i.bf16 %v2425_v14, %v2409_v7  ;;  %v2798_v32 = vld [vmem:[#allocation2 + $0xe2] sm:$0xff] }
 0x74c   :  { %5219 = vxpose.xlu2.b32.cont [15/16] (narrow) %v5218_v31, 8  ;;  %v2782_v55 = vld [vmem:[#allocation2 + $0x22] sm:$0xff]  ;;  %v2799_v31 = vld [vmem:[#allocation2 + $0xf2] sm:$0xff] }
 0x74d   :  { %5145 = vxpose.xlu0.b32.cont [15/16] (narrow) %v7028_v24, 8  ;;  %v7048_v42 = vpack.i.bf16 %v2798_v32, %v2782_v55  ;;  %v2621_v7 = vld [vmem:[#allocation2 + $0x1c9] sm:$0xff]  ;;  %v7055_v36 = vpack.i.bf16 %v2799_v31, %v2783_v40 }
 0x74e   :  { %v2330_v8 = vpop.trf.xlu2  ;;  %v2787_v32 = vld [vmem:[#allocation2 + $0x62] sm:$0xff]  ;;  %v2804_v31 = vld [vmem:[#allocation2 + $0x12a] sm:$0xff] }
 0x74f   :  { %2394 = vst.msk [vmem:[#allocation2 + $0x339] sm:$0xff] %vm27_vm0, %v2330_v8  ;;  %v2622_v8 = vld [vmem:[#allocation2 + $0x1d1] sm:$0xff] }
 0x750   :  { %v2788_v40 = vld [vmem:[#allocation2 + $0x6a] sm:$0xff] }
 0x751   :  { %5265 = vxpose.xlu1.b32.start [1/16] (narrow) %v5264_v9, 8  ;;  %v2265_v43 = vpop.trf.xlu1  ;;  %v2618_v48 = vld [vmem:[#allocation2 + $0x171] sm:$0xff] }
 0x752   :  { %v2426_v58 = vld [vmem:[#allocation2 + $0x170] sm:$0xff]  ;;  %2361 = vst.msk [vmem:[#allocation2 + $0x181] sm:$0xff] %vm27_vm0, %v2265_v43  ;;  %v5220_v11 = vpack.i.bf16 %v2618_v48, %v2602_v49  ;;  %v2800_v49 = vld [vmem:[#allocation2 + $0xfa] sm:$0xff] }
 0x753   :  { %v7033_v15 = vpack.i.bf16 %v2426_v58, %v2410_v26  ;;  %v2784_v43 = vld [vmem:[#allocation2 + $0x3a] sm:$0xff] }
 0x754   :  { %5221 = vxpose.xlu2.b32.end [16/16] (narrow) %v5220_v11, 8  ;;  %v7062_v48 = vpack.i.bf16 %v2800_v49, %v2784_v43  ;;  %v2623_v26 = vld [vmem:[#allocation2 + $0x1e1] sm:$0xff]  ;;  %v2801_v11 = vld [vmem:[#allocation2 + $0x10a] sm:$0xff] }
 0x755   :  { %5147 = vxpose.xlu0.b32.end [16/16] (narrow) %v7033_v15, 8  ;;  %v7069_v10 = vpack.i.bf16 %v2801_v11, %v2785_v13  ;;  %v2805_v43 = vld [vmem:[#allocation2 + $0x13a] sm:$0xff] }
 0x756   :  { %v2628_v11 = vld [vmem:[#allocation2 + $0x219] sm:$0xff] }
 0x759   :  { %5267 = vxpose.xlu1.b32.cont [2/16] (narrow) %v5266_v17, 8  ;;  %v2266_v19 = vpop.trf.xlu1  ;;  %v2624_v17 = vld [vmem:[#allocation2 + $0x1e9] sm:$0xff] }
 0x75a   :  { %2362 = vst.msk [vmem:[#allocation2 + $0x189] sm:$0xff] %vm27_vm0, %v2266_v19  ;;  %v2802_v19 = vld [vmem:[#allocation2 + $0x112] sm:$0xff] }
 0x75c   :  { %5339 = vxpose.xlu2.b32.start [1/16] (narrow) %v6932_v6, 8  ;;  %v2637_v6 = vld [vmem:[#allocation2 + $0x289] sm:$0xff] }
 0x75d   :  { %5228 = vxpose.xlu0.b32.start [1/16] (narrow) %v5227_v27, 8  ;;  %v7051_v14 = vpack.i.bf16 %v2637_v6, %v2621_v7  ;;  %v2786_v27 = vld [vmem:[#allocation2 + $0x52] sm:$0xff]  ;;  %v2626_v6 = vld [vmem:[#allocation2 + $0x201] sm:$0xff] }
 0x75e   :  { %v7076_v45 = vpack.i.bf16 %v2802_v19, %v2786_v27  ;;  %v2629_v27 = vld [vmem:[#allocation2 + $0x229] sm:$0xff] }
 0x761   :  { %5269 = vxpose.xlu1.b32.cont [3/16] (narrow) %v7041_v34, 8 }
 0x764   :  { %5341 = vxpose.xlu2.b32.cont [2/16] (narrow) %v6940_v2, 8  ;;  %v2638_v2 = vld [vmem:[#allocation2 + $0x291] sm:$0xff] }
 0x765   :  { %5230 = vxpose.xlu0.b32.cont [2/16] (narrow) %v5229_v16, 8  ;;  %v7058_v9 = vpack.i.bf16 %v2638_v2, %v2622_v8  ;;  %v2803_v16 = vld [vmem:[#allocation2 + $0x122] sm:$0xff]  ;;  %v7090_v2 = vpack.i.bf16 %v2804_v31, %v2788_v40  ;;  %v2627_v8 = vld [vmem:[#allocation2 + $0x211] sm:$0xff]  ;;  %v2808_v31 = vld [vmem:[#allocation2 + $0x15a] sm:$0xff] }
 0x766   :  { %v7083_v55 = vpack.i.bf16 %v2803_v16, %v2787_v32  ;;  %v2791_v16 = vld [vmem:[#allocation2 + $0x92] sm:$0xff]  ;;  %v2792_v40 = vld [vmem:[#allocation2 + $0x9a] sm:$0xff] }
 0x769   :  { %5271 = vxpose.xlu1.b32.cont [4/16] (narrow) %v7048_v42, 8 }
 0x76c   :  { %5343 = vxpose.xlu2.b32.cont [3/16] (narrow) %v6948_v37, 8  ;;  %v2639_v37 = vld [vmem:[#allocation2 + $0x2a1] sm:$0xff] }
 0x76d   :  { %5232 = vxpose.xlu0.b32.cont [3/16] (narrow) %v7051_v14, 8  ;;  %v7065_v58 = vpack.i.bf16 %v2639_v37, %v2623_v26  ;;  %v2789_v37 = vld [vmem:[#allocation2 + $0x7a] sm:$0xff] }
 0x76e   :  { %v7097_v26 = vpack.i.bf16 %v2805_v43, %v2789_v37  ;;  %v2809_v37 = vld [vmem:[#allocation2 + $0x16a] sm:$0xff] }
 0x771   :  { %5273 = vxpose.xlu1.b32.cont [5/16] (narrow) %v7055_v36, 8 }
 0x774   :  { %5345 = vxpose.xlu2.b32.cont [4/16] (narrow) %v6956_v0, 8  ;;  %v2640_v0 = vld [vmem:[#allocation2 + $0x2a9] sm:$0xff] }
 0x775   :  { %5234 = vxpose.xlu0.b32.cont [4/16] (narrow) %v7058_v9, 8  ;;  %v7072_v46 = vpack.i.bf16 %v2640_v0, %v2624_v17  ;;  %v2806_v0 = vld [vmem:[#allocation2 + $0x142] sm:$0xff] }
 0x776   :  { %v2790_v17 = vld [vmem:[#allocation2 + $0x82] sm:$0xff] }
 0x777   :  { %v7104_v19 = vpack.i.bf16 %v2806_v0, %v2790_v17  ;;  %v2632_v0 = vld [vmem:[#allocation2 + $0x249] sm:$0xff] }
 0x779   :  { %5275 = vxpose.xlu1.b32.cont [6/16] (narrow) %v7062_v48, 8 }
 0x77c   :  { %5347 = vxpose.xlu2.b32.cont [5/16] (narrow) %v6964_v12, 8  ;;  %v2641_v12 = vld [vmem:[#allocation2 + $0x2b9] sm:$0xff] }
 0x77d   :  { %5236 = vxpose.xlu0.b32.cont [5/16] (narrow) %v7065_v58, 8  ;;  %v7079_v23 = vpack.i.bf16 %v2641_v12, %v2625_v61  ;;  %v2807_v61 = vld [vmem:[#allocation2 + $0x152] sm:$0xff] }
 0x77e   :  { %v7111_v32 = vpack.i.bf16 %v2807_v61, %v2791_v16  ;;  %v7134_v16 = vld [vmem:[#allocation2 + $0x180] sm:$0xff] }
 0x781   :  { %5277 = vxpose.xlu1.b32.cont [7/16] (narrow) %v7069_v10, 8 }
 0x784   :  { %5349 = vxpose.xlu2.b32.cont [6/16] (narrow) %v6972_v60, 8  ;;  %v2642_v60 = vld [vmem:[#allocation2 + $0x2c1] sm:$0xff] }
 0x785   :  { %5238 = vxpose.xlu0.b32.cont [6/16] (narrow) %v7072_v46, 8  ;;  %v7086_v7 = vpack.i.bf16 %v2642_v60, %v2626_v6  ;;  %v2630_v60 = vld [vmem:[#allocation2 + $0x231] sm:$0xff] }
 0x789   :  { %5279 = vxpose.xlu1.b32.cont [8/16] (narrow) %v7076_v45, 8 }
 0x78c   :  { %5351 = vxpose.xlu2.b32.cont [7/16] (narrow) %v6980_v39, 8  ;;  %v2643_v39 = vld [vmem:[#allocation2 + $0x2d1] sm:$0xff] }
 0x78d   :  { %5240 = vxpose.xlu0.b32.cont [7/16] (narrow) %v7079_v23, 8  ;;  %v7093_v49 = vpack.i.bf16 %v2643_v39, %v2627_v8  ;;  %v7118_v39 = vpack.i.bf16 %v2808_v31, %v2792_v40  ;;  %v2631_v8 = vld [vmem:[#allocation2 + $0x241] sm:$0xff]  ;;  %v5366_v31 = vpack.i.bf16 %v7134_v16, %v6915_v62 }
 0x78e   :  { %v7142_v40 = vld [vmem:[#allocation2 + $0x188] sm:$0xff] }
 0x791   :  { %5281 = vxpose.xlu1.b32.cont [9/16] (narrow) %v7083_v55, 8 }
 0x794   :  { %5353 = vxpose.xlu2.b32.cont [8/16] (narrow) %v6988_v56, 8  ;;  %v2644_v56 = vld [vmem:[#allocation2 + $0x2d9] sm:$0xff] }
 0x795   :  { %5242 = vxpose.xlu0.b32.cont [8/16] (narrow) %v7086_v7, 8  ;;  %v7100_v13 = vpack.i.bf16 %v2644_v56, %v2628_v11  ;;  %v2793_v56 = vld [vmem:[#allocation2 + $0xaa] sm:$0xff] }
 0x796   :  { %v7125_v11 = vpack.i.bf16 %v2809_v37, %v2793_v56  ;;  %v5368_v37 = vpack.i.bf16 %v7142_v40, %v6923_v50  ;;  %v2811_v56 = vld [vmem:[#allocation2 + $0x1b2] sm:$0xff]  ;;  %v2829_v50 = vld [vmem:[#allocation2 + $0x28a] sm:$0xff] }
 0x799   :  { %5283 = vxpose.xlu1.b32.cont [10/16] (narrow) %v7090_v2, 8 }
 0x79c   :  { %5355 = vxpose.xlu2.b32.cont [9/16] (narrow) %v6996_v47, 8  ;;  %v2645_v47 = vld [vmem:[#allocation2 + $0x2e9] sm:$0xff] }
 0x79d   :  { %5244 = vxpose.xlu0.b32.cont [9/16] (narrow) %v7093_v49, 8  ;;  %v7107_v12 = vpack.i.bf16 %v2645_v47, %v2629_v27  ;;  %v2810_v47 = vld [vmem:[#allocation2 + $0x172] sm:$0xff] }
 0x79e   :  { %v2794_v27 = vld [vmem:[#allocation2 + $0xb2] sm:$0xff] }
 0x79f   :  { %v7132_v61 = vpack.i.bf16 %v2810_v47, %v2794_v27  ;;  %v2828_v47 = vld [vmem:[#allocation2 + $0x27a] sm:$0xff]  ;;  %v2813_v27 = vld [vmem:[#allocation2 + $0x1ca] sm:$0xff] }
 0x7a1   :  { %5285 = vxpose.xlu1.b32.cont [11/16] (narrow) %v7097_v26, 8 }
 0x7a4   :  { %5357 = vxpose.xlu2.b32.cont [10/16] (narrow) %v7004_v51, 8  ;;  %v2646_v51 = vld [vmem:[#allocation2 + $0x2f1] sm:$0xff] }
 0x7a5   :  { %5246 = vxpose.xlu0.b32.cont [10/16] (narrow) %v7100_v13, 8  ;;  %v7114_v6 = vpack.i.bf16 %v2646_v51, %v2630_v60  ;;  %v2633_v51 = vld [vmem:[#allocation2 + $0x259] sm:$0xff] }
 0x7a9   :  { %5287 = vxpose.xlu1.b32.cont [12/16] (narrow) %v7104_v19, 8 }
 0x7ac   :  { %5359 = vxpose.xlu2.b32.cont [11/16] (narrow) %v7012_v3, 8  ;;  %v2647_v3 = vld [vmem:[#allocation2 + $0x301] sm:$0xff] }
 0x7ad   :  { %5248 = vxpose.xlu0.b32.cont [11/16] (narrow) %v7107_v12, 8  ;;  %v7121_v43 = vpack.i.bf16 %v2647_v3, %v2631_v8  ;;  %v2634_v3 = vld [vmem:[#allocation2 + $0x261] sm:$0xff] }
 0x7b1   :  { %5289 = vxpose.xlu1.b32.cont [13/16] (narrow) %v7111_v32, 8 }
 0x7b4   :  { %5361 = vxpose.xlu2.b32.cont [12/16] (narrow) %v7020_v59, 8  ;;  %v2648_v59 = vld [vmem:[#allocation2 + $0x309] sm:$0xff] }
 0x7b5   :  { %5250 = vxpose.xlu0.b32.cont [12/16] (narrow) %v7114_v6, 8  ;;  %v7128_v17 = vpack.i.bf16 %v2648_v59, %v2632_v0  ;;  %v2827_v59 = vld [vmem:[#allocation2 + $0x272] sm:$0xff]  ;;  %v2812_v0 = vld [vmem:[#allocation2 + $0x1ba] sm:$0xff] }
 0x7b6   :  { %v5301_v62 = vpack.i.bf16 %v2827_v59, %v2811_v56 }
 0x7b9   :  { %5291 = vxpose.xlu1.b32.cont [14/16] (narrow) %v7118_v39, 8 }
 0x7bc   :  { %5363 = vxpose.xlu2.b32.cont [13/16] (narrow) %v7028_v24, 8  ;;  %v2649_v24 = vld [vmem:[#allocation2 + $0x319] sm:$0xff] }
 0x7bd   :  { %5252 = vxpose.xlu0.b32.cont [13/16] (narrow) %v7121_v43, 8  ;;  %v7137_v60 = vpack.i.bf16 %v2649_v24, %v2633_v51  ;;  %v7155_v24 = vpack.i.bf16 %v2829_v50, %v2813_v27  ;;  %v3034_v50 = vld [vmem:[#allocation2 + $0x338] sm:$0xff] }
 0x7be   :  { %v3018_v27 = vld [vmem:[#allocation2 + $0x278] sm:$0xff] }
 0x7c1   :  { %5293 = vxpose.xlu1.b32.cont [15/16] (narrow) %v7125_v11, 8 }
 0x7c4   :  { %5365 = vxpose.xlu2.b32.cont [14/16] (narrow) %v7033_v15, 8  ;;  %v2650_v15 = vld [vmem:[#allocation2 + $0x321] sm:$0xff] }
 0x7c5   :  { %5254 = vxpose.xlu0.b32.cont [14/16] (narrow) %v7128_v17, 8  ;;  %v7145_v8 = vpack.i.bf16 %v2650_v15, %v2634_v3 }
 0x7c9   :  { %5295 = vxpose.xlu1.b32.end [16/16] (narrow) %v7132_v61, 8 }
 0x7cc   :  { %5367 = vxpose.xlu2.b32.cont [15/16] (narrow) %v5366_v31, 8 }
 0x7cd   :  { %5256 = vxpose.xlu0.b32.cont [15/16] (narrow) %v7137_v60, 8 }
 0x7d1   :  { %5376 = vxpose.xlu1.b32.start [1/16] (narrow) %v6920_v30, 8  ;;  %v5303_v30 = vpack.i.bf16 %v2828_v47, %v2812_v0 }
 0x7d4   :  { %5369 = vxpose.xlu2.b32.end [16/16] (narrow) %v5368_v37, 8 }
 0x7d5   :  { %5258 = vxpose.xlu0.b32.end [16/16] (narrow) %v7145_v8, 8 }
 0x7d9   :  { %5378 = vxpose.xlu1.b32.cont [2/16] (narrow) %v6928_v44, 8  ;;  %v2830_v44 = vld [vmem:[#allocation2 + $0x292] sm:$0xff] }
 0x7dc   :  { %5450 = vxpose.xlu2.b32.start [1/16] (narrow) %v7051_v14, 8  ;;  %v2814_v14 = vld [vmem:[#allocation2 + $0x1d2] sm:$0xff] }
 0x7dd   :  { %5302 = vxpose.xlu0.b32.start [1/16] (narrow) %v5301_v62, 8  ;;  %v7160_v51 = vpack.i.bf16 %v2830_v44, %v2814_v14  ;;  %v7234_v44 = vpack.i.bf16 %v3034_v50, %v3018_v27  ;;  %v7236_v14 = vld [vmem:[#allocation2 + $0x331] sm:$0xff]  ;;  %v3565_v50 = vld [vmem:[#allocation2 + $0x108] sm:$0xff] }
 0x7de   :  { %v3165_v27 = vld [vmem:[#allocation2 + $0x31] sm:$0xff] }
 0x7e1   :  { %5380 = vxpose.xlu1.b32.cont [3/16] (narrow) %v6936_v28, 8  ;;  %v2831_v28 = vld [vmem:[#allocation2 + $0x2a2] sm:$0xff] }
 0x7e4   :  { %5452 = vxpose.xlu2.b32.cont [2/16] (narrow) %v7058_v9, 8 }
 0x7e5   :  { %5304 = vxpose.xlu0.b32.cont [2/16] (narrow) %v5303_v30, 8  ;;  %v2840_v30 = vld [vmem:[#allocation2 + $0x30a] sm:$0xff] }
 0x7e9   :  { %5382 = vxpose.xlu1.b32.cont [4/16] (narrow) %v6944_v54, 8  ;;  %v2815_v54 = vld [vmem:[#allocation2 + $0x1e2] sm:$0xff] }
 0x7ea   :  { %v7165_v9 = vpack.i.bf16 %v2831_v28, %v2815_v54  ;;  %v7239_v28 = vld [vmem:[#allocation2 + $0x25a] sm:$0xff] }
 0x7ec   :  { %5454 = vxpose.xlu2.b32.cont [3/16] (narrow) %v7065_v58, 8  ;;  %v2832_v58 = vld [vmem:[#allocation2 + $0x2aa] sm:$0xff] }
 0x7ed   :  { %5306 = vxpose.xlu0.b32.cont [3/16] (narrow) %v7155_v24, 8 }
 0x7f1   :  { %5384 = vxpose.xlu1.b32.cont [5/16] (narrow) %v6952_v41, 8  ;;  %v2816_v41 = vld [vmem:[#allocation2 + $0x1ea] sm:$0xff] }
 0x7f2   :  { %v7170_v31 = vpack.i.bf16 %v2832_v58, %v2816_v41  ;;  %v5477_v58 = vpack.i.bf16 %v7236_v14, %v7036_v33  ;;  %v7247_v41 = vld [vmem:[#allocation2 + $0x339] sm:$0xff] }
 0x7f3   :  { %v7258_v33 = vld [vmem:[#allocation2 + $0xd9] sm:$0xff] }
 0x7f4   :  { %5456 = vxpose.xlu2.b32.cont [4/16] (narrow) %v7072_v46, 8  ;;  %v2833_v46 = vld [vmem:[#allocation2 + $0x2ba] sm:$0xff] }
 0x7f5   :  { %5308 = vxpose.xlu0.b32.cont [4/16] (narrow) %v7160_v51, 8 }
 0x7f9   :  { %5386 = vxpose.xlu1.b32.cont [6/16] (narrow) %v6960_v53, 8  ;;  %v2817_v53 = vld [vmem:[#allocation2 + $0x1fa] sm:$0xff] }
 0x7fa   :  { %v7175_v15 = vpack.i.bf16 %v2833_v46, %v2817_v53  ;;  %v7250_v46 = vld [vmem:[#allocation2 + $0x262] sm:$0xff] }
 0x7fc   :  { %5458 = vxpose.xlu2.b32.cont [5/16] (narrow) %v7079_v23, 8  ;;  %v2834_v23 = vld [vmem:[#allocation2 + $0x2c2] sm:$0xff] }
 0x7fd   :  { %5310 = vxpose.xlu0.b32.cont [5/16] (narrow) %v7165_v9, 8 }
 0x801   :  { %5388 = vxpose.xlu1.b32.cont [7/16] (narrow) %v6968_v4, 8  ;;  %v2818_v4 = vld [vmem:[#allocation2 + $0x202] sm:$0xff] }
 0x802   :  { %v7180_v3 = vpack.i.bf16 %v2834_v23, %v2818_v4  ;;  %v5479_v23 = vpack.i.bf16 %v7247_v41, %v7043_v35  ;;  %v3563_v4 = vld [vmem:[#allocation2 + $0xf0] sm:$0xff]  ;;  %v3164_v35 = vld [vmem:[#allocation2 + $0x21] sm:$0xff] }
 0x804   :  { %5460 = vxpose.xlu2.b32.cont [6/16] (narrow) %v7086_v7, 8  ;;  %v2835_v7 = vld [vmem:[#allocation2 + $0x2d2] sm:$0xff] }
 0x805   :  { %5312 = vxpose.xlu0.b32.cont [6/16] (narrow) %v7170_v31, 8 }
 0x809   :  { %5390 = vxpose.xlu1.b32.cont [8/16] (narrow) %v6976_v1, 8  ;;  %v7185_v1 = vld [vmem:[#allocation2 + $0x212] sm:$0xff] }
 0x80a   :  { %v7188_v37 = vpack.i.bf16 %v2835_v7, %v7185_v1  ;;  %v3163_v7 = vld [vmem:[#allocation2 + $0x19] sm:$0xff] }
 0x80c   :  { %5462 = vxpose.xlu2.b32.cont [7/16] (narrow) %v7093_v49, 8  ;;  %v7193_v49 = vld [vmem:[#allocation2 + $0x21a] sm:$0xff] }
 0x80d   :  { %5314 = vxpose.xlu0.b32.cont [7/16] (narrow) %v7175_v15, 8 }
 0x811   :  { %5392 = vxpose.xlu1.b32.cont [9/16] (narrow) %v6984_v20, 8  ;;  %v2836_v20 = vld [vmem:[#allocation2 + $0x2da] sm:$0xff] }
 0x812   :  { %v7196_v56 = vpack.i.bf16 %v2836_v20, %v7193_v49  ;;  %v3547_v20 = vld [vmem:[#allocation2 + $0x30] sm:$0xff] }
 0x814   :  { %5464 = vxpose.xlu2.b32.cont [8/16] (narrow) %v7100_v13, 8  ;;  %v7201_v13 = vld [vmem:[#allocation2 + $0x22a] sm:$0xff] }
 0x815   :  { %5316 = vxpose.xlu0.b32.cont [8/16] (narrow) %v7180_v3, 8 }
 0x819   :  { %5394 = vxpose.xlu1.b32.cont [10/16] (narrow) %v6992_v52, 8  ;;  %v2837_v52 = vld [vmem:[#allocation2 + $0x2ea] sm:$0xff] }
 0x81a   :  { %v7204_v59 = vpack.i.bf16 %v2837_v52, %v7201_v13  ;;  %v5560_v52 = vpack.i.bf16 %v3563_v4, %v3547_v20  ;;  %v3166_v4 = vld [vmem:[#allocation2 + $0x39] sm:$0xff] }
 0x81c   :  { %5466 = vxpose.xlu2.b32.cont [9/16] (narrow) %v7107_v12, 8  ;;  %v7209_v12 = vld [vmem:[#allocation2 + $0x232] sm:$0xff] }
 0x81d   :  { %5318 = vxpose.xlu0.b32.cont [9/16] (narrow) %v7188_v37, 8 }
 0x821   :  { %5396 = vxpose.xlu1.b32.cont [11/16] (narrow) %v7000_v18, 8  ;;  %v2838_v18 = vld [vmem:[#allocation2 + $0x2f2] sm:$0xff] }
 0x822   :  { %v7212_v62 = vpack.i.bf16 %v2838_v18, %v7209_v12  ;;  %v7262_v18 = vld [vmem:[#allocation2 + $0xe1] sm:$0xff] }
 0x824   :  { %5468 = vxpose.xlu2.b32.cont [10/16] (narrow) %v7114_v6, 8  ;;  %v7217_v6 = vld [vmem:[#allocation2 + $0x242] sm:$0xff] }
 0x825   :  { %5320 = vxpose.xlu0.b32.cont [10/16] (narrow) %v7196_v56, 8 }
 0x829   :  { %5398 = vxpose.xlu1.b32.cont [12/16] (narrow) %v7008_v63, 8  ;;  %v2839_v63 = vld [vmem:[#allocation2 + $0x302] sm:$0xff] }
 0x82a   :  { %v7220_v0 = vpack.i.bf16 %v2839_v63, %v7217_v6  ;;  %v3564_v63 = vld [vmem:[#allocation2 + $0xf8] sm:$0xff] }
 0x82c   :  { %5470 = vxpose.xlu2.b32.cont [11/16] (narrow) %v7121_v43, 8  ;;  %v3017_v43 = vld [vmem:[#allocation2 + $0x270] sm:$0xff] }
 0x82d   :  { %5322 = vxpose.xlu0.b32.cont [11/16] (narrow) %v7204_v59, 8 }
 0x831   :  { %5400 = vxpose.xlu1.b32.cont [13/16] (narrow) %v7016_v21, 8  ;;  %v3033_v21 = vld [vmem:[#allocation2 + $0x330] sm:$0xff] }
 0x832   :  { %v7224_v47 = vpack.i.bf16 %v3033_v21, %v3017_v43  ;;  %v3548_v21 = vld [vmem:[#allocation2 + $0x38] sm:$0xff]  ;;  %v5414_v43 = vpack.i.bf16 %v7262_v18, %v3164_v35  ;;  %v3551_v35 = vld [vmem:[#allocation2 + $0x60] sm:$0xff] }
 0x834   :  { %5472 = vxpose.xlu2.b32.cont [12/16] (narrow) %v7128_v17, 8  ;;  %v7227_v17 = vld [vmem:[#allocation2 + $0x24a] sm:$0xff] }
 0x835   :  { %5324 = vxpose.xlu0.b32.cont [12/16] (narrow) %v7212_v62, 8 }
 0x839   :  { %5402 = vxpose.xlu1.b32.cont [14/16] (narrow) %v7024_v22, 8  ;;  %v7230_v22 = vpack.i.bf16 %v2840_v30, %v7227_v17  ;;  %v5562_v30 = vpack.i.bf16 %v3564_v63, %v3548_v21  ;;  %v3167_v63 = vld [vmem:[#allocation2 + $0x49] sm:$0xff] }
 0x83c   :  { %5474 = vxpose.xlu2.b32.cont [13/16] (narrow) %v7137_v60, 8  ;;  %v2841_v60 = vld [vmem:[#allocation2 + $0x31a] sm:$0xff] }
 0x83d   :  { %5326 = vxpose.xlu0.b32.cont [13/16] (narrow) %v7220_v0, 8  ;;  %v7242_v54 = vpack.i.bf16 %v2841_v60, %v7239_v28  ;;  %v3549_v60 = vld [vmem:[#allocation2 + $0x48] sm:$0xff] }
 0x841   :  { %5404 = vxpose.xlu1.b32.cont [15/16] (narrow) %v7224_v47, 8 }
 0x844   :  { %5476 = vxpose.xlu2.b32.cont [14/16] (narrow) %v7145_v8, 8  ;;  %v2842_v8 = vld [vmem:[#allocation2 + $0x322] sm:$0xff] }
 0x845   :  { %5328 = vxpose.xlu0.b32.cont [14/16] (narrow) %v7230_v22, 8  ;;  %v7253_v53 = vpack.i.bf16 %v2842_v8, %v7250_v46  ;;  %v5564_v8 = vpack.i.bf16 %v3565_v50, %v3549_v60  ;;  %v3552_v50 = vld [vmem:[#allocation2 + $0x68] sm:$0xff] }
 0x849   :  { %5406 = vxpose.xlu1.b32.end [16/16] (narrow) %v7234_v44, 8 }
 0x84c   :  { %5478 = vxpose.xlu2.b32.cont [15/16] (narrow) %v5477_v58, 8 }
 0x84d   :  { %5330 = vxpose.xlu0.b32.cont [15/16] (narrow) %v7242_v54, 8 }
 0x851   :  { %5487 = vxpose.xlu1.b32.start [1/16] (narrow) %v7041_v34, 8  ;;  %v5412_v34 = vpack.i.bf16 %v7258_v33, %v3163_v7  ;;  %v3550_v7 = vld [vmem:[#allocation2 + $0x50] sm:$0xff] }
 0x854   :  { %5480 = vxpose.xlu2.b32.end [16/16] (narrow) %v5479_v23, 8  ;;  %v3566_v23 = vld [vmem:[#allocation2 + $0x110] sm:$0xff] }
 0x855   :  { %5332 = vxpose.xlu0.b32.end [16/16] (narrow) %v7253_v53, 8 }
 0x859   :  { %5489 = vxpose.xlu1.b32.cont [2/16] (narrow) %v7048_v42, 8  ;;  %v3181_v42 = vld [vmem:[#allocation2 + $0xf1] sm:$0xff] }
 0x85a   :  { %v7267_v58 = vpack.i.bf16 %v3181_v42, %v3165_v27  ;;  %v3168_v42 = vld [vmem:[#allocation2 + $0x51] sm:$0xff] }
 0x85c   :  { %5561 = vxpose.xlu2.b32.start [1/16] (narrow) %v5560_v52, 8  ;;  %v3567_v52 = vld [vmem:[#allocation2 + $0x120] sm:$0xff] }
 0x85d   :  { %5413 = vxpose.xlu0.b32.start [1/16] (narrow) %v5412_v34, 8  ;;  %v5566_v34 = vpack.i.bf16 %v3566_v23, %v3550_v7  ;;  %v3553_v23 = vld [vmem:[#allocation2 + $0x78] sm:$0xff] }
 0x861   :  { %5491 = vxpose.xlu1.b32.cont [3/16] (narrow) %v7055_v36, 8  ;;  %v3182_v36 = vld [vmem:[#allocation2 + $0xf9] sm:$0xff] }
 0x862   :  { %v7271_v20 = vpack.i.bf16 %v3182_v36, %v3166_v4  ;;  %v3169_v36 = vld [vmem:[#allocation2 + $0x61] sm:$0xff] }
 0x864   :  { %5563 = vxpose.xlu2.b32.cont [2/16] (narrow) %v5562_v30, 8  ;;  %v3568_v30 = vld [vmem:[#allocation2 + $0x128] sm:$0xff] }
 0x865   :  { %5415 = vxpose.xlu0.b32.cont [2/16] (narrow) %v5414_v43, 8  ;;  %v5568_v43 = vpack.i.bf16 %v3567_v52, %v3551_v35  ;;  %v5570_v60 = vpack.i.bf16 %v3568_v30, %v3552_v50  ;;  %v3554_v52 = vld [vmem:[#allocation2 + $0x80] sm:$0xff]  ;;  %v3555_v30 = vld [vmem:[#allocation2 + $0x90] sm:$0xff] }
 0x869   :  { %5493 = vxpose.xlu1.b32.cont [4/16] (narrow) %v7062_v48, 8  ;;  %v3183_v48 = vld [vmem:[#allocation2 + $0x109] sm:$0xff] }
 0x86a   :  { %v7275_v21 = vpack.i.bf16 %v3183_v48, %v3167_v63  ;;  %v3170_v48 = vld [vmem:[#allocation2 + $0x69] sm:$0xff] }
 0x86c   :  { %5565 = vxpose.xlu2.b32.cont [3/16] (narrow) %v5564_v8, 8  ;;  %v3569_v8 = vld [vmem:[#allocation2 + $0x138] sm:$0xff] }
 0x86d   :  { %5417 = vxpose.xlu0.b32.cont [3/16] (narrow) %v7267_v58, 8  ;;  %v5572_v7 = vpack.i.bf16 %v3569_v8, %v3553_v23  ;;  %v3556_v8 = vld [vmem:[#allocation2 + $0x98] sm:$0xff] }
 0x871   :  { %5495 = vxpose.xlu1.b32.cont [5/16] (narrow) %v7069_v10, 8  ;;  %v3184_v10 = vld [vmem:[#allocation2 + $0x111] sm:$0xff] }
 0x872   :  { %v7279_v27 = vpack.i.bf16 %v3184_v10, %v3168_v42  ;;  %v3171_v10 = vld [vmem:[#allocation2 + $0x79] sm:$0xff] }
 0x874   :  { %5567 = vxpose.xlu2.b32.cont [4/16] (narrow) %v5566_v34, 8  ;;  %v3570_v34 = vld [vmem:[#allocation2 + $0x140] sm:$0xff] }
 0x875   :  { %5419 = vxpose.xlu0.b32.cont [4/16] (narrow) %v7271_v20, 8  ;;  %v5574_v35 = vpack.i.bf16 %v3570_v34, %v3554_v52  ;;  %v3557_v34 = vld [vmem:[#allocation2 + $0xa8] sm:$0xff] }
 0x879   :  { %5497 = vxpose.xlu1.b32.cont [6/16] (narrow) %v7076_v45, 8  ;;  %v3185_v45 = vld [vmem:[#allocation2 + $0x121] sm:$0xff] }
 0x87a   :  { %v7283_v4 = vpack.i.bf16 %v3185_v45, %v3169_v36  ;;  %v3172_v45 = vld [vmem:[#allocation2 + $0x81] sm:$0xff] }
 0x87c   :  { %5569 = vxpose.xlu2.b32.cont [5/16] (narrow) %v5568_v43, 8  ;;  %v3571_v43 = vld [vmem:[#allocation2 + $0x150] sm:$0xff] }
 0x87d   :  { %5421 = vxpose.xlu0.b32.cont [5/16] (narrow) %v7275_v21, 8  ;;  %v5576_v50 = vpack.i.bf16 %v3571_v43, %v3555_v30  ;;  %v3558_v43 = vld [vmem:[#allocation2 + $0xb0] sm:$0xff] }
 0x881   :  { %5499 = vxpose.xlu1.b32.cont [7/16] (narrow) %v7083_v55, 8  ;;  %v3186_v55 = vld [vmem:[#allocation2 + $0x129] sm:$0xff] }
 0x882   :  { %v7287_v63 = vpack.i.bf16 %v3186_v55, %v3170_v48  ;;  %v3173_v55 = vld [vmem:[#allocation2 + $0x91] sm:$0xff] }
 0x884   :  { %5571 = vxpose.xlu2.b32.cont [6/16] (narrow) %v5570_v60, 8  ;;  %v3572_v60 = vld [vmem:[#allocation2 + $0x158] sm:$0xff] }
 0x885   :  { %5423 = vxpose.xlu0.b32.cont [6/16] (narrow) %v7279_v27, 8  ;;  %v5578_v23 = vpack.i.bf16 %v3572_v60, %v3556_v8  ;;  %v7313_v8 = vld [vmem:[#allocation2 + $0xc2] sm:$0xff] }
 0x889   :  { %5501 = vxpose.xlu1.b32.cont [8/16] (narrow) %v7090_v2, 8  ;;  %v3187_v2 = vld [vmem:[#allocation2 + $0x139] sm:$0xff] }
 0x88a   :  { %v7291_v42 = vpack.i.bf16 %v3187_v2, %v3171_v10  ;;  %v3174_v2 = vld [vmem:[#allocation2 + $0x99] sm:$0xff] }
 0x88c   :  { %5573 = vxpose.xlu2.b32.cont [7/16] (narrow) %v5572_v7, 8  ;;  %v3573_v7 = vld [vmem:[#allocation2 + $0x168] sm:$0xff] }
 0x88d   :  { %5425 = vxpose.xlu0.b32.cont [7/16] (narrow) %v7283_v4, 8  ;;  %v5580_v52 = vpack.i.bf16 %v3573_v7, %v3557_v34  ;;  %v3176_v7 = vld [vmem:[#allocation2 + $0xb1] sm:$0xff] }
 0x891   :  { %5503 = vxpose.xlu1.b32.cont [9/16] (narrow) %v7097_v26, 8  ;;  %v3188_v26 = vld [vmem:[#allocation2 + $0x141] sm:$0xff] }
 0x892   :  { %v7295_v36 = vpack.i.bf16 %v3188_v26, %v3172_v45  ;;  %v3559_v26 = vld [vmem:[#allocation2 + $0xc0] sm:$0xff] }
 0x893   :  { %v5584_v45 = vpack.i.bf16 %v7134_v16, %v3559_v26  ;;  %v7321_v16 = vld [vmem:[#allocation2 + $0x18a] sm:$0xff]  ;;  %v3579_v26 = vld [vmem:[#allocation2 + $0x1e0] sm:$0xff] }
 0x894   :  { %5575 = vxpose.xlu2.b32.cont [8/16] (narrow) %v5574_v35, 8  ;;  %v3574_v35 = vld [vmem:[#allocation2 + $0x170] sm:$0xff] }
 0x895   :  { %5427 = vxpose.xlu0.b32.cont [8/16] (narrow) %v7287_v63, 8  ;;  %v5582_v30 = vpack.i.bf16 %v3574_v35, %v3558_v43  ;;  %v3193_v35 = vld [vmem:[#allocation2 + $0x181] sm:$0xff]  ;;  %v3577_v43 = vld [vmem:[#allocation2 + $0x198] sm:$0xff] }
 0x899   :  { %5505 = vxpose.xlu1.b32.cont [10/16] (narrow) %v7104_v19, 8  ;;  %v3189_v19 = vld [vmem:[#allocation2 + $0x151] sm:$0xff] }
 0x89a   :  { %v7299_v48 = vpack.i.bf16 %v3189_v19, %v3173_v55  ;;  %v3192_v19 = vld [vmem:[#allocation2 + $0x171] sm:$0xff] }
 0x89b   :  { %v7317_v55 = vpack.i.bf16 %v3192_v19, %v3176_v7  ;;  %v3562_v19 = vld [vmem:[#allocation2 + $0xe0] sm:$0xff] }
 0x89c   :  { %5577 = vxpose.xlu2.b32.cont [9/16] (narrow) %v5576_v50, 8  ;;  %v3175_v50 = vld [vmem:[#allocation2 + $0xa9] sm:$0xff]  ;;  %v3578_v7 = vld [vmem:[#allocation2 + $0x1a0] sm:$0xff] }
 0x89d   :  { %5429 = vxpose.xlu0.b32.cont [9/16] (narrow) %v7291_v42, 8  ;;  %v5590_v57 = vpack.i.bf16 %v3578_v7, %v3562_v19  ;;  %v3582_v7 = vld [vmem:[#allocation2 + $0x200] sm:$0xff] }
 0x8a1   :  { %5507 = vxpose.xlu1.b32.cont [11/16] (narrow) %v7111_v32, 8  ;;  %v3190_v32 = vld [vmem:[#allocation2 + $0x159] sm:$0xff] }
 0x8a2   :  { %v7303_v10 = vpack.i.bf16 %v3190_v32, %v3174_v2  ;;  %v3561_v2 = vld [vmem:[#allocation2 + $0xd8] sm:$0xff] }
 0x8a4   :  { %5579 = vxpose.xlu2.b32.cont [10/16] (narrow) %v5578_v23, 8 }
 0x8a5   :  { %5431 = vxpose.xlu0.b32.cont [10/16] (narrow) %v7295_v36, 8 }
 0x8a9   :  { %5509 = vxpose.xlu1.b32.cont [12/16] (narrow) %v7118_v39, 8  ;;  %v3191_v39 = vld [vmem:[#allocation2 + $0x169] sm:$0xff] }
 0x8aa   :  { %v7307_v60 = vpack.i.bf16 %v3191_v39, %v3175_v50  ;;  %v5588_v50 = vpack.i.bf16 %v3577_v43, %v3561_v2  ;;  %v3787_v43 = vld [vmem:[#allocation2 + $0x2a1] sm:$0xff] }
 0x8ac   :  { %5581 = vxpose.xlu2.b32.cont [11/16] (narrow) %v5580_v52, 8  ;;  %v7323_v52 = vld [vmem:[#allocation2 + $0xca] sm:$0xff] }
 0x8ad   :  { %5433 = vxpose.xlu0.b32.cont [11/16] (narrow) %v7299_v48, 8  ;;  %v5516_v32 = vpack.i.bf16 %v7321_v16, %v7323_v52 }
 0x8b1   :  { %5511 = vxpose.xlu1.b32.cont [13/16] (narrow) %v7125_v11, 8  ;;  %v7311_v11 = vld [vmem:[#allocation2 + $0x182] sm:$0xff] }
 0x8b2   :  { %v5514_v23 = vpack.i.bf16 %v7311_v11, %v7313_v8 }
 0x8b4   :  { %5583 = vxpose.xlu2.b32.cont [12/16] (narrow) %v5582_v30, 8  ;;  %v3177_v30 = vld [vmem:[#allocation2 + $0xc1] sm:$0xff] }
 0x8b5   :  { %5435 = vxpose.xlu0.b32.cont [12/16] (narrow) %v7303_v10, 8  ;;  %v7327_v39 = vpack.i.bf16 %v3193_v35, %v3177_v30  ;;  %v3580_v35 = vld [vmem:[#allocation2 + $0x1e8] sm:$0xff] }
 0x8b6   :  { %v3771_v30 = vld [vmem:[#allocation2 + $0x1e1] sm:$0xff] }
 0x8b9   :  { %5513 = vxpose.xlu1.b32.cont [14/16] (narrow) %v7132_v61, 8  ;;  %v3560_v61 = vld [vmem:[#allocation2 + $0xc8] sm:$0xff] }
 0x8ba   :  { %v5586_v34 = vpack.i.bf16 %v7142_v40, %v3560_v61  ;;  %v3595_v40 = vld [vmem:[#allocation2 + $0x2a0] sm:$0xff]  ;;  %v3178_v61 = vld [vmem:[#allocation2 + $0xc9] sm:$0xff] }
 0x8bc   :  { %5585 = vxpose.xlu2.b32.cont [13/16] (narrow) %v5584_v45, 8  ;;  %v5597_v45 = vpack.i.bf16 %v3595_v40, %v3579_v26  ;;  %v3597_v40 = vld [vmem:[#allocation2 + $0x2b8] sm:$0xff] }
 0x8bd   :  { %5437 = vxpose.xlu0.b32.cont [13/16] (narrow) %v7307_v60, 8  ;;  %v3581_v26 = vld [vmem:[#allocation2 + $0x1f8] sm:$0xff] }
 0x8c1   :  { %5515 = vxpose.xlu1.b32.cont [15/16] (narrow) %v5514_v23, 8  ;;  %v3194_v23 = vld [vmem:[#allocation2 + $0x189] sm:$0xff] }
 0x8c4   :  { %5587 = vxpose.xlu2.b32.cont [14/16] (narrow) %v5586_v34, 8  ;;  %v7330_v34 = vpack.i.bf16 %v3194_v23, %v3178_v61  ;;  %v3772_v23 = vld [vmem:[#allocation2 + $0x1e9] sm:$0xff] }
 0x8c5   :  { %5439 = vxpose.xlu0.b32.cont [14/16] (narrow) %v7317_v55, 8  ;;  %v5673_v19 = vpack.i.bf16 %v3788_v5, %v3772_v23  ;;  %v3791_v23 = vld [vmem:[#allocation2 + $0x2d1] sm:$0xff] }
 0x8c9   :  { %5517 = vxpose.xlu1.b32.end [16/16] (narrow) %v5516_v32, 8  ;;  %v3596_v32 = vld [vmem:[#allocation2 + $0x2a8] sm:$0xff] }
 0x8ca   :  { %v5599_v2 = vpack.i.bf16 %v3596_v32, %v3580_v35  ;;  %v3789_v32 = vld [vmem:[#allocation2 + $0x2b9] sm:$0xff] }
 0x8cb   :  { %v3773_v35 = vld [vmem:[#allocation2 + $0x1f9] sm:$0xff] }
 0x8cc   :  { %5589 = vxpose.xlu2.b32.cont [15/16] (narrow) %v5588_v50, 8  ;;  %v5671_v50 = vpack.i.bf16 %v3787_v43, %v3771_v30  ;;  %v3583_v43 = vld [vmem:[#allocation2 + $0x210] sm:$0xff] }
 0x8cd   :  { %5441 = vxpose.xlu0.b32.cont [15/16] (narrow) %v7327_v39, 8 }
 0x8d1   :  { %5598 = vxpose.xlu1.b32.start [1/16] (narrow) %v5597_v45, 8  ;;  %v5601_v45 = vpack.i.bf16 %v3597_v40, %v3581_v26  ;;  %v3774_v40 = vld [vmem:[#allocation2 + $0x201] sm:$0xff]  ;;  %v3584_v26 = vld [vmem:[#allocation2 + $0x218] sm:$0xff] }
 0x8d4   :  { %5591 = vxpose.xlu2.b32.end [16/16] (narrow) %v5590_v57, 8  ;;  %v3598_v57 = vld [vmem:[#allocation2 + $0x2c0] sm:$0xff] }
 0x8d5   :  { %5443 = vxpose.xlu0.b32.end [16/16] (narrow) %v7330_v34, 8  ;;  %v5603_v61 = vpack.i.bf16 %v3598_v57, %v3582_v7  ;;  %v3585_v7 = vld [vmem:[#allocation2 + $0x228] sm:$0xff] }
 0x8d9   :  { %5600 = vxpose.xlu1.b32.cont [2/16] (narrow) %v5599_v2, 8  ;;  %v5675_v2 = vpack.i.bf16 %v3789_v32, %v3773_v35  ;;  %v3792_v32 = vld [vmem:[#allocation2 + $0x2d9] sm:$0xff] }
 0x8da   :  { %v3776_v35 = vld [vmem:[#allocation2 + $0x219] sm:$0xff] }
 0x8dc   :  { %5672 = vxpose.xlu2.b32.start [1/16] (narrow) %v5671_v50, 8  ;;  %v3790_v50 = vld [vmem:[#allocation2 + $0x2c1] sm:$0xff] }
 0x8dd   :  { %5524 = vxpose.xlu0.b32.start [1/16] (narrow) %v7155_v24, 8  ;;  %v3599_v24 = vld [vmem:[#allocation2 + $0x2d0] sm:$0xff]  ;;  %v5677_v5 = vpack.i.bf16 %v3790_v50, %v3774_v40 }
 0x8de   :  { %v5605_v30 = vpack.i.bf16 %v3599_v24, %v3583_v43  ;;  %v3586_v24 = vld [vmem:[#allocation2 + $0x230] sm:$0xff] }
 0x8df   :  { %v3777_v50 = vld [vmem:[#allocation2 + $0x229] sm:$0xff] }
 0x8e1   :  { %5602 = vxpose.xlu1.b32.cont [3/16] (narrow) %v5601_v45, 8 }
 0x8e4   :  { %5674 = vxpose.xlu2.b32.cont [2/16] (narrow) %v5673_v19, 8  ;;  %v3775_v19 = vld [vmem:[#allocation2 + $0x211] sm:$0xff] }
 0x8e5   :  { %5526 = vxpose.xlu0.b32.cont [2/16] (narrow) %v7160_v51, 8  ;;  %v3600_v51 = vld [vmem:[#allocation2 + $0x2d8] sm:$0xff]  ;;  %v5679_v57 = vpack.i.bf16 %v3791_v23, %v3775_v19  ;;  %v3588_v19 = vld [vmem:[#allocation2 + $0x248] sm:$0xff] }
 0x8e6   :  { %v5607_v45 = vpack.i.bf16 %v3600_v51, %v3584_v26  ;;  %v3794_v26 = vld [vmem:[#allocation2 + $0x2f1] sm:$0xff] }
 0x8e9   :  { %5604 = vxpose.xlu1.b32.cont [4/16] (narrow) %v5603_v61, 8 }
 0x8ec   :  { %5676 = vxpose.xlu2.b32.cont [3/16] (narrow) %v5675_v2, 8  ;;  %v5681_v2 = vpack.i.bf16 %v3792_v32, %v3776_v35  ;;  %v3589_v32 = vld [vmem:[#allocation2 + $0x258] sm:$0xff] }
 0x8ed   :  { %5528 = vxpose.xlu0.b32.cont [3/16] (narrow) %v7165_v9, 8  ;;  %v3601_v9 = vld [vmem:[#allocation2 + $0x2e8] sm:$0xff] }
 0x8ee   :  { %v5609_v61 = vpack.i.bf16 %v3601_v9, %v3585_v7  ;;  %v3795_v9 = vld [vmem:[#allocation2 + $0x301] sm:$0xff] }
 0x8ef   :  { %v3779_v7 = vld [vmem:[#allocation2 + $0x241] sm:$0xff] }
 0x8f1   :  { %5606 = vxpose.xlu1.b32.cont [5/16] (narrow) %v5605_v30, 8  ;;  %v3793_v30 = vld [vmem:[#allocation2 + $0x2e9] sm:$0xff] }
 0x8f2   :  { %v5683_v40 = vpack.i.bf16 %v3793_v30, %v3777_v50  ;;  %v3797_v50 = vld [vmem:[#allocation2 + $0x319] sm:$0xff] }
 0x8f4   :  { %5678 = vxpose.xlu2.b32.cont [4/16] (narrow) %v5677_v5, 8  ;;  %v3587_v5 = vld [vmem:[#allocation2 + $0x240] sm:$0xff] }
 0x8f5   :  { %5530 = vxpose.xlu0.b32.cont [4/16] (narrow) %v7170_v31, 8  ;;  %v3602_v31 = vld [vmem:[#allocation2 + $0x2f0] sm:$0xff] }
 0x8f6   :  { %v5611_v43 = vpack.i.bf16 %v3602_v31, %v3586_v24  ;;  %v3780_v31 = vld [vmem:[#allocation2 + $0x249] sm:$0xff] }
 0x8f9   :  { %5608 = vxpose.xlu1.b32.cont [6/16] (narrow) %v5607_v45, 8  ;;  %v3778_v45 = vld [vmem:[#allocation2 + $0x231] sm:$0xff] }
 0x8fa   :  { %v5685_v23 = vpack.i.bf16 %v3794_v26, %v3778_v45  ;;  %v3593_v45 = vld [vmem:[#allocation2 + $0x288] sm:$0xff] }
 0x8fc   :  { %5680 = vxpose.xlu2.b32.cont [5/16] (narrow) %v5679_v57, 8 }
 0x8fd   :  { %5532 = vxpose.xlu0.b32.cont [5/16] (narrow) %v7175_v15, 8  ;;  %v3603_v15 = vld [vmem:[#allocation2 + $0x300] sm:$0xff] }
 0x8fe   :  { %v5613_v51 = vpack.i.bf16 %v3603_v15, %v3587_v5  ;;  %v3782_v5 = vld [vmem:[#allocation2 + $0x261] sm:$0xff] }
 0x901   :  { %5610 = vxpose.xlu1.b32.cont [7/16] (narrow) %v5609_v61, 8  ;;  %v5687_v61 = vpack.i.bf16 %v3795_v9, %v3779_v7  ;;  %v3785_v9 = vld [vmem:[#allocation2 + $0x289] sm:$0xff] }
 0x904   :  { %5682 = vxpose.xlu2.b32.cont [6/16] (narrow) %v5681_v2, 8  ;;  %v3796_v2 = vld [vmem:[#allocation2 + $0x309] sm:$0xff] }
 0x905   :  { %5534 = vxpose.xlu0.b32.cont [6/16] (narrow) %v7180_v3, 8  ;;  %v3604_v3 = vld [vmem:[#allocation2 + $0x308] sm:$0xff]  ;;  %v5689_v24 = vpack.i.bf16 %v3796_v2, %v3780_v31 }
 0x906   :  { %v5615_v57 = vpack.i.bf16 %v3604_v3, %v3588_v19  ;;  %v3784_v3 = vld [vmem:[#allocation2 + $0x279] sm:$0xff]  ;;  %v3610_v19 = vld [vmem:[#allocation2 + $0x350] sm:$0xff] }
 0x909   :  { %5612 = vxpose.xlu1.b32.cont [8/16] (narrow) %v5611_v43, 8  ;;  %v3590_v43 = vld [vmem:[#allocation2 + $0x260] sm:$0xff] }
 0x90c   :  { %5684 = vxpose.xlu2.b32.cont [7/16] (narrow) %v5683_v40, 8  ;;  %v3781_v40 = vld [vmem:[#allocation2 + $0x259] sm:$0xff] }
 0x90d   :  { %5536 = vxpose.xlu0.b32.cont [7/16] (narrow) %v7188_v37, 8  ;;  %v3605_v37 = vld [vmem:[#allocation2 + $0x318] sm:$0xff]  ;;  %v5691_v15 = vpack.i.bf16 %v3797_v50, %v3781_v40 }
 0x90e   :  { %v5617_v35 = vpack.i.bf16 %v3605_v37, %v3589_v32  ;;  %v3802_v37 = vld [vmem:[#allocation2 + $0x351] sm:$0xff]  ;;  %v3965_v40 = vld [vmem:[#allocation2 + $0x1fa] sm:$0xff] }
 0x90f   :  { %v3931_v32 = vld [vmem:[#allocation2 + $0x32] sm:$0xff] }
 0x910   :  { %v3934_v50 = vld [vmem:[#allocation2 + $0x52] sm:$0xff] }
 0x911   :  { %5614 = vxpose.xlu1.b32.cont [9/16] (narrow) %v5613_v51, 8 }
 0x914   :  { %5686 = vxpose.xlu2.b32.cont [8/16] (narrow) %v5685_v23, 8  ;;  %v3609_v23 = vld [vmem:[#allocation2 + $0x348] sm:$0xff] }
 0x915   :  { %5538 = vxpose.xlu0.b32.cont [8/16] (narrow) %v7196_v56, 8  ;;  %v3606_v56 = vld [vmem:[#allocation2 + $0x320] sm:$0xff] }
 0x916   :  { %v5619_v30 = vpack.i.bf16 %v3606_v56, %v3590_v43  ;;  %v3963_v56 = vld [vmem:[#allocation2 + $0x1e2] sm:$0xff]  ;;  %v3933_v43 = vld [vmem:[#allocation2 + $0x4a] sm:$0xff] }
 0x919   :  { %5616 = vxpose.xlu1.b32.cont [10/16] (narrow) %v5615_v57, 8 }
 0x91c   :  { %5688 = vxpose.xlu2.b32.cont [9/16] (narrow) %v5687_v61, 8 }
 0x91d   :  { %5540 = vxpose.xlu0.b32.cont [9/16] (narrow) %v7204_v59, 8  ;;  %v3798_v59 = vld [vmem:[#allocation2 + $0x321] sm:$0xff] }
 0x91e   :  { %v5693_v51 = vpack.i.bf16 %v3798_v59, %v3782_v5  ;;  %v3966_v59 = vld [vmem:[#allocation2 + $0x202] sm:$0xff]  ;;  %v7387_v5 = vpop.trf.xlu0 }
 0x921   :  { %5618 = vxpose.xlu1.b32.cont [11/16] (narrow) %v5617_v35, 8  ;;  %v3402_v35 = vld [vmem:[#allocation2 + $0x27a] sm:$0xff] }
 0x924   :  { %5690 = vxpose.xlu2.b32.cont [10/16] (narrow) %v5689_v24, 8  ;;  %v3932_v24 = vld [vmem:[#allocation2 + $0x3a] sm:$0xff] }
 0x925   :  { %5542 = vxpose.xlu0.b32.cont [10/16] (narrow) %v7212_v62, 8  ;;  %v3783_v62 = vld [vmem:[#allocation2 + $0x271] sm:$0xff] }
 0x926   :  { %v5695_v26 = vpack.i.bf16 %v7236_v14, %v3783_v62  ;;  %v3801_v14 = vld [vmem:[#allocation2 + $0x349] sm:$0xff] }
 0x927   :  { %v5699_v61 = vpack.i.bf16 %v3801_v14, %v3785_v9  ;;  %v3985_v62 = vld [vmem:[#allocation2 + $0x2ea] sm:$0xff] }
 0x929   :  { %5620 = vxpose.xlu1.b32.cont [12/16] (narrow) %v5619_v30, 8  ;;  %v3964_v30 = vld [vmem:[#allocation2 + $0x1ea] sm:$0xff] }
 0x92c   :  { %5692 = vxpose.xlu2.b32.cont [11/16] (narrow) %v5691_v15, 8  ;;  %v3935_v15 = vld [vmem:[#allocation2 + $0x62] sm:$0xff] }
 0x92d   :  { %5544 = vxpose.xlu0.b32.cont [11/16] (narrow) %v7220_v0, 8  ;;  %v5625_v0 = vpack.i.bf16 %v3609_v23, %v3593_v45  ;;  %v3952_v45 = vld [vmem:[#allocation2 + $0x12a] sm:$0xff]  ;;  %v7393_v23 = vpop.trf.xlu0 }
 0x931   :  { %5622 = vxpose.xlu1.b32.cont [13/16] (narrow) %v7224_v47, 8  ;;  %v5697_v47 = vpack.i.bf16 %v7247_v41, %v3784_v3  ;;  %v7357_v41 = vld [vmem:[#allocation2 + $0x33a] sm:$0xff] }
 0x932   :  { %v5553_v2 = vpack.i.bf16 %v7357_v41, %v3402_v35 }
 0x934   :  { %5694 = vxpose.xlu2.b32.cont [12/16] (narrow) %v5693_v51, 8  ;;  %v7389_v51 = vpop.trf.xlu2 }
 0x935   :  { %5546 = vxpose.xlu0.b32.cont [12/16] (narrow) %v7230_v22, 8  ;;  %v3594_v22 = vld [vmem:[#allocation2 + $0x290] sm:$0xff] }
 0x936   :  { %v5627_v57 = vpack.i.bf16 %v3610_v19, %v3594_v22  ;;  %v3953_v22 = vld [vmem:[#allocation2 + $0x13a] sm:$0xff]  ;;  %v7399_v19 = vpop.trf.xlu0 }
 0x939   :  { %5624 = vxpose.xlu1.b32.cont [14/16] (narrow) %v7234_v44, 8  ;;  %v7351_v44 = vld [vmem:[#allocation2 + $0x332] sm:$0xff] }
 0x93c   :  { %5696 = vxpose.xlu2.b32.cont [13/16] (narrow) %v5695_v26, 8  ;;  %v7391_v26 = vpop.trf.xlu1  ;;  %v7395_v3 = vpop.trf.xlu2 }
 0x93d   :  { %5548 = vxpose.xlu0.b32.cont [13/16] (narrow) %v7242_v54, 8  ;;  %v7353_v54 = vld [vmem:[#allocation2 + $0x272] sm:$0xff] }
 0x93e   :  { %v5551_v7 = vpack.i.bf16 %v7351_v44, %v7353_v54 }
 0x941   :  { %5626 = vxpose.xlu1.b32.cont [15/16] (narrow) %v5625_v0, 8  ;;  %v3986_v0 = vld [vmem:[#allocation2 + $0x2f2] sm:$0xff] }
 0x944   :  { %5698 = vxpose.xlu2.b32.cont [14/16] (narrow) %v5697_v47, 8  ;;  %v7397_v47 = vpop.trf.xlu1  ;;  %v7401_v9 = vpop.trf.xlu2 }
 0x945   :  { %5550 = vxpose.xlu0.b32.cont [14/16] (narrow) %v7253_v53, 8  ;;  %v3786_v53 = vld [vmem:[#allocation2 + $0x291] sm:$0xff] }
 0x946   :  { %v5701_v31 = vpack.i.bf16 %v3802_v37, %v3786_v53 }
 0x949   :  { %5628 = vxpose.xlu1.b32.end [16/16] (narrow) %v5627_v57, 8  ;;  %v3987_v57 = vld [vmem:[#allocation2 + $0x302] sm:$0xff] }
 0x94c   :  { %5700 = vxpose.xlu2.b32.cont [15/16] (narrow) %v5699_v61, 8  ;;  %v7403_v14 = vpop.trf.xlu1  ;;  %v3988_v61 = vld [vmem:[#allocation2 + $0x30a] sm:$0xff]  ;;  %v7407_v53 = vpop.trf.xlu2 }
 0x94d   :  { %5552 = vxpose.xlu0.b32.cont [15/16] (narrow) %v5551_v7, 8  ;;  %v7405_v7 = vpop.trf.xlu0 }
 0x951   :  { %3995 = vxpose.xlu1.b32.start [1/16] (narrow) %v3931_v32, 8  ;;  %v3955_v32 = vld [vmem:[#allocation2 + $0x152] sm:$0xff] }
 0x954   :  { %5702 = vxpose.xlu2.b32.end [16/16] (narrow) %v5701_v31, 8  ;;  %v7409_v37 = vpop.trf.xlu1 }
 0x955   :  { %5554 = vxpose.xlu0.b32.end [16/16] (narrow) %v5553_v2, 8  ;;  %v3989_v2 = vld [vmem:[#allocation2 + $0x31a] sm:$0xff] }
 0x959   :  { %3996 = vxpose.xlu1.b32.cont [2/16] (narrow) %v3932_v24, 8 }
 0x95c   :  { %4059 = vxpose.xlu2.b32.start [1/16] (narrow) %v3963_v56, 8  ;;  %v3956_v56 = vld [vmem:[#allocation2 + $0x15a] sm:$0xff] }
 0x95d   :  { %5635 = vxpose.xlu0.b32.start [1/16] (narrow) %v7267_v58, 8  ;;  %v3936_v58 = vld [vmem:[#allocation2 + $0x6a] sm:$0xff] }
 0x961   :  { %3997 = vxpose.xlu1.b32.cont [3/16] (narrow) %v3933_v43, 8 }
 0x964   :  { %4060 = vxpose.xlu2.b32.cont [2/16] (narrow) %v3964_v30, 8  ;;  %v3990_v30 = vld [vmem:[#allocation2 + $0x322] sm:$0xff] }
 0x965   :  { %5637 = vxpose.xlu0.b32.cont [2/16] (narrow) %v7271_v20, 8  ;;  %v3937_v20 = vld [vmem:[#allocation2 + $0x7a] sm:$0xff] }
 0x969   :  { %3998 = vxpose.xlu1.b32.cont [4/16] (narrow) %v3934_v50, 8 }
 0x96c   :  { %4061 = vxpose.xlu2.b32.cont [3/16] (narrow) %v3965_v40, 8 }
 0x96d   :  { %5639 = vxpose.xlu0.b32.cont [3/16] (narrow) %v7275_v21, 8  ;;  %v3938_v21 = vld [vmem:[#allocation2 + $0x82] sm:$0xff] }
 0x971   :  { %3999 = vxpose.xlu1.b32.cont [5/16] (narrow) %v3935_v15, 8  ;;  %v3957_v15 = vld [vmem:[#allocation2 + $0x16a] sm:$0xff] }
 0x974   :  { %4062 = vxpose.xlu2.b32.cont [4/16] (narrow) %v3966_v59, 8 }
 0x975   :  { %5641 = vxpose.xlu0.b32.cont [4/16] (narrow) %v7279_v27, 8  ;;  %v3939_v27 = vld [vmem:[#allocation2 + $0x92] sm:$0xff]  ;;  %v7413_v31 = vpop.trf.xlu2  ;;  %v7415_v24 = vpop.trf.xlu1 }
 0x976   :  { %v5704_v59 = vunpack.i.l.bf16 %v7413_v31 }
 0x979   :  { %4000 = vxpose.xlu1.b32.cont [6/16] (narrow) %v3936_v58, 8  ;;  %v5630_v58 = vunpack.i.l.bf16 %v7415_v24 }
 0x97c   :  { %4063 = vxpose.xlu2.b32.cont [5/16] (narrow) %v7185_v1, 8  ;;  %v3941_v1 = vld [vmem:[#allocation2 + $0xaa] sm:$0xff] }
 0x97d   :  { %5643 = vxpose.xlu0.b32.cont [5/16] (narrow) %v7283_v4, 8  ;;  %v3940_v4 = vld [vmem:[#allocation2 + $0x9a] sm:$0xff] }
 0x981   :  { %4001 = vxpose.xlu1.b32.cont [7/16] (narrow) %v3937_v20, 8 }
 0x984   :  { %4064 = vxpose.xlu2.b32.cont [6/16] (narrow) %v7193_v49, 8  ;;  %v3942_v49 = vld [vmem:[#allocation2 + $0xb2] sm:$0xff] }
 0x985   :  { %5645 = vxpose.xlu0.b32.cont [6/16] (narrow) %v7287_v63, 8  ;;  %v3979_v63 = vld [vmem:[#allocation2 + $0x2a2] sm:$0xff] }
 0x989   :  { %4002 = vxpose.xlu1.b32.cont [8/16] (narrow) %v3938_v21, 8  ;;  %v5593_v21 = vunpack.i.l.bf16 %v7407_v53 }
 0x98c   :  { %4065 = vxpose.xlu2.b32.cont [7/16] (narrow) %v7201_v13, 8  ;;  %v3945_v13 = vld [vmem:[#allocation2 + $0xda] sm:$0xff] }
 0x98d   :  { %5647 = vxpose.xlu0.b32.cont [7/16] (narrow) %v7291_v42, 8 }
 0x991   :  { %4003 = vxpose.xlu1.b32.cont [9/16] (narrow) %v3939_v27, 8 }
 0x994   :  { %4066 = vxpose.xlu2.b32.cont [8/16] (narrow) %v7209_v12, 8  ;;  %v3769_v12 = vld [vmem:[#allocation2 + $0x199] sm:$0xff] }
 0x995   :  { %5649 = vxpose.xlu0.b32.cont [8/16] (narrow) %v7295_v36, 8  ;;  %v3978_v36 = vld [vmem:[#allocation2 + $0x292] sm:$0xff] }
 0x999   :  { %4004 = vxpose.xlu1.b32.cont [10/16] (narrow) %v3940_v4, 8  ;;  %v4165_v4 = vrot.slane %v5704_v59, 4  ;;  %v3993_v59 = vld [vmem:[#allocation2 + $0x34a] sm:$0xff] }
 0x99c   :  { %4067 = vxpose.xlu2.b32.cont [9/16] (narrow) %v7217_v6, 8  ;;  %v3946_v6 = vld [vmem:[#allocation2 + $0xe2] sm:$0xff] }
 0x99d   :  { %5651 = vxpose.xlu0.b32.cont [9/16] (narrow) %v7299_v48, 8  ;;  %v3980_v48 = vld [vmem:[#allocation2 + $0x2aa] sm:$0xff] }
 0x9a1   :  { %4005 = vxpose.xlu1.b32.cont [11/16] (narrow) %v3941_v1, 8  ;;  %v5482_v1 = vunpack.i.l.bf16 %v7401_v9 }
 0x9a4   :  { %4068 = vxpose.xlu2.b32.cont [10/16] (narrow) %v7227_v17, 8  ;;  %v5662_v17 = vpack.i.bf16 %v3769_v12, %v7258_v33  ;;  %v3982_v33 = vld [vmem:[#allocation2 + $0x2c2] sm:$0xff] }
 0x9a5   :  { %5653 = vxpose.xlu0.b32.cont [10/16] (narrow) %v7303_v10, 8  ;;  %v3947_v10 = vld [vmem:[#allocation2 + $0xf2] sm:$0xff] }
 0x9a9   :  { %4006 = vxpose.xlu1.b32.cont [12/16] (narrow) %v3942_v49, 8  ;;  %v5445_v49 = vunpack.i.l.bf16 %v7405_v7 }
 0x9ac   :  { %4069 = vxpose.xlu2.b32.cont [11/16] (narrow) %v7239_v28, 8  ;;  %v3977_v28 = vld [vmem:[#allocation2 + $0x28a] sm:$0xff] }
 0x9ad   :  { %5655 = vxpose.xlu0.b32.cont [11/16] (narrow) %v7307_v60, 8  ;;  %v3981_v60 = vld [vmem:[#allocation2 + $0x2ba] sm:$0xff] }
 0x9b1   :  { %4007 = vxpose.xlu1.b32.cont [13/16] (narrow) %v7313_v8, 8  ;;  %v3948_v8 = vld [vmem:[#allocation2 + $0xfa] sm:$0xff] }
 0x9b4   :  { %4070 = vxpose.xlu2.b32.cont [12/16] (narrow) %v7250_v46, 8  ;;  %v3770_v46 = vld [vmem:[#allocation2 + $0x1a1] sm:$0xff] }
 0x9b5   :  { %5657 = vxpose.xlu0.b32.cont [12/16] (narrow) %v7317_v55, 8  ;;  %v5664_v42 = vpack.i.bf16 %v3770_v46, %v7262_v18  ;;  %v3949_v55 = vld [vmem:[#allocation2 + $0x10a] sm:$0xff]  ;;  %v3984_v18 = vld [vmem:[#allocation2 + $0x2da] sm:$0xff]  ;;  %v4185_v46 = vsel %vm2021_vm3, %v5630_v58, %v4165_v4  ;;  %v5337_v58 = vunpack.i.h.bf16 %v7399_v19 }
 0x9b9   :  { %4008 = vxpose.xlu1.b32.cont [14/16] (narrow) %v7323_v52, 8  ;;  %v3983_v52 = vld [vmem:[#allocation2 + $0x2d2] sm:$0xff] }
 0x9bc   :  { %4071 = vxpose.xlu2.b32.cont [13/16] (narrow) %v7353_v54, 8  ;;  %v3954_v54 = vld [vmem:[#allocation2 + $0x142] sm:$0xff] }
 0x9bd   :  { %5659 = vxpose.xlu0.b32.cont [13/16] (narrow) %v7327_v39, 8  ;;  %v3950_v39 = vld [vmem:[#allocation2 + $0x112] sm:$0xff] }
 0x9c1   :  { %4009 = vxpose.xlu1.b32.cont [15/16] (narrow) %v3945_v13, 8  ;;  %v5519_v13 = vunpack.i.l.bf16 %v7409_v37 }
 0x9c4   :  { %4072 = vxpose.xlu2.b32.cont [14/16] (narrow) %v3402_v35, 8  ;;  %v7411_v35 = vpop.trf.xlu0 }
 0x9c5   :  { %5661 = vxpose.xlu0.b32.cont [14/16] (narrow) %v7330_v34, 8  ;;  %v3951_v34 = vld [vmem:[#allocation2 + $0x122] sm:$0xff]  ;;  %v5556_v27 = vunpack.i.l.bf16 %v7411_v35 }
 0x9c9   :  { %4010 = vxpose.xlu1.b32.end [16/16] (narrow) %v3946_v6, 8  ;;  %v4153_v6 = vrot.slane %v5556_v27, 4 }
 0x9cc   :  { %4073 = vxpose.xlu2.b32.cont [15/16] (narrow) %v3977_v28, 8  ;;  %v5408_v28 = vunpack.i.l.bf16 %v7403_v14 }
 0x9cd   :  { %5663 = vxpose.xlu0.b32.cont [15/16] (narrow) %v5662_v17, 8  ;;  %v5334_v17 = vunpack.i.l.bf16 %v7399_v19 }
 0x9d1   :  { %4091 = vxpose.xlu1.b32.start [1/16] (narrow) %v3979_v63, 8  ;;  %v4151_v63 = vrot.slane %v5519_v13, 4 }
 0x9d4   :  { %4074 = vxpose.xlu2.b32.end [16/16] (narrow) %v3978_v36, 8  ;;  %v5297_v36 = vunpack.i.l.bf16 %v7397_v47 }
 0x9d5   :  { %5665 = vxpose.xlu0.b32.end [16/16] (narrow) %v5664_v42, 8  ;;  %v5371_v42 = vunpack.i.l.bf16 %v7395_v3 }
 0x9d9   :  { %4092 = vxpose.xlu1.b32.cont [2/16] (narrow) %v3980_v48, 8 }
 0x9dd   :  { %4027 = vxpose.xlu0.b32.start [1/16] (narrow) %v3947_v10, 8  ;;  %v4181_v10 = vsel %vm2021_vm3, %v5482_v1, %v4153_v6  ;;  %v5522_v1 = vunpack.i.h.bf16 %v7409_v37 }
 0x9e1   :  { %4093 = vxpose.xlu1.b32.cont [3/16] (narrow) %v3981_v60, 8  ;;  %v4141_v60 = vrot.slane %v5408_v28, 4 }
 0x9e5   :  { %4028 = vxpose.xlu0.b32.cont [2/16] (narrow) %v3948_v8, 8  ;;  %v5260_v8 = vunpack.i.l.bf16 %v7393_v23 }
 0x9e9   :  { %4094 = vxpose.xlu1.b32.cont [4/16] (narrow) %v3982_v33, 8  ;;  %v4179_v33 = vsel %vm2021_vm3, %v5445_v49, %v4151_v63  ;;  %v3962_v49 = vld [vmem:[#allocation2 + $0x1a2] sm:$0xff] }
 0x9ed   :  { %4029 = vxpose.xlu0.b32.cont [3/16] (narrow) %v3949_v55, 8  ;;  %v4139_v55 = vrot.slane %v5371_v42, 4 }
 0x9f1   :  { %4095 = vxpose.xlu1.b32.cont [5/16] (narrow) %v3983_v52, 8  ;;  %v5186_v52 = vunpack.i.l.bf16 %v7391_v26 }
 0x9f5   :  { %4030 = vxpose.xlu0.b32.cont [4/16] (narrow) %v3950_v39, 8  ;;  %v4075_v50 = vpop.trf.xlu2  ;;  %v4011_v40 = vpop.trf.xlu1  ;;  %v5263_v39 = vunpack.i.h.bf16 %v7393_v23  ;;  %v5226_v23 = vunpack.i.h.bf16 %v7389_v51 }
 0x9f6   :  { %4515 = vmatpush.msk.msrb.mxu2 %vm2021_vm3, %v4075_v50  ;;  %4511 = vmatpush.msk.msrb.mxu0 %vm2021_vm3, %v4011_v40  ;;  %v5374_v50 = vunpack.i.h.bf16 %v7395_v3 }
 0x9f8   :  { %4255 = vmatpush.msrb.mxu2 %v4185_v46  ;;  %v4140_v40 = vrot.slane %v5374_v50, 4  ;;  %v7787_v46 = vmov 0   ;;  %v7795_v50 = vld [vmem:[#allocation41_spill] sm:$0xff] }
 0x9f9   :  { %4096 = vxpose.xlu1.b32.cont [6/16] (narrow) %v3984_v18, 8  ;;  %v4177_v18 = vsel %vm2021_vm3, %v5334_v17, %v4141_v60 }
 0x9fa   :  { %4256 = vmatpush.msrb.mxu2 %v4181_v10 }
 0x9fc   :  { %4257 = vmatpush.msrb.mxu2 %v4177_v18 }
 0x9fd   :  { %4031 = vxpose.xlu0.b32.cont [5/16] (narrow) %v3951_v34, 8  ;;  %v4129_v34 = vrot.slane %v5260_v8, 4 }
 0xa01   :  { %4097 = vxpose.xlu1.b32.cont [7/16] (narrow) %v3985_v62, 8  ;;  %v7417_v43 = vpop.trf.xlu0  ;;  %v3958_v62 = vld [vmem:[#allocation2 + $0x172] sm:$0xff] }
 0xa02   :  { %v5667_v20 = vunpack.i.l.bf16 %v7417_v43  ;;  %v5670_v37 = vunpack.i.h.bf16 %v7417_v43 }
 0xa04   :  { %v4163_v12 = vrot.slane %v5667_v20, 4 }
 0xa05   :  { %4032 = vxpose.xlu0.b32.cont [6/16] (narrow) %v3952_v45, 8  ;;  %v4175_v45 = vsel %vm2021_vm3, %v5297_v36, %v4139_v55 }
 0xa06   :  { %v4183_v48 = vsel %vm2021_vm3, %v5593_v21, %v4163_v12  ;;  %v3994_v21 = vld [vmem:[#allocation2 + $0x352] sm:$0xff]  ;;  %v5633_v12 = vunpack.i.h.bf16 %v7415_v24  ;;  %v5596_v24 = vunpack.i.h.bf16 %v7407_v53 }
 0xa07   :  { %4215 = vmatpush.msrb.mxu0 %v4183_v48 }
 0xa09   :  { %4098 = vxpose.xlu1.b32.cont [8/16] (narrow) %v3986_v0, 8  ;;  %4216 = vmatpush.msrb.mxu0 %v4179_v33  ;;  %v5223_v0 = vunpack.i.l.bf16 %v7389_v51  ;;  %v5300_v51 = vunpack.i.h.bf16 %v7397_v47  ;;  %v3961_v47 = vld [vmem:[#allocation2 + $0x19a] sm:$0xff] }
 0xa0b   :  { %4217 = vmatpush.msrb.mxu0 %v4175_v45 }
 0xa0d   :  { %4033 = vxpose.xlu0.b32.cont [7/16] (narrow) %v3953_v22, 8  ;;  %v4130_v22 = vrot.slane %v5263_v39, 4 }
 0xa11   :  { %4099 = vxpose.xlu1.b32.cont [9/16] (narrow) %v3987_v57, 8  ;;  %v4173_v57 = vsel %vm2021_vm3, %v5186_v52, %v4129_v34 }
 0xa12   :  { %4258 = vmatpush.msrb.mxu2 %v4173_v57 }
 0xa15   :  { %4034 = vxpose.xlu0.b32.cont [8/16] (narrow) %v3954_v54, 8  ;;  %v5149_v54 = vunpack.i.l.bf16 %v7387_v5 }
 0xa19   :  { %4100 = vxpose.xlu1.b32.cont [10/16] (narrow) %v3988_v61, 8  ;;  %v4127_v61 = vrot.slane %v5223_v0, 4 }
 0xa1d   :  { %4035 = vxpose.xlu0.b32.cont [9/16] (narrow) %v3955_v32, 8 }
 0xa21   :  { %4101 = vxpose.xlu1.b32.cont [11/16] (narrow) %v3989_v2, 8  ;;  %v5152_v2 = vunpack.i.h.bf16 %v7387_v5  ;;  %v5411_v5 = vunpack.i.h.bf16 %v7403_v14  ;;  %v4152_v14 = vrot.slane %v5522_v1, 4 }
 0xa23   :  { %v4142_v20 = vrot.slane %v5411_v5, 4 }
 0xa25   :  { %4036 = vxpose.xlu0.b32.cont [10/16] (narrow) %v3956_v56, 8  ;;  %v4128_v56 = vrot.slane %v5226_v23, 4  ;;  %v4178_v3 = vsel %vm2021_vm3, %v5337_v58, %v4142_v20  ;;  %v7788_v23 = vld [vmem:[#allocation13_spill] sm:$0xff] }
 0xa29   :  { %4102 = vxpose.xlu1.b32.cont [12/16] (narrow) %v3990_v30, 8  ;;  %v4171_v30 = vsel %vm2021_vm3, %v5149_v54, %v4127_v61  ;;  %v7789_v61 = vld [vmem:[#allocation17_spill] sm:$0xff] }
 0xa2a   :  { %4218 = vmatpush.msrb.mxu0 %v4171_v30  ;;  %v7793_v30 = vld [vmem:[#allocation33_spill] sm:$0xff] }
 0xa2d   :  { %4037 = vxpose.xlu0.b32.cont [11/16] (narrow) %v3957_v15, 8  ;;  %v4176_v15 = vsel %vm2021_vm3, %v5300_v51, %v4140_v40  ;;  %v7796_v40 = vld [vmem:[#allocation45_spill] sm:$0xff] }
 0xa31   :  { %4103 = vxpose.xlu1.b32.cont [13/16] (narrow) %v7351_v44, 8  ;;  %v5189_v44 = vunpack.i.h.bf16 %v7391_v26  ;;  %v4172_v26 = vsel %vm2021_vm3, %v5152_v2, %v4128_v56  ;;  %v7791_v2 = vld [vmem:[#allocation25_spill] sm:$0xff] }
 0xa32   :  { %v7792_v56 = vld [vmem:[#allocation29_spill] sm:$0xff] }
 0xa33   :  { %v4174_v32 = vsel %vm2021_vm3, %v5189_v44, %v4130_v22 }
 0xa35   :  { %4038 = vxpose.xlu0.b32.cont [12/16] (narrow) %v3958_v62, 8 }
 0xa39   :  { %4104 = vxpose.xlu1.b32.cont [14/16] (narrow) %v7357_v41, 8  ;;  %v5559_v41 = vunpack.i.h.bf16 %v7411_v35  ;;  %v5707_v35 = vunpack.i.h.bf16 %v7413_v31  ;;  %v4164_v31 = vrot.slane %v5670_v37, 4  ;;  %v7802_v37 = vld [vmem:[#allocation12_spill] sm:$0xff] }
 0xa3b   :  { %v4154_v27 = vrot.slane %v5559_v41, 4  ;;  %v4166_v13 = vrot.slane %v5707_v35, 4  ;;  %v4184_v28 = vsel %vm2021_vm3, %v5596_v24, %v4164_v31  ;;  %v7803_v31 = vld [vmem:[#allocation16_spill] sm:$0xff] }
 0xa3c   :  { %v7804_v24 = vld [vmem:[#allocation20_spill] sm:$0xff] }
 0xa3d   :  { %4039 = vxpose.xlu0.b32.cont [13/16] (narrow) %v7311_v11, 8  ;;  %v5485_v11 = vunpack.i.h.bf16 %v7401_v9  ;;  %v4186_v6 = vsel %vm2021_vm3, %v5633_v12, %v4166_v13  ;;  %v4187_v9 = vld [vmem:[%s7594_s4] sm:$0xf] }
 0xa3e   :  { %4516 = vmatmul.msk.f32.vlgmr.msrb.gmra.mxu2 %vm2039_vm4, %v4187_v9  ;;  %4512 = vmatmul.msk.f32.vlgmr.msrb.gmra.mxu0 %vm2039_vm4, %v4187_v9  ;;  %v4322_v12 = vld [vmem:[%s7596_s6] sm:$0xf] }
 0xa3f   :  { %v4182_v4 = vsel %vm2021_vm3, %v5485_v11, %v4154_v27  ;;  %v7799_v11 = vld [vmem:[#allocation57_spill] sm:$0xff] }
 0xa41   :  { %4105 = vxpose.xlu1.b32.cont [15/16] (narrow) %v3993_v59, 8 }
 0xa45   :  { %4040 = vxpose.xlu0.b32.cont [14/16] (narrow) %v7321_v16, 8  ;;  %v5448_v16 = vunpack.i.h.bf16 %v7405_v7 }
 0xa47   :  { %v4180_v19 = vsel %vm2021_vm3, %v5448_v16, %v4152_v14  ;;  %v4309_v14 = vld [vmem:[%s7595_s5] sm:$0xf]  ;;  %s5741_s5 = smov [#allocation3]  }
 0xa48   :  { %s4492_s6 = sshll.u32 %s5741_s5, 4  ;;  %s4493_s6 = int_to_ptr.vmem [resolvable:$true] %s4492_s6 }
 0xa49   :  { %4106 = vxpose.xlu1.b32.end [16/16] (narrow) %v3994_v21, 8 }
 0xa4d   :  { %4041 = vxpose.xlu0.b32.cont [15/16] (narrow) %v3961_v47, 8 }
 0xa55   :  { %4042 = vxpose.xlu0.b32.end [16/16] (narrow) %v3962_v49, 8  ;;  %v7800_v49 = vld [vmem:[#allocation61_spill] sm:$0xff] }
 0xa75   :  { %v4107_v7 = vpop.trf.xlu1 }
 0xa76   :  { %4517 = vmatpush.msk.msrb.mxu3 %vm2021_vm3, %v4107_v7  ;;  %v7801_v7 = vld [vmem:[#allocation65_spill] sm:$0xff] }
 0xa78   :  { %4275 = vmatpush.msrb.mxu3 %v4186_v6 }
 0xa7a   :  { %4276 = vmatpush.msrb.mxu3 %v4182_v4 }
 0xa7c   :  { %4277 = vmatpush.msrb.mxu3 %v4178_v3  ;;  %v7798_v3 = vld [vmem:[#allocation53_spill] sm:$0xff] }
 0xa7e   :  { %4278 = vmatpush.msrb.mxu3 %v4174_v32  ;;  %v7790_v32 = vld [vmem:[#allocation21_spill] sm:$0xff] }
 0xa7f   :  { %4518 = vmatmul.msk.f32.vlgmr.msrb.gmra.mxu3 %vm2039_vm4, %v4187_v9 }
 0xa81   :  { %v4043_v17 = vpop.trf.xlu0 }
 0xa82   :  { %4513 = vmatpush.msk.msrb.mxu1 %vm2021_vm3, %v4043_v17  ;;  %v7805_v17 = vld [vmem:[#allocation10_spill] sm:$0xff] }
 0xa84   :  { %4235 = vmatpush.msrb.mxu1 %v4184_v28  ;;  %v7806_v28 = vld [vmem:[#allocation24_spill] sm:$0xff] }
 0xa86   :  { %4236 = vmatpush.msrb.mxu1 %v4180_v19 }
 0xa88   :  { %4237 = vmatpush.msrb.mxu1 %v4176_v15  ;;  %v7797_v15 = vld [vmem:[#allocation49_spill] sm:$0xff] }
 0xa8a   :  { %4238 = vmatpush.msrb.mxu1 %v4172_v26  ;;  %v7794_v26 = vld [vmem:[#allocation37_spill] sm:$0xff] }
 0xa8b   :  { %4514 = vmatmul.msk.f32.vlgmr.msrb.gmra.mxu1 %vm2039_vm4, %v4187_v9 }
 0xa9c   :  { %5708 = vset.pattern.permute.xlu1 %v7787_v46  ;;  %v7807_v46 = vld [vmem:[#allocation14_spill] sm:$0xff] }
 0xabb   :  { %v7483_v43 = vpop.f32.mrf.mxu0 }
 0xabc   :  { %v4292_v53 = vmul.f32 %v7483_v43, %v7483_v43  ;;  %v4283_v36 = vsel %vm2021_vm3, %v7483_v43, 0.0 }
 0xabe   :  { %v4296_v10 = vsel %vm2021_vm3, %v4292_v53, 0.0  ;;  %v7808_v53 = vld [vmem:[#allocation28_spill] sm:$0xff] }
 0xac1   :  { %v7487_v63 = vpop.f32.mrf.mxu2 }
 0xac2   :  { %v4294_v48 = vmul.f32 %v7487_v63, %v7487_v63  ;;  %v4286_v55 = vsel %vm2021_vm3, %v7487_v63, 0.0 }
 0xac4   :  { %v4299_v34 = vsel %vm2021_vm3, %v4294_v48, 0.0  ;;  %v7810_v48 = vld [vmem:[#allocation32_spill] sm:$0xff] }
 0xb02   :  { %v7489_v42 = vpop.f32.mrf.mxu3 }
 0xb03   :  { %v4295_v52 = vmul.f32 %v7489_v42, %v7489_v42  ;;  %v4288_v62 = vsel %vm2021_vm3, %v7489_v42, 0.0 }
 0xb05   :  { %v4301_v22 = vsel %vm2021_vm3, %v4295_v52, 0.0  ;;  %v7817_v52 = vld [vmem:[#allocation34_spill] sm:$0xff] }
 0xb08   :  { %v7496_v60 = vpop.f32.mrf.mxu1 }
 0xb09   :  { %v4284_v8 = vsel %vm2021_vm3, %v7496_v60, 0.0  ;;  %v4293_v33 = vmul.f32 %v7496_v60, %v7496_v60 }
 0xb0a   :  { %v4285_v39 = vadd.f32 %v4284_v8, %v4283_v36  ;;  %v7809_v36 = vld [vmem:[#allocation18_spill] sm:$0xff]  ;;  %v7814_v8 = vld [vmem:[#allocation40_spill] sm:$0xff] }
 0xb0b   :  { %v4297_v18 = vsel %vm2021_vm3, %v4293_v33, 0.0  ;;  %v7815_v33 = vld [vmem:[#allocation30_spill] sm:$0xff] }
 0xb0c   :  { %v4298_v45 = vadd.f32 %v4297_v18, %v4296_v10  ;;  %v4287_v0 = vadd.f32 %v4286_v55, %v4285_v39  ;;  %v7813_v10 = vld [vmem:[#allocation26_spill] sm:$0xff]  ;;  %v7816_v55 = vld [vmem:[#allocation44_spill] sm:$0xff] }
 0xb0d   :  { %v7818_v39 = vld [vmem:[#allocation48_spill] sm:$0xff]  ;;  %v7819_v18 = vld [vmem:[#allocation38_spill] sm:$0xff] }
 0xb0e   :  { %v4289_v44 = vadd.f32 %v4288_v62, %v4287_v0  ;;  %v4300_v57 = vadd.f32 %v4299_v34, %v4298_v45  ;;  %v7820_v34 = vld [vmem:[#allocation52_spill] sm:$0xff]  ;;  %v7821_v62 = vld [vmem:[#allocation42_spill] sm:$0xff] }
 0xb0f   :  { %v7822_v45 = vld [vmem:[#allocation56_spill] sm:$0xff]  ;;  %v7823_v0 = vld [vmem:[#allocation46_spill] sm:$0xff] }
 0xb10   :  { %4290 = vadd.xlane.f32.xlu0 %v4289_v44  ;;  %v4302_v54 = vadd.f32 %v4301_v22, %v4300_v57  ;;  %v7824_v22 = vld [vmem:[#allocation60_spill] sm:$0xff]  ;;  %v7825_v44 = vld [vmem:[#allocation50_spill] sm:$0xff] }
 0xb11   :  { %v7826_v57 = vld [vmem:[#allocation64_spill] sm:$0xff] }
 0xb12   :  { %4303 = vadd.xlane.f32.xlu2 %v4302_v54  ;;  %v7827_v54 = vld [vmem:[#allocation54_spill] sm:$0xff] }
 0xb3b   :  { %4375 = vxpose.xlu2.b32.start [1/16] (narrow) %v7788_v23, 8  ;;  %v7828_v23 = vld [vmem:[#allocation7_spill] sm:$0xff] }
 0xb43   :  { %4376 = vxpose.xlu2.b32.cont [2/16] (narrow) %v7789_v61, 8  ;;  %v7829_v61 = vld [vmem:[#allocation58_spill] sm:$0xff] }
 0xb4b   :  { %4377 = vxpose.xlu2.b32.cont [3/16] (narrow) %v7790_v32, 8  ;;  %v7830_v32 = vld [vmem:[#allocation9_spill] sm:$0xff] }
 0xb53   :  { %4378 = vxpose.xlu2.b32.cont [4/16] (narrow) %v7791_v2, 8  ;;  %v7831_v2 = vld [vmem:[#allocation62_spill] sm:$0xff] }
 0xb5b   :  { %4379 = vxpose.xlu2.b32.cont [5/16] (narrow) %v7792_v56, 8  ;;  %v7832_v56 = vld [vmem:[#allocation11_spill] sm:$0xff] }
 0xb63   :  { %4380 = vxpose.xlu2.b32.cont [6/16] (narrow) %v7793_v30, 8  ;;  %v7833_v30 = vld [vmem:[#allocation6_spill] sm:$0xff] }
 0xb6b   :  { %4381 = vxpose.xlu2.b32.cont [7/16] (narrow) %v7794_v26, 8  ;;  %v7834_v26 = vld [vmem:[#allocation15_spill] sm:$0xff] }
 0xb73   :  { %4382 = vxpose.xlu2.b32.cont [8/16] (narrow) %v7795_v50, 8  ;;  %v7835_v50 = vld [vmem:[#allocation8_spill] sm:$0xff] }
 0xb7b   :  { %4383 = vxpose.xlu2.b32.cont [9/16] (narrow) %v7796_v40, 8  ;;  %v7836_v40 = vld [vmem:[#allocation19_spill] sm:$0xff] }
 0xb83   :  { %v4291_v51 = vpop.xlane.xlu0 %4290  ;;  %4384 = vxpose.xlu2.b32.cont [10/16] (narrow) %v7797_v15, 8  ;;  %v7837_v15 = vld [vmem:[#allocation23_spill] sm:$0xff] }
 0xb84   :  { %v4305_v59 = vmul.f32 0.001953125, %v4291_v51 }
 0xb85   :  { %v4304_v5 = vpop.xlane.xlu2 %4303 }
 0xb86   :  { %v4307_v58 = vmul.f32 %v4305_v59, %v4305_v59  ;;  %v4306_v20 = vmul.f32 0.001953125, %v4304_v5 }
 0xb88   :  { %v4308_v21 = vsub.f32 %v4306_v20, %v4307_v58 }
 0xb8a   :  { %v4310_v41 = vadd.f32 1e-05, %v4308_v21  ;;  %v7838_v21 = vld [vmem:[#allocation27_spill] sm:$0xff] }
 0xb8b   :  { %4385 = vxpose.xlu2.b32.cont [11/16] (narrow) %v7798_v3, 8 }
 0xb8c   :  { %5711 = vrsqrt.f32 %v4310_v41  ;;  %vm4317_vm9 = vweird.f32 %v4310_v41 }
 0xb92   :  { %v5712_v47 = vpop.eup %5711 }
 0xb93   :  { %v4312_v27 = vmul.f32 %v5712_v47, %v4310_v41  ;;  %4386 = vxpose.xlu2.b32.cont [12/16] (narrow) %v7799_v11, 8  ;;  %vm4318_vm8 = vweird.f32 %v5712_v47 }
 0xb94   :  { %vm4319_vm10 = vmor %vm4317_vm9, %vm4318_vm8 }
 0xb95   :  { %v4313_v4 = vmul.f32 %v5712_v47, %v4312_v27 }
 0xb97   :  { %v4314_v1 = vmul.f32 0.5, %v4313_v4 }
 0xb99   :  { %v4315_v16 = vsub.f32 1.5, %v4314_v1 }
 0xb9b   :  { %v4316_v19 = vmul.f32 %v5712_v47, %v4315_v16  ;;  %4387 = vxpose.xlu2.b32.cont [13/16] (narrow) %v7800_v49, 8  ;;  %v7839_v16 = vld [vmem:[#allocation31_spill] sm:$0xff] }
 0xb9c   :  { %v7843_v49 = vld [vmem:[#allocation47_spill] sm:$0xff] }
 0xb9d   :  { %v4320_v35 = vsel %vm4319_vm10, %v5712_v47, %v4316_v19  ;;  %v7841_v19 = vld [vmem:[#allocation39_spill] sm:$0xff] }
 0xb9e   :  { %v4321_v13 = vmul.f32 %v4320_v35, %v4309_v14  ;;  %v7840_v14 = vld [vmem:[#allocation35_spill] sm:$0xff] }
 0xb9f   :  { %v7844_v35 = vld [vmem:[#allocation51_spill] sm:$0xff] }
 0xba0   :  { %4327 = vperm.xlu0 %5115, %v4321_v13   ;;  %v4323_v6 = vmul.f32 %v4321_v13, %v4305_v59  ;;  %v7846_v13 = vld [vmem:[#allocation59_spill] sm:$0xff] }
 0xba2   :  { %v4324_v9 = vsub.f32 %v4322_v12, %v4323_v6  ;;  %v7847_v12 = vld [vmem:[#allocation63_spill] sm:$0xff]  ;;  %v7848_v6 = vld [vmem:[#allocation88_spill] sm:$0xff] }
 0xba3   :  { %4388 = vxpose.xlu2.b32.cont [14/16] (narrow) %v7801_v7, 8 }
 0xba4   :  { %4336 = vperm.xlu1 %5708, %v4324_v9  }
 0xbab   :  { %4389 = vxpose.xlu2.b32.cont [15/16] (narrow) %v6647_v29, 8  ;;  %v7811_v29 = vld [vmem:[#allocation22_spill] sm:$0xff] }
 0xbb3   :  { %4390 = vxpose.xlu2.b32.end [16/16] (narrow) %v6664_v25, 8  ;;  %v7812_v25 = vld [vmem:[#allocation36_spill] sm:$0xff] }
 0xbc2   :  { %4343 = vxpose.xlu0.b32.start [1/16] (narrow) %v7802_v37, 8 }
 0xbca   :  { %4344 = vxpose.xlu0.b32.cont [2/16] (narrow) %v7803_v31, 8 }
 0xbd2   :  { %4345 = vxpose.xlu0.b32.cont [3/16] (narrow) %v7804_v24, 8 }
 0xbd4   :  { %v4391_v20 = vpop.trf.xlu2 }
 0xbd9   :  { %4407 = vxpose.xlu1.b32.start [1/16] (narrow) %v7805_v17, 8 }
 0xbda   :  { %4346 = vxpose.xlu0.b32.cont [4/16] (narrow) %v7806_v28, 8 }
 0xbe1   :  { %4408 = vxpose.xlu1.b32.cont [2/16] (narrow) %v7807_v46, 8 }
 0xbe2   :  { %4347 = vxpose.xlu0.b32.cont [5/16] (narrow) %v7808_v53, 8 }
 0xbe9   :  { %4409 = vxpose.xlu1.b32.cont [3/16] (narrow) %v7809_v36, 8 }
 0xbea   :  { %4348 = vxpose.xlu0.b32.cont [6/16] (narrow) %v7810_v48, 8 }
 0xbf1   :  { %4410 = vxpose.xlu1.b32.cont [4/16] (narrow) %v7811_v29, 8 }
 0xbf2   :  { %4349 = vxpose.xlu0.b32.cont [7/16] (narrow) %v7812_v25, 8 }
 0xbf9   :  { %4411 = vxpose.xlu1.b32.cont [5/16] (narrow) %v7813_v10, 8 }
 0xbfa   :  { %4350 = vxpose.xlu0.b32.cont [8/16] (narrow) %v7814_v8, 8 }
 0xc01   :  { %4412 = vxpose.xlu1.b32.cont [6/16] (narrow) %v7815_v33, 8 }
 0xc02   :  { %4351 = vxpose.xlu0.b32.cont [9/16] (narrow) %v7816_v55, 8 }
 0xc09   :  { %4413 = vxpose.xlu1.b32.cont [7/16] (narrow) %v7817_v52, 8 }
 0xc0a   :  { %4352 = vxpose.xlu0.b32.cont [10/16] (narrow) %v7818_v39, 8 }
 0xc11   :  { %4414 = vxpose.xlu1.b32.cont [8/16] (narrow) %v7819_v18, 8 }
 0xc12   :  { %4353 = vxpose.xlu0.b32.cont [11/16] (narrow) %v7820_v34, 8  ;;  %v4328_v51 = vpop.permute.xlu0 %4327 }
 0xc13   :  { %v4331_v5 = vmul.f32 %v4328_v51, %v7496_v60  ;;  %v4330_v3 = vmul.f32 %v4328_v51, %v7483_v43  ;;  %v7842_v60 = vld [vmem:[#allocation43_spill] sm:$0xff]  ;;  %v4333_v9 = vmul.f32 %v4328_v51, %v7489_v42  ;;  %v4332_v7 = vmul.f32 %v4328_v51, %v7487_v63 }
 0xc14   :  { %v7845_v43 = vld [vmem:[#allocation55_spill] sm:$0xff] }
 0xc16   :  { %v4337_v59 = vpop.permute.xlu1 %4336 }
 0xc17   :  { %v4340_v58 = vadd.f32 %v4337_v59, %v4331_v5  ;;  %v4339_v47 = vadd.f32 %v4337_v59, %v4330_v3  ;;  %v4342_v37 = vadd.f32 %v4337_v59, %v4333_v9  ;;  %v4341_v17 = vadd.f32 %v4337_v59, %v4332_v7 }
 0xc19   :  { %4415 = vxpose.xlu1.b32.cont [9/16] (narrow) %v7821_v62, 8  ;;  %v4472_v41 = vadd.f32 %v4391_v20, %v4340_v58 }
 0xc1a   :  { %4354 = vxpose.xlu0.b32.cont [12/16] (narrow) %v7822_v45, 8 }
 0xc1b   :  { %v4479_v11 = vrot.slane %v4472_v41, 4 }
 0xc21   :  { %4416 = vxpose.xlu1.b32.cont [10/16] (narrow) %v7823_v0, 8 }
 0xc22   :  { %4355 = vxpose.xlu0.b32.cont [13/16] (narrow) %v7824_v22, 8 }
 0xc29   :  { %4417 = vxpose.xlu1.b32.cont [11/16] (narrow) %v7825_v44, 8 }
 0xc2a   :  { %4356 = vxpose.xlu0.b32.cont [14/16] (narrow) %v7826_v57, 8 }
 0xc31   :  { %4418 = vxpose.xlu1.b32.cont [12/16] (narrow) %v7827_v54, 8 }
 0xc32   :  { %4357 = vxpose.xlu0.b32.cont [15/16] (narrow) %v7828_v23, 8 }
 0xc39   :  { %4419 = vxpose.xlu1.b32.cont [13/16] (narrow) %v7829_v61, 8 }
 0xc3a   :  { %4358 = vxpose.xlu0.b32.end [16/16] (narrow) %v7830_v32, 8 }
 0xc41   :  { %4420 = vxpose.xlu1.b32.cont [14/16] (narrow) %v7831_v2, 8 }
 0xc42   :  { %4439 = vxpose.xlu0.b32.start [1/16] (narrow) %v7832_v56, 8 }
 0xc49   :  { %4421 = vxpose.xlu1.b32.cont [15/16] (narrow) %v7833_v30, 8 }
 0xc4a   :  { %4440 = vxpose.xlu0.b32.cont [2/16] (narrow) %v7834_v26, 8 }
 0xc51   :  { %4422 = vxpose.xlu1.b32.end [16/16] (narrow) %v7835_v50, 8 }
 0xc52   :  { %4441 = vxpose.xlu0.b32.cont [3/16] (narrow) %v7836_v40, 8 }
 0xc5a   :  { %4442 = vxpose.xlu0.b32.cont [4/16] (narrow) %v7837_v15, 8 }
 0xc62   :  { %4443 = vxpose.xlu0.b32.cont [5/16] (narrow) %v7838_v21, 8 }
 0xc66   :  { %v4359_v27 = vpop.trf.xlu0 }
 0xc67   :  { %v4471_v4 = vadd.f32 %v4359_v27, %v4339_v47 }
 0xc69   :  { %v4481_v1 = vsel %vm2021_vm3, %v4471_v4, %v4479_v11 }
 0xc6a   :  { %4485 = vst [vmem:[#allocation3] sm:$0xff] %v4481_v1  ;;  %4444 = vxpose.xlu0.b32.cont [6/16] (narrow) %v7839_v16, 8 }
 0xc72   :  { %4445 = vxpose.xlu0.b32.cont [7/16] (narrow) %v7840_v14, 8 }
 0xc7a   :  { %4446 = vxpose.xlu0.b32.cont [8/16] (narrow) %v7841_v19, 8 }
 0xc7d   :  { %v4423_v31 = vpop.trf.xlu1 }
 0xc7e   :  { %v4473_v46 = vadd.f32 %v4423_v31, %v4341_v17 }
 0xc82   :  { %4447 = vxpose.xlu0.b32.cont [9/16] (narrow) %v7842_v60, 8 }
 0xc8a   :  { %4448 = vxpose.xlu0.b32.cont [10/16] (narrow) %v7843_v49, 8 }
 0xc92   :  { %4449 = vxpose.xlu0.b32.cont [11/16] (narrow) %v7844_v35, 8 }
 0xc9a   :  { %4450 = vxpose.xlu0.b32.cont [12/16] (narrow) %v7845_v43, 8 }
 0xca2   :  { %4451 = vxpose.xlu0.b32.cont [13/16] (narrow) %v7846_v13, 8 }
 0xcaa   :  { %4452 = vxpose.xlu0.b32.cont [14/16] (narrow) %v7847_v12, 8 }
 0xcb2   :  { %4453 = vxpose.xlu0.b32.cont [15/16] (narrow) %v6642_v38, 8 }
 0xcba   :  { %4454 = vxpose.xlu0.b32.end [16/16] (narrow) %v7848_v6, 8 }
 0xce6   :  { %v4455_v24 = vpop.trf.xlu0 }
 0xce7   :  { %v4474_v28 = vadd.f32 %v4455_v24, %v4342_v37 }
 0xce9   :  { %v4480_v53 = vrot.slane %v4474_v28, 4 }
 0xceb   :  { %v4482_v38 = vsel %vm2021_vm3, %v4473_v46, %v4480_v53 }
 0xcec   :  { %4486 = vst [vmem:[#allocation3 + $0x8] sm:$0xff] %v4482_v38 }
 0xced   :  { %4497 = dma.vmem_to_hbm [thread:$0]  %s4493_s6, 256, %s4495_s23, [#allocation4]  }
 0xcee   :  { %5737 = dma.done.wait [#allocation4], 256  }
 0xcef   :  { %5738 = vsyncadd [#allocation4], 4294967040 }
 0xcf0   :  { %4502 = vsyncpa [#allocation4], 1 }

</bundles_post_ra>
